<compile_context>
chip_gen: v6e
topology: v6e:2x2x1
jax: 0.10.0
libtpu: 0.0.40
codegen_flags: <defaults>
</compile_context>

<pallas_src>
import jax
import jax.numpy as jnp
from jax.experimental import pallas as pl
from jax.experimental.pallas import tpu as pltpu

_EPS = 1e-5


def _fused_kernel(x_ref, r_hbm, w1_ref, w2_ref, g1_ref, b1_ref, g2_ref, b2_ref,
                  o_hbm, r_vmem, out_vmem, r_sem, out_sem):
    m = x_ref.shape[1]
    inv_m = jnp.float32(1.0 / m)

    # Kick off the residual (largest HBM operand) DMA immediately so it is
    # hidden behind conv1 + BN1 statistics.
    r_copy = pltpu.make_async_copy(r_hbm, r_vmem, r_sem)
    r_copy.start()

    # ---- conv2d3: (256,128) @ (128,M) on the MXU (bf16 in, f32 accumulate) --
    x_bf = x_ref[...].astype(jnp.bfloat16)
    y1 = jnp.dot(w1_ref[...], x_bf, preferred_element_type=jnp.float32)

    # ---- batchnorm2d3 statistics (training mode, biased): one fused
    #      sum / sum-of-squares pass, no centered temporary ---------------------
    s1 = jnp.sum(y1, axis=1, keepdims=True)
    ss1 = jnp.sum(y1 * y1, axis=1, keepdims=True)
    mean1 = s1 * inv_m
    var1 = jnp.maximum(ss1 * inv_m - mean1 * mean1, 0.0)
    scale1 = g1_ref[...] * jax.lax.rsqrt(var1 + _EPS)
    shift1 = b1_ref[...] - mean1 * scale1          # mean folded into the bias

    # ---- BN1 apply + residual add + ReLU + bf16 cast (single fused pass) ----
    r_copy.wait()
    a_bf = jnp.maximum(y1 * scale1 + shift1 + r_vmem[...], 0.0).astype(jnp.bfloat16)

    # ---- conv2d5: (128,256) @ (256,M) ----------------------------------------
    y2 = jnp.dot(w2_ref[...], a_bf, preferred_element_type=jnp.float32)

    # ---- batchnorm2d5 statistics ----------------------------------------------
    s2 = jnp.sum(y2, axis=1, keepdims=True)
    ss2 = jnp.sum(y2 * y2, axis=1, keepdims=True)
    mean2 = s2 * inv_m
    var2 = jnp.maximum(ss2 * inv_m - mean2 * mean2, 0.0)
    scale2 = g2_ref[...] * jax.lax.rsqrt(var2 + _EPS)
    shift2 = b2_ref[...] - mean2 * scale2

    # ---- BN2 apply in channel chunks; each chunk's HBM writeback DMA starts
    #      as soon as it is computed (overlaps the next chunk's VPU work) ------
    n_chunks = out_sem.shape[0]
    rows = out_vmem.shape[0] // n_chunks
    copies = []
    for i in range(n_chunks):
        lo = i * rows
        out_vmem[lo:lo + rows, :] = (y2[lo:lo + rows, :] * scale2[lo:lo + rows, :]
                                     + shift2[lo:lo + rows, :])
        cp = pltpu.make_async_copy(out_vmem.at[lo:lo + rows, :],
                                   o_hbm.at[lo:lo + rows, :],
                                   out_sem.at[i])
        cp.start()
        copies.append(cp)
    for cp in copies:
        cp.wait()


@jax.jit
def module_forward(x10, x14, params):
    n, c_in, h, w = x10.shape
    c_mid = x14.shape[1]
    c_out = params["w2"].shape[0]
    m = n * h * w

    # NCHW -> (C, M). For N == 1 (the module spec) the transpose is over a
    # size-1 axis, i.e. a free reshape; no extra HBM pass.
    x2d = jnp.transpose(x10, (1, 0, 2, 3)).reshape(c_in, m)
    r2d = jnp.transpose(x14, (1, 0, 2, 3)).reshape(c_mid, m)

    w1 = params["w1"].astype(jnp.bfloat16)          # (256, 128) = (Cout, Cin)
    w2 = params["w2"].astype(jnp.bfloat16)          # (128, 256)
    g1 = params["g1"].reshape(c_mid, 1)
    b1 = params["b1"].reshape(c_mid, 1)
    g2 = params["g2"].reshape(c_out, 1)
    b2 = params["b2"].reshape(c_out, 1)

    # 4 writeback chunks (each a multiple of 8 sublanes) when divisible.
    n_out_chunks = 4 if (c_out % 4 == 0 and (c_out // 4) % 8 == 0) else 1

    # ---- VMEM budget + guard (v7x has only 64 MiB physical VMEM) -------------
    vmem_bytes = (
        (c_in + c_mid + c_out) * m * 4          # x2d in + residual scratch + out scratch
        + (c_mid + c_out) * m * 4               # y1 / y2 f32 temporaries
        + (c_in + c_mid) * m * 2                # bf16 casts of x and x16
        + (c_in * c_mid + c_mid * c_out) * 2    # bf16 weights
        + 8 * (c_mid + c_out) * 4               # BN params / per-channel stats
    )
    if vmem_bytes > (40 << 20):
        # TODO(synk): tiled two-phase (stats-then-apply) fallback for M too large
        # for full VMEM residency (N>1 or 112x112 spatial on v7x).
        raise NotImplementedError(
            "activation footprint exceeds single-call VMEM budget")
    vmem_limit = min(max(int(vmem_bytes * 2.5) + (8 << 20), 32 << 20), 48 << 20)

    flops = 2 * m * (c_in * c_mid + c_mid * c_out)
    bytes_accessed = (
        (c_in * m + c_mid * m + c_out * m) * 4        # x, residual, output (f32)
        + (c_in * c_mid + c_mid * c_out) * 2          # bf16 weights
        + 2 * (c_mid + c_out) * 4                     # BN params
    )

    vmem_spec = pl.BlockSpec(memory_space=pltpu.MemorySpace.VMEM)
    any_spec = pl.BlockSpec(memory_space=pl.ANY)

    out2d = pl.pallas_call(
        _fused_kernel,
        out_shape=jax.ShapeDtypeStruct((c_out, m), jnp.float32),
        in_specs=[vmem_spec, any_spec] + [vmem_spec] * 6,
        out_specs=any_spec,
        scratch_shapes=[
            pltpu.VMEM((c_mid, m), jnp.float32),       # residual landing buffer
            pltpu.VMEM((c_out, m), jnp.float32),       # output staging buffer
            pltpu.SemaphoreType.DMA(()),               # residual copy sem
            pltpu.SemaphoreType.DMA((n_out_chunks,)),  # per-chunk writeback sems
        ],
        compiler_params=pltpu.CompilerParams(vmem_limit_bytes=vmem_limit),
        cost_estimate=pl.CostEstimate(
            flops=flops, transcendentals=0, bytes_accessed=bytes_accessed),
    )(x2d, r2d, w1, w2, g1, b1, g2, b2)

    # (Cout, M) -> NCHW; free for N == 1.
    return jnp.transpose(out2d.reshape(c_out, n, h, w), (1, 0, 2, 3))


def reference_forward(x10, x14, params):
    def bn(x, g, b):
        mean = jnp.mean(x, axis=(0, 2, 3), keepdims=True)
        var = jnp.mean((x - mean) ** 2, axis=(0, 2, 3), keepdims=True)
        return (x - mean) * jax.lax.rsqrt(var + _EPS) * g[None, :, None, None] \
               + b[None, :, None, None]

    y1 = jnp.einsum("nchw,oc->nohw", x10, params["w1"])
    x16 = jnp.maximum(bn(y1, params["g1"], params["b1"]) + x14, 0.0)
    y2 = jnp.einsum("nchw,oc->nohw", x16, params["w2"])
    return bn(y2, params["g2"], params["b2"])


if __name__ == "__main__":
    key = jax.random.PRNGKey(0)
    k1, k2, k3, k4, k5, k6, k7, k8 = jax.random.split(key, 8)

    # Channel counts are fixed by the module (128 -> 256 -> 128); spatial size
    # kept small for the test.
    N, H, W = 1, 16, 16
    C_IN, C_MID = 128, 256

    x10 = jax.random.normal(k1, (N, C_IN, H, W), dtype=jnp.float32)
    x14 = jax.random.normal(k2, (N, C_MID, H, W), dtype=jnp.float32)

    params = {
        # Conv weights stored as (Cout, Cin) == PyTorch (Cout, Cin, 1, 1) squeezed.
        "w1": jax.random.normal(k3, (C_MID, C_IN), jnp.float32) * (1.0 / C_IN ** 0.5),
        "w2": jax.random.normal(k4, (C_IN, C_MID), jnp.float32) * (1.0 / C_MID ** 0.5),
        "g1": 1.0 + 0.1 * jax.random.normal(k5, (C_MID,), jnp.float32),
        "b1": 0.1 * jax.random.normal(k6, (C_MID,), jnp.float32),
        "g2": 1.0 + 0.1 * jax.random.normal(k7, (C_IN,), jnp.float32),
        "b2": 0.1 * jax.random.normal(k8, (C_IN,), jnp.float32),
    }

    out = module_forward(x10, x14, params)
    jax.block_until_ready(out)
    assert out.shape == (N, C_IN, H, W)

    # Reference in f32 on the same bf16-quantized x10/weights the kernel uses,
    # so the check isolates kernel correctness from the by-design bf16 rounding.
    q = lambda t: t.astype(jnp.bfloat16).astype(jnp.float32)
    params_q = dict(params, w1=q(params["w1"]), w2=q(params["w2"]))
    ref = reference_forward(q(x10), x14, params_q)
    err = float(jnp.max(jnp.abs(out - ref)))
    assert err < 3e-2, err

    print("KERNEL_OK")
</pallas_src>

<mosaic_0001>
module attributes {stable_mosaic.version = 11 : i64} {
  func.func @_fused_kernel(%arg0: memref<128x256xf32, #tpu.memory_space<vmem>>, %arg1: memref<256x256xf32, #tpu.memory_space<any>>, %arg2: memref<256x128xbf16, #tpu.memory_space<vmem>>, %arg3: memref<128x256xbf16, #tpu.memory_space<vmem>>, %arg4: memref<256x1xf32, #tpu.memory_space<vmem>>, %arg5: memref<256x1xf32, #tpu.memory_space<vmem>>, %arg6: memref<128x1xf32, #tpu.memory_space<vmem>>, %arg7: memref<128x1xf32, #tpu.memory_space<vmem>>, %arg8: memref<128x256xf32, #tpu.memory_space<any>>, %arg9: memref<256x256xf32, #tpu.memory_space<vmem>>, %arg10: memref<128x256xf32, #tpu.memory_space<vmem>>, %arg11: memref<!tpu.dma_semaphore, #tpu.memory_space<semaphore_mem>>, %arg12: memref<4x!tpu.dma_semaphore, #tpu.memory_space<semaphore_mem>>) attributes {dimension_semantics = [], scalar_prefetch = 0 : i64, scratch_operands = 4 : i64, tpu.core_type = #tpu.core_type<tc>} {
    tpu.enqueue_dma source(%arg1 : memref<256x256xf32, #tpu.memory_space<any>>) target(%arg9 : memref<256x256xf32, #tpu.memory_space<vmem>>) target_semaphore(%arg11 : memref<!tpu.dma_semaphore, #tpu.memory_space<semaphore_mem>>)
    %c0 = arith.constant 0 : index
    %c0_0 = arith.constant 0 : index
    %0 = vector.load %arg0[%c0, %c0_0] : memref<128x256xf32, #tpu.memory_space<vmem>>, vector<128x256xf32>
    %1 = arith.truncf %0 : vector<128x256xf32> to vector<128x256xbf16>
    %c0_1 = arith.constant 0 : index
    %c0_2 = arith.constant 0 : index
    %2 = vector.load %arg2[%c0_1, %c0_2] : memref<256x128xbf16, #tpu.memory_space<vmem>>, vector<256x128xbf16>
    %cst = arith.constant dense<0.000000e+00> : vector<256x256xf32>
    %3 = tpu.matmul %2, %1, %cst {dimension_numbers = #tpu.dot_dimension_numbers<[1], [0], [0], [1], [0, 0, 1, 1], [], []>} : vector<256x128xbf16>, vector<128x256xbf16>, vector<256x256xf32> -> vector<256x256xf32>
    %cst_3 = arith.constant dense<0.000000e+00> : vector<256xf32>
    %4 = vector.multi_reduction <add>, %3, %cst_3 [1] : vector<256x256xf32> to vector<256xf32>
    %5 = vector.shape_cast %4 : vector<256xf32> to vector<256x1xf32>
    %6 = arith.mulf %3, %3 : vector<256x256xf32>
    %cst_4 = arith.constant dense<0.000000e+00> : vector<256xf32>
    %7 = vector.multi_reduction <add>, %6, %cst_4 [1] : vector<256x256xf32> to vector<256xf32>
    %8 = vector.shape_cast %7 : vector<256xf32> to vector<256x1xf32>
    %cst_5 = arith.constant 3.906250e-03 : f32
    %9 = vector.broadcast %cst_5 : f32 to vector<256x1xf32>
    %10 = arith.mulf %5, %9 : vector<256x1xf32>
    %cst_6 = arith.constant 3.906250e-03 : f32
    %11 = vector.broadcast %cst_6 : f32 to vector<256x1xf32>
    %12 = arith.mulf %8, %11 : vector<256x1xf32>
    %13 = arith.mulf %10, %10 : vector<256x1xf32>
    %14 = arith.subf %12, %13 : vector<256x1xf32>
    %cst_7 = arith.constant 0.000000e+00 : f32
    %15 = vector.broadcast %cst_7 : f32 to vector<256x1xf32>
    %16 = arith.maximumf %14, %15 : vector<256x1xf32>
    %c0_8 = arith.constant 0 : index
    %c0_9 = arith.constant 0 : index
    %17 = vector.load %arg4[%c0_8, %c0_9] : memref<256x1xf32, #tpu.memory_space<vmem>>, vector<256x1xf32>
    %cst_10 = arith.constant 9.99999974E-6 : f32
    %18 = vector.broadcast %cst_10 : f32 to vector<256x1xf32>
    %19 = arith.addf %16, %18 : vector<256x1xf32>
    %20 = math.rsqrt %19 : vector<256x1xf32>
    %21 = arith.mulf %17, %20 : vector<256x1xf32>
    %c0_11 = arith.constant 0 : index
    %c0_12 = arith.constant 0 : index
    %22 = vector.load %arg5[%c0_11, %c0_12] : memref<256x1xf32, #tpu.memory_space<vmem>>, vector<256x1xf32>
    %23 = arith.mulf %10, %21 : vector<256x1xf32>
    %24 = arith.subf %22, %23 : vector<256x1xf32>
    tpu.wait_dma2 semaphore(%arg11 : memref<!tpu.dma_semaphore, #tpu.memory_space<semaphore_mem>>) src(%arg1 : memref<256x256xf32, #tpu.memory_space<any>>) dst(%arg9 : memref<256x256xf32, #tpu.memory_space<vmem>>)
    %25 = vector.broadcast %21 : vector<256x1xf32> to vector<256x256xf32>
    %26 = arith.mulf %3, %25 : vector<256x256xf32>
    %27 = vector.broadcast %24 : vector<256x1xf32> to vector<256x256xf32>
    %28 = arith.addf %26, %27 : vector<256x256xf32>
    %c0_13 = arith.constant 0 : index
    %c0_14 = arith.constant 0 : index
    %29 = vector.load %arg9[%c0_13, %c0_14] : memref<256x256xf32, #tpu.memory_space<vmem>>, vector<256x256xf32>
    %30 = arith.addf %28, %29 : vector<256x256xf32>
    %cst_15 = arith.constant 0.000000e+00 : f32
    %31 = vector.broadcast %cst_15 : f32 to vector<256x256xf32>
    %32 = arith.maximumf %30, %31 : vector<256x256xf32>
    %33 = arith.truncf %32 : vector<256x256xf32> to vector<256x256xbf16>
    %c0_16 = arith.constant 0 : index
    %c0_17 = arith.constant 0 : index
    %34 = vector.load %arg3[%c0_16, %c0_17] : memref<128x256xbf16, #tpu.memory_space<vmem>>, vector<128x256xbf16>
    %cst_18 = arith.constant dense<0.000000e+00> : vector<128x256xf32>
    %35 = tpu.matmul %34, %33, %cst_18 {dimension_numbers = #tpu.dot_dimension_numbers<[1], [0], [0], [1], [0, 0, 1, 1], [], []>} : vector<128x256xbf16>, vector<256x256xbf16>, vector<128x256xf32> -> vector<128x256xf32>
    %cst_19 = arith.constant dense<0.000000e+00> : vector<128xf32>
    %36 = vector.multi_reduction <add>, %35, %cst_19 [1] : vector<128x256xf32> to vector<128xf32>
    %37 = vector.shape_cast %36 : vector<128xf32> to vector<128x1xf32>
    %38 = arith.mulf %35, %35 : vector<128x256xf32>
    %cst_20 = arith.constant dense<0.000000e+00> : vector<128xf32>
    %39 = vector.multi_reduction <add>, %38, %cst_20 [1] : vector<128x256xf32> to vector<128xf32>
    %40 = vector.shape_cast %39 : vector<128xf32> to vector<128x1xf32>
    %cst_21 = arith.constant 3.906250e-03 : f32
    %41 = vector.broadcast %cst_21 : f32 to vector<128x1xf32>
    %42 = arith.mulf %37, %41 : vector<128x1xf32>
    %cst_22 = arith.constant 3.906250e-03 : f32
    %43 = vector.broadcast %cst_22 : f32 to vector<128x1xf32>
    %44 = arith.mulf %40, %43 : vector<128x1xf32>
    %45 = arith.mulf %42, %42 : vector<128x1xf32>
    %46 = arith.subf %44, %45 : vector<128x1xf32>
    %cst_23 = arith.constant 0.000000e+00 : f32
    %47 = vector.broadcast %cst_23 : f32 to vector<128x1xf32>
    %48 = arith.maximumf %46, %47 : vector<128x1xf32>
    %c0_24 = arith.constant 0 : index
    %c0_25 = arith.constant 0 : index
    %49 = vector.load %arg6[%c0_24, %c0_25] : memref<128x1xf32, #tpu.memory_space<vmem>>, vector<128x1xf32>
    %cst_26 = arith.constant 9.99999974E-6 : f32
    %50 = vector.broadcast %cst_26 : f32 to vector<128x1xf32>
    %51 = arith.addf %48, %50 : vector<128x1xf32>
    %52 = math.rsqrt %51 : vector<128x1xf32>
    %53 = arith.mulf %49, %52 : vector<128x1xf32>
    %c0_27 = arith.constant 0 : index
    %c0_28 = arith.constant 0 : index
    %54 = vector.load %arg7[%c0_27, %c0_28] : memref<128x1xf32, #tpu.memory_space<vmem>>, vector<128x1xf32>
    %55 = arith.mulf %42, %53 : vector<128x1xf32>
    %56 = arith.subf %54, %55 : vector<128x1xf32>
    %57 = vector.extract_strided_slice %35 {offsets = [0, 0], sizes = [32, 256], strides = [1, 1]} : vector<128x256xf32> to vector<32x256xf32>
    %58 = vector.extract_strided_slice %53 {offsets = [0, 0], sizes = [32, 1], strides = [1, 1]} : vector<128x1xf32> to vector<32x1xf32>
    %59 = vector.broadcast %58 : vector<32x1xf32> to vector<32x256xf32>
    %60 = arith.mulf %57, %59 : vector<32x256xf32>
    %61 = vector.extract_strided_slice %56 {offsets = [0, 0], sizes = [32, 1], strides = [1, 1]} : vector<128x1xf32> to vector<32x1xf32>
    %62 = vector.broadcast %61 : vector<32x1xf32> to vector<32x256xf32>
    %63 = arith.addf %60, %62 : vector<32x256xf32>
    %c0_29 = arith.constant 0 : index
    %c0_30 = arith.constant 0 : index
    %64 = vector.load %arg10[%c0_29, %c0_30] : memref<128x256xf32, #tpu.memory_space<vmem>>, vector<32x256xf32>
    tpu.vector_store %arg10[%c0_29, %c0_30], %63 {strides = array<i32>} : memref<128x256xf32, #tpu.memory_space<vmem>>, vector<32x256xf32>,
    %c0_i32 = arith.constant 0 : i32
    %c0_i32_31 = arith.constant 0 : i32
    %c0_i32_32 = arith.constant 0 : i32
    %65 = tpu.memref_slice %arg10[%c0_i32_31, %c0_i32_32] : memref<128x256xf32, #tpu.memory_space<vmem>> -> memref<32x256xf32, #tpu.memory_space<vmem>>
    %c0_i32_33 = arith.constant 0 : i32
    %c0_i32_34 = arith.constant 0 : i32
    %66 = tpu.memref_slice %arg8[%c0_i32_33, %c0_i32_34] : memref<128x256xf32, #tpu.memory_space<any>> -> memref<32x256xf32, #tpu.memory_space<any>>
    %67 = tpu.memref_slice %arg12[%c0_i32] : memref<4x!tpu.dma_semaphore, #tpu.memory_space<semaphore_mem>> -> memref<1x!tpu.dma_semaphore, #tpu.memory_space<semaphore_mem>>
    %68 = tpu.memref_squeeze %67 : memref<1x!tpu.dma_semaphore, #tpu.memory_space<semaphore_mem>> -> memref<!tpu.dma_semaphore, #tpu.memory_space<semaphore_mem>>
    tpu.enqueue_dma source(%65 : memref<32x256xf32, #tpu.memory_space<vmem>>) target(%66 : memref<32x256xf32, #tpu.memory_space<any>>) target_semaphore(%68 : memref<!tpu.dma_semaphore, #tpu.memory_space<semaphore_mem>>)
    %69 = vector.extract_strided_slice %35 {offsets = [32, 0], sizes = [32, 256], strides = [1, 1]} : vector<128x256xf32> to vector<32x256xf32>
    %70 = vector.extract_strided_slice %53 {offsets = [32, 0], sizes = [32, 1], strides = [1, 1]} : vector<128x1xf32> to vector<32x1xf32>
    %71 = vector.broadcast %70 : vector<32x1xf32> to vector<32x256xf32>
    %72 = arith.mulf %69, %71 : vector<32x256xf32>
    %73 = vector.extract_strided_slice %56 {offsets = [32, 0], sizes = [32, 1], strides = [1, 1]} : vector<128x1xf32> to vector<32x1xf32>
    %74 = vector.broadcast %73 : vector<32x1xf32> to vector<32x256xf32>
    %75 = arith.addf %72, %74 : vector<32x256xf32>
    %c32 = arith.constant 32 : index
    %c0_35 = arith.constant 0 : index
    %76 = vector.load %arg10[%c32, %c0_35] : memref<128x256xf32, #tpu.memory_space<vmem>>, vector<32x256xf32>
    tpu.vector_store %arg10[%c32, %c0_35], %75 {strides = array<i32>} : memref<128x256xf32, #tpu.memory_space<vmem>>, vector<32x256xf32>,
    %c1_i32 = arith.constant 1 : i32
    %c32_i32 = arith.constant 32 : i32
    %c0_i32_36 = arith.constant 0 : i32
    %77 = tpu.memref_slice %arg10[%c32_i32, %c0_i32_36] : memref<128x256xf32, #tpu.memory_space<vmem>> -> memref<32x256xf32, #tpu.memory_space<vmem>>
    %c32_i32_37 = arith.constant 32 : i32
    %c0_i32_38 = arith.constant 0 : i32
    %78 = tpu.memref_slice %arg8[%c32_i32_37, %c0_i32_38] : memref<128x256xf32, #tpu.memory_space<any>> -> memref<32x256xf32, #tpu.memory_space<any>>
    %79 = tpu.memref_slice %arg12[%c1_i32] : memref<4x!tpu.dma_semaphore, #tpu.memory_space<semaphore_mem>> -> memref<1x!tpu.dma_semaphore, #tpu.memory_space<semaphore_mem>>
    %80 = tpu.memref_squeeze %79 : memref<1x!tpu.dma_semaphore, #tpu.memory_space<semaphore_mem>> -> memref<!tpu.dma_semaphore, #tpu.memory_space<semaphore_mem>>
    tpu.enqueue_dma source(%77 : memref<32x256xf32, #tpu.memory_space<vmem>>) target(%78 : memref<32x256xf32, #tpu.memory_space<any>>) target_semaphore(%80 : memref<!tpu.dma_semaphore, #tpu.memory_space<semaphore_mem>>)
    %81 = vector.extract_strided_slice %35 {offsets = [64, 0], sizes = [32, 256], strides = [1, 1]} : vector<128x256xf32> to vector<32x256xf32>
    %82 = vector.extract_strided_slice %53 {offsets = [64, 0], sizes = [32, 1], strides = [1, 1]} : vector<128x1xf32> to vector<32x1xf32>
    %83 = vector.broadcast %82 : vector<32x1xf32> to vector<32x256xf32>
    %84 = arith.mulf %81, %83 : vector<32x256xf32>
    %85 = vector.extract_strided_slice %56 {offsets = [64, 0], sizes = [32, 1], strides = [1, 1]} : vector<128x1xf32> to vector<32x1xf32>
    %86 = vector.broadcast %85 : vector<32x1xf32> to vector<32x256xf32>
    %87 = arith.addf %84, %86 : vector<32x256xf32>
    %c64 = arith.constant 64 : index
    %c0_39 = arith.constant 0 : index
    %88 = vector.load %arg10[%c64, %c0_39] : memref<128x256xf32, #tpu.memory_space<vmem>>, vector<32x256xf32>
    tpu.vector_store %arg10[%c64, %c0_39], %87 {strides = array<i32>} : memref<128x256xf32, #tpu.memory_space<vmem>>, vector<32x256xf32>,
    %c2_i32 = arith.constant 2 : i32
    %c64_i32 = arith.constant 64 : i32
    %c0_i32_40 = arith.constant 0 : i32
    %89 = tpu.memref_slice %arg10[%c64_i32, %c0_i32_40] : memref<128x256xf32, #tpu.memory_space<vmem>> -> memref<32x256xf32, #tpu.memory_space<vmem>>
    %c64_i32_41 = arith.constant 64 : i32
    %c0_i32_42 = arith.constant 0 : i32
    %90 = tpu.memref_slice %arg8[%c64_i32_41, %c0_i32_42] : memref<128x256xf32, #tpu.memory_space<any>> -> memref<32x256xf32, #tpu.memory_space<any>>
    %91 = tpu.memref_slice %arg12[%c2_i32] : memref<4x!tpu.dma_semaphore, #tpu.memory_space<semaphore_mem>> -> memref<1x!tpu.dma_semaphore, #tpu.memory_space<semaphore_mem>>
    %92 = tpu.memref_squeeze %91 : memref<1x!tpu.dma_semaphore, #tpu.memory_space<semaphore_mem>> -> memref<!tpu.dma_semaphore, #tpu.memory_space<semaphore_mem>>
    tpu.enqueue_dma source(%89 : memref<32x256xf32, #tpu.memory_space<vmem>>) target(%90 : memref<32x256xf32, #tpu.memory_space<any>>) target_semaphore(%92 : memref<!tpu.dma_semaphore, #tpu.memory_space<semaphore_mem>>)
    %93 = vector.extract_strided_slice %35 {offsets = [96, 0], sizes = [32, 256], strides = [1, 1]} : vector<128x256xf32> to vector<32x256xf32>
    %94 = vector.extract_strided_slice %53 {offsets = [96, 0], sizes = [32, 1], strides = [1, 1]} : vector<128x1xf32> to vector<32x1xf32>
    %95 = vector.broadcast %94 : vector<32x1xf32> to vector<32x256xf32>
    %96 = arith.mulf %93, %95 : vector<32x256xf32>
    %97 = vector.extract_strided_slice %56 {offsets = [96, 0], sizes = [32, 1], strides = [1, 1]} : vector<128x1xf32> to vector<32x1xf32>
    %98 = vector.broadcast %97 : vector<32x1xf32> to vector<32x256xf32>
    %99 = arith.addf %96, %98 : vector<32x256xf32>
    %c96 = arith.constant 96 : index
    %c0_43 = arith.constant 0 : index
    %100 = vector.load %arg10[%c96, %c0_43] : memref<128x256xf32, #tpu.memory_space<vmem>>, vector<32x256xf32>
    tpu.vector_store %arg10[%c96, %c0_43], %99 {strides = array<i32>} : memref<128x256xf32, #tpu.memory_space<vmem>>, vector<32x256xf32>,
    %c3_i32 = arith.constant 3 : i32
    %c96_i32 = arith.constant 96 : i32
    %c0_i32_44 = arith.constant 0 : i32
    %101 = tpu.memref_slice %arg10[%c96_i32, %c0_i32_44] : memref<128x256xf32, #tpu.memory_space<vmem>> -> memref<32x256xf32, #tpu.memory_space<vmem>>
    %c96_i32_45 = arith.constant 96 : i32
    %c0_i32_46 = arith.constant 0 : i32
    %102 = tpu.memref_slice %arg8[%c96_i32_45, %c0_i32_46] : memref<128x256xf32, #tpu.memory_space<any>> -> memref<32x256xf32, #tpu.memory_space<any>>
    %103 = tpu.memref_slice %arg12[%c3_i32] : memref<4x!tpu.dma_semaphore, #tpu.memory_space<semaphore_mem>> -> memref<1x!tpu.dma_semaphore, #tpu.memory_space<semaphore_mem>>
    %104 = tpu.memref_squeeze %103 : memref<1x!tpu.dma_semaphore, #tpu.memory_space<semaphore_mem>> -> memref<!tpu.dma_semaphore, #tpu.memory_space<semaphore_mem>>
    tpu.enqueue_dma source(%101 : memref<32x256xf32, #tpu.memory_space<vmem>>) target(%102 : memref<32x256xf32, #tpu.memory_space<any>>) target_semaphore(%104 : memref<!tpu.dma_semaphore, #tpu.memory_space<semaphore_mem>>)
    %c0_i32_47 = arith.constant 0 : i32
    %c0_i32_48 = arith.constant 0 : i32
    %c0_i32_49 = arith.constant 0 : i32
    %105 = tpu.memref_slice %arg10[%c0_i32_48, %c0_i32_49] : memref<128x256xf32, #tpu.memory_space<vmem>> -> memref<32x256xf32, #tpu.memory_space<vmem>>
    %c0_i32_50 = arith.constant 0 : i32
    %c0_i32_51 = arith.constant 0 : i32
    %106 = tpu.memref_slice %arg8[%c0_i32_50, %c0_i32_51] : memref<128x256xf32, #tpu.memory_space<any>> -> memref<32x256xf32, #tpu.memory_space<any>>
    %107 = tpu.memref_slice %arg12[%c0_i32_47] : memref<4x!tpu.dma_semaphore, #tpu.memory_space<semaphore_mem>> -> memref<1x!tpu.dma_semaphore, #tpu.memory_space<semaphore_mem>>
    %108 = tpu.memref_squeeze %107 : memref<1x!tpu.dma_semaphore, #tpu.memory_space<semaphore_mem>> -> memref<!tpu.dma_semaphore, #tpu.memory_space<semaphore_mem>>
    tpu.wait_dma2 semaphore(%108 : memref<!tpu.dma_semaphore, #tpu.memory_space<semaphore_mem>>) src(%105 : memref<32x256xf32, #tpu.memory_space<vmem>>) dst(%106 : memref<32x256xf32, #tpu.memory_space<any>>)
    %c1_i32_52 = arith.constant 1 : i32
    %c32_i32_53 = arith.constant 32 : i32
    %c0_i32_54 = arith.constant 0 : i32
    %109 = tpu.memref_slice %arg10[%c32_i32_53, %c0_i32_54] : memref<128x256xf32, #tpu.memory_space<vmem>> -> memref<32x256xf32, #tpu.memory_space<vmem>>
    %c32_i32_55 = arith.constant 32 : i32
    %c0_i32_56 = arith.constant 0 : i32
    %110 = tpu.memref_slice %arg8[%c32_i32_55, %c0_i32_56] : memref<128x256xf32, #tpu.memory_space<any>> -> memref<32x256xf32, #tpu.memory_space<any>>
    %111 = tpu.memref_slice %arg12[%c1_i32_52] : memref<4x!tpu.dma_semaphore, #tpu.memory_space<semaphore_mem>> -> memref<1x!tpu.dma_semaphore, #tpu.memory_space<semaphore_mem>>
    %112 = tpu.memref_squeeze %111 : memref<1x!tpu.dma_semaphore, #tpu.memory_space<semaphore_mem>> -> memref<!tpu.dma_semaphore, #tpu.memory_space<semaphore_mem>>
    tpu.wait_dma2 semaphore(%112 : memref<!tpu.dma_semaphore, #tpu.memory_space<semaphore_mem>>) src(%109 : memref<32x256xf32, #tpu.memory_space<vmem>>) dst(%110 : memref<32x256xf32, #tpu.memory_space<any>>)
    %c2_i32_57 = arith.constant 2 : i32
    %c64_i32_58 = arith.constant 64 : i32
    %c0_i32_59 = arith.constant 0 : i32
    %113 = tpu.memref_slice %arg10[%c64_i32_58, %c0_i32_59] : memref<128x256xf32, #tpu.memory_space<vmem>> -> memref<32x256xf32, #tpu.memory_space<vmem>>
    %c64_i32_60 = arith.constant 64 : i32
    %c0_i32_61 = arith.constant 0 : i32
    %114 = tpu.memref_slice %arg8[%c64_i32_60, %c0_i32_61] : memref<128x256xf32, #tpu.memory_space<any>> -> memref<32x256xf32, #tpu.memory_space<any>>
    %115 = tpu.memref_slice %arg12[%c2_i32_57] : memref<4x!tpu.dma_semaphore, #tpu.memory_space<semaphore_mem>> -> memref<1x!tpu.dma_semaphore, #tpu.memory_space<semaphore_mem>>
    %116 = tpu.memref_squeeze %115 : memref<1x!tpu.dma_semaphore, #tpu.memory_space<semaphore_mem>> -> memref<!tpu.dma_semaphore, #tpu.memory_space<semaphore_mem>>
    tpu.wait_dma2 semaphore(%116 : memref<!tpu.dma_semaphore, #tpu.memory_space<semaphore_mem>>) src(%113 : memref<32x256xf32, #tpu.memory_space<vmem>>) dst(%114 : memref<32x256xf32, #tpu.memory_space<any>>)
    %c3_i32_62 = arith.constant 3 : i32
    %c96_i32_63 = arith.constant 96 : i32
    %c0_i32_64 = arith.constant 0 : i32
    %117 = tpu.memref_slice %arg10[%c96_i32_63, %c0_i32_64] : memref<128x256xf32, #tpu.memory_space<vmem>> -> memref<32x256xf32, #tpu.memory_space<vmem>>
    %c96_i32_65 = arith.constant 96 : i32
    %c0_i32_66 = arith.constant 0 : i32
    %118 = tpu.memref_slice %arg8[%c96_i32_65, %c0_i32_66] : memref<128x256xf32, #tpu.memory_space<any>> -> memref<32x256xf32, #tpu.memory_space<any>>
    %119 = tpu.memref_slice %arg12[%c3_i32_62] : memref<4x!tpu.dma_semaphore, #tpu.memory_space<semaphore_mem>> -> memref<1x!tpu.dma_semaphore, #tpu.memory_space<semaphore_mem>>
    %120 = tpu.memref_squeeze %119 : memref<1x!tpu.dma_semaphore, #tpu.memory_space<semaphore_mem>> -> memref<!tpu.dma_semaphore, #tpu.memory_space<semaphore_mem>>
    tpu.wait_dma2 semaphore(%120 : memref<!tpu.dma_semaphore, #tpu.memory_space<semaphore_mem>>) src(%117 : memref<32x256xf32, #tpu.memory_space<vmem>>) dst(%118 : memref<32x256xf32, #tpu.memory_space<any>>)
    return
  }
}

</mosaic_0001>

<bundles_post_ra>
// kernel: module_forward.1
= control target key start
LH: loop header
LB: loop body
LE: loop exit
PB: predicated region body
PF: predicated region fallthrough
CT: control target
= control target key end

     0   :  { %s5562_s0 = inlined_call_operand.vmem [shape: f32[128,256], index: 0, kind: input, shape index: {}]   ;;  %s5563_s1 = inlined_call_operand.vmem [shape: f32[256,256], index: 1, kind: input, shape index: {}]   ;;  %s5564_s2 = inlined_call_operand.vmem [shape: bf16[256,128], index: 2, kind: input, shape index: {}]   ;;  %s5565_s3 = inlined_call_operand.vmem [shape: bf16[128,256], index: 3, kind: input, shape index: {}]   ;;  %s5566_s4 = inlined_call_operand.vmem [shape: f32[256,1], index: 4, kind: input, shape index: {}]   ;;  %s5567_s5 = inlined_call_operand.vmem [shape: f32[256,1], index: 5, kind: input, shape index: {}]   ;;  %s5568_s6 = inlined_call_operand.vmem [shape: f32[128,1], index: 6, kind: input, shape index: {}]   ;;  %s5569_s7 = inlined_call_operand.vmem [shape: f32[128,1], index: 7, kind: input, shape index: {}]   ;;  %s5570_s8 = inlined_call_operand.vmem [shape: f32[128,256], index: 8, kind: output, shape index: {}]  }
   0x1   :  { %v3255_v0 = vld [vmem:[%s5563_s1] sm:$0xff]  ;;  %v3260_v1 = vld [vmem:[%s5563_s1 + $0x8] sm:$0xff]  ;;  %v3265_v2 = vld [vmem:[%s5563_s1 + $0x10] sm:$0xff] }
   0x2   :  { %5694 = vst [vmem:[#allocation16_spill] sm:$0xff] %v3255_v0  ;;  %5695 = vst [vmem:[#allocation17_spill] sm:$0xff] %v3260_v1  ;;  %v3270_v3 = vld [vmem:[%s5563_s1 + $0x18] sm:$0xff]  ;;  %v3275_v4 = vld [vmem:[%s5563_s1 + $0x20] sm:$0xff] }
   0x3   :  { %5696 = vst [vmem:[#allocation18_spill] sm:$0xff] %v3265_v2  ;;  %5697 = vst [vmem:[#allocation19_spill] sm:$0xff] %v3270_v3  ;;  %v3280_v5 = vld [vmem:[%s5563_s1 + $0x28] sm:$0xff]  ;;  %v3285_v6 = vld [vmem:[%s5563_s1 + $0x30] sm:$0xff] }
   0x4   :  { %5698 = vst [vmem:[#allocation20_spill] sm:$0xff] %v3275_v4  ;;  %5699 = vst [vmem:[#allocation21_spill] sm:$0xff] %v3280_v5  ;;  %v3290_v7 = vld [vmem:[%s5563_s1 + $0x38] sm:$0xff]  ;;  %v3295_v8 = vld [vmem:[%s5563_s1 + $0x40] sm:$0xff] }
   0x5   :  { %5700 = vst [vmem:[#allocation22_spill] sm:$0xff] %v3285_v6  ;;  %5701 = vst [vmem:[#allocation23_spill] sm:$0xff] %v3290_v7  ;;  %v3300_v9 = vld [vmem:[%s5563_s1 + $0x48] sm:$0xff]  ;;  %v3305_v10 = vld [vmem:[%s5563_s1 + $0x50] sm:$0xff] }
   0x6   :  { %5702 = vst [vmem:[#allocation24_spill] sm:$0xff] %v3295_v8  ;;  %5703 = vst [vmem:[#allocation25_spill] sm:$0xff] %v3300_v9  ;;  %v3310_v11 = vld [vmem:[%s5563_s1 + $0x58] sm:$0xff]  ;;  %v3315_v12 = vld [vmem:[%s5563_s1 + $0x60] sm:$0xff] }
   0x7   :  { %5704 = vst [vmem:[#allocation26_spill] sm:$0xff] %v3305_v10  ;;  %5705 = vst [vmem:[#allocation27_spill] sm:$0xff] %v3310_v11  ;;  %v3320_v13 = vld [vmem:[%s5563_s1 + $0x68] sm:$0xff]  ;;  %v3325_v14 = vld [vmem:[%s5563_s1 + $0x70] sm:$0xff] }
   0x8   :  { %5706 = vst [vmem:[#allocation28_spill] sm:$0xff] %v3315_v12  ;;  %5707 = vst [vmem:[#allocation29_spill] sm:$0xff] %v3320_v13  ;;  %v3330_v15 = vld [vmem:[%s5563_s1 + $0x78] sm:$0xff]  ;;  %v3335_v16 = vld [vmem:[%s5563_s1 + $0x80] sm:$0xff] }
   0x9   :  { %5708 = vst [vmem:[#allocation30_spill] sm:$0xff] %v3325_v14  ;;  %5709 = vst [vmem:[#allocation31_spill] sm:$0xff] %v3330_v15  ;;  %v3340_v17 = vld [vmem:[%s5563_s1 + $0x88] sm:$0xff]  ;;  %v3345_v18 = vld [vmem:[%s5563_s1 + $0x90] sm:$0xff] }
   0xa   :  { %5710 = vst [vmem:[#allocation32_spill] sm:$0xff] %v3335_v16  ;;  %5711 = vst [vmem:[#allocation33_spill] sm:$0xff] %v3340_v17  ;;  %v3350_v19 = vld [vmem:[%s5563_s1 + $0x98] sm:$0xff]  ;;  %v3355_v20 = vld [vmem:[%s5563_s1 + $0xa0] sm:$0xff] }
   0xb   :  { %5712 = vst [vmem:[#allocation34_spill] sm:$0xff] %v3345_v18  ;;  %5713 = vst [vmem:[#allocation35_spill] sm:$0xff] %v3350_v19  ;;  %v3360_v21 = vld [vmem:[%s5563_s1 + $0xa8] sm:$0xff]  ;;  %v3365_v22 = vld [vmem:[%s5563_s1 + $0xb0] sm:$0xff] }
   0xc   :  { %5714 = vst [vmem:[#allocation36_spill] sm:$0xff] %v3355_v20  ;;  %5715 = vst [vmem:[#allocation37_spill] sm:$0xff] %v3360_v21  ;;  %v3370_v23 = vld [vmem:[%s5563_s1 + $0xb8] sm:$0xff]  ;;  %v3375_v24 = vld [vmem:[%s5563_s1 + $0xc0] sm:$0xff] }
   0xd   :  { %5716 = vst [vmem:[#allocation38_spill] sm:$0xff] %v3365_v22  ;;  %5717 = vst [vmem:[#allocation39_spill] sm:$0xff] %v3370_v23  ;;  %v3380_v25 = vld [vmem:[%s5563_s1 + $0xc8] sm:$0xff]  ;;  %v3385_v26 = vld [vmem:[%s5563_s1 + $0xd0] sm:$0xff] }
   0xe   :  { %5718 = vst [vmem:[#allocation40_spill] sm:$0xff] %v3375_v24  ;;  %5719 = vst [vmem:[#allocation41_spill] sm:$0xff] %v3380_v25  ;;  %v3390_v27 = vld [vmem:[%s5563_s1 + $0xd8] sm:$0xff]  ;;  %v3395_v28 = vld [vmem:[%s5563_s1 + $0xe0] sm:$0xff] }
   0xf   :  { %5720 = vst [vmem:[#allocation42_spill] sm:$0xff] %v3385_v26  ;;  %5721 = vst [vmem:[#allocation43_spill] sm:$0xff] %v3390_v27  ;;  %v3400_v29 = vld [vmem:[%s5563_s1 + $0xe8] sm:$0xff]  ;;  %v3405_v30 = vld [vmem:[%s5563_s1 + $0xf0] sm:$0xff] }
  0x10   :  { %5722 = vst [vmem:[#allocation44_spill] sm:$0xff] %v3395_v28  ;;  %5723 = vst [vmem:[#allocation45_spill] sm:$0xff] %v3400_v29  ;;  %v3410_v31 = vld [vmem:[%s5563_s1 + $0xf8] sm:$0xff]  ;;  %v3415_v32 = vld [vmem:[%s5563_s1 + $0x100] sm:$0xff] }
  0x11   :  { %5724 = vst [vmem:[#allocation46_spill] sm:$0xff] %v3405_v30  ;;  %5725 = vst [vmem:[#allocation47_spill] sm:$0xff] %v3410_v31  ;;  %v3420_v33 = vld [vmem:[%s5563_s1 + $0x108] sm:$0xff]  ;;  %v3425_v34 = vld [vmem:[%s5563_s1 + $0x110] sm:$0xff] }
  0x12   :  { %5726 = vst [vmem:[#allocation48_spill] sm:$0xff] %v3415_v32  ;;  %5727 = vst [vmem:[#allocation49_spill] sm:$0xff] %v3420_v33  ;;  %v3430_v35 = vld [vmem:[%s5563_s1 + $0x118] sm:$0xff]  ;;  %v3435_v36 = vld [vmem:[%s5563_s1 + $0x120] sm:$0xff] }
  0x13   :  { %5728 = vst [vmem:[#allocation50_spill] sm:$0xff] %v3425_v34  ;;  %5729 = vst [vmem:[#allocation51_spill] sm:$0xff] %v3430_v35  ;;  %v3440_v37 = vld [vmem:[%s5563_s1 + $0x128] sm:$0xff]  ;;  %v3445_v38 = vld [vmem:[%s5563_s1 + $0x130] sm:$0xff] }
  0x14   :  { %5730 = vst [vmem:[#allocation52_spill] sm:$0xff] %v3435_v36  ;;  %5731 = vst [vmem:[#allocation53_spill] sm:$0xff] %v3440_v37  ;;  %v3450_v39 = vld [vmem:[%s5563_s1 + $0x138] sm:$0xff]  ;;  %v3455_v40 = vld [vmem:[%s5563_s1 + $0x140] sm:$0xff] }
  0x15   :  { %5732 = vst [vmem:[#allocation54_spill] sm:$0xff] %v3445_v38  ;;  %5733 = vst [vmem:[#allocation55_spill] sm:$0xff] %v3450_v39  ;;  %v3460_v41 = vld [vmem:[%s5563_s1 + $0x148] sm:$0xff]  ;;  %v3465_v42 = vld [vmem:[%s5563_s1 + $0x150] sm:$0xff] }
  0x16   :  { %5734 = vst [vmem:[#allocation56_spill] sm:$0xff] %v3455_v40  ;;  %5735 = vst [vmem:[#allocation57_spill] sm:$0xff] %v3460_v41  ;;  %v3470_v43 = vld [vmem:[%s5563_s1 + $0x158] sm:$0xff]  ;;  %v3475_v44 = vld [vmem:[%s5563_s1 + $0x160] sm:$0xff] }
  0x17   :  { %5736 = vst [vmem:[#allocation58_spill] sm:$0xff] %v3465_v42  ;;  %5737 = vst [vmem:[#allocation59_spill] sm:$0xff] %v3470_v43  ;;  %v3480_v45 = vld [vmem:[%s5563_s1 + $0x168] sm:$0xff]  ;;  %v3485_v46 = vld [vmem:[%s5563_s1 + $0x170] sm:$0xff] }
  0x18   :  { %5738 = vst [vmem:[#allocation60_spill] sm:$0xff] %v3475_v44  ;;  %5739 = vst [vmem:[#allocation61_spill] sm:$0xff] %v3480_v45  ;;  %v3490_v47 = vld [vmem:[%s5563_s1 + $0x178] sm:$0xff]  ;;  %v3495_v48 = vld [vmem:[%s5563_s1 + $0x180] sm:$0xff] }
  0x19   :  { %5740 = vst [vmem:[#allocation62_spill] sm:$0xff] %v3485_v46  ;;  %5741 = vst [vmem:[#allocation63_spill] sm:$0xff] %v3490_v47  ;;  %v3500_v49 = vld [vmem:[%s5563_s1 + $0x188] sm:$0xff]  ;;  %v3505_v50 = vld [vmem:[%s5563_s1 + $0x190] sm:$0xff] }
  0x1a   :  { %5742 = vst [vmem:[#allocation64_spill] sm:$0xff] %v3495_v48  ;;  %5743 = vst [vmem:[#allocation65_spill] sm:$0xff] %v3500_v49  ;;  %v3510_v51 = vld [vmem:[%s5563_s1 + $0x198] sm:$0xff]  ;;  %v3515_v52 = vld [vmem:[%s5563_s1 + $0x1a0] sm:$0xff] }
  0x1b   :  { %5744 = vst [vmem:[#allocation66_spill] sm:$0xff] %v3505_v50  ;;  %5745 = vst [vmem:[#allocation67_spill] sm:$0xff] %v3510_v51  ;;  %v3520_v53 = vld [vmem:[%s5563_s1 + $0x1a8] sm:$0xff]  ;;  %v3525_v54 = vld [vmem:[%s5563_s1 + $0x1b0] sm:$0xff] }
  0x1c   :  { %5746 = vst [vmem:[#allocation68_spill] sm:$0xff] %v3515_v52  ;;  %5747 = vst [vmem:[#allocation69_spill] sm:$0xff] %v3520_v53  ;;  %v3530_v55 = vld [vmem:[%s5563_s1 + $0x1b8] sm:$0xff]  ;;  %v3535_v56 = vld [vmem:[%s5563_s1 + $0x1c0] sm:$0xff] }
  0x1d   :  { %5748 = vst [vmem:[#allocation70_spill] sm:$0xff] %v3525_v54  ;;  %5749 = vst [vmem:[#allocation71_spill] sm:$0xff] %v3530_v55  ;;  %v3540_v57 = vld [vmem:[%s5563_s1 + $0x1c8] sm:$0xff]  ;;  %v3545_v58 = vld [vmem:[%s5563_s1 + $0x1d0] sm:$0xff] }
  0x1e   :  { %5750 = vst [vmem:[#allocation72_spill] sm:$0xff] %v3535_v56  ;;  %5751 = vst [vmem:[#allocation73_spill] sm:$0xff] %v3540_v57  ;;  %v3550_v59 = vld [vmem:[%s5563_s1 + $0x1d8] sm:$0xff]  ;;  %v3555_v60 = vld [vmem:[%s5563_s1 + $0x1e0] sm:$0xff] }
  0x1f   :  { %5752 = vst [vmem:[#allocation74_spill] sm:$0xff] %v3545_v58  ;;  %5753 = vst [vmem:[#allocation75_spill] sm:$0xff] %v3550_v59  ;;  %v3560_v61 = vld [vmem:[%s5563_s1 + $0x1e8] sm:$0xff]  ;;  %v3565_v62 = vld [vmem:[%s5563_s1 + $0x1f0] sm:$0xff] }
  0x20   :  { %5754 = vst [vmem:[#allocation76_spill] sm:$0xff] %v3555_v60  ;;  %5755 = vst [vmem:[#allocation77_spill] sm:$0xff] %v3560_v61  ;;  %v3570_v63 = vld [vmem:[%s5563_s1 + $0x1f8] sm:$0xff] }
  0x21   :  { %5756 = vst [vmem:[#allocation78_spill] sm:$0xff] %v3565_v62  ;;  %5757 = vst [vmem:[#allocation79_spill] sm:$0xff] %v3570_v63 }
  0x22   :  { %196 = vsyncadd [#allocation4], 8192  ;;  %v226_v33 = vld [vmem:[%s5562_s0 + $0xe8] sm:$0xff]  ;;  %v228_v32 = vld [vmem:[%s5562_s0 + $0xf8] sm:$0xff]  ;;  %v5571_v39 = vmov 0  }
  0x23   :  { %v244_v35 = vpack.c.bf16 %v228_v32, %v226_v33  ;;  %v225_v34 = vld [vmem:[%s5562_s0 + $0xe0] sm:$0xff]  ;;  %v227_v37 = vld [vmem:[%s5562_s0 + $0xf0] sm:$0xff]  ;;  %v222_v36 = vld [vmem:[%s5562_s0 + $0xc8] sm:$0xff]  ;;  %405 = vmatprep.mubr.bf16.mxu0 %v5571_v39 }
  0x24   :  { %v243_v38 = vpack.c.bf16 %v227_v37, %v225_v34  ;;  %v224_v32 = vld [vmem:[%s5562_s0 + $0xd8] sm:$0xff]  ;;  %v221_v33 = vld [vmem:[%s5562_s0 + $0xc0] sm:$0xff]  ;;  %v223_v41 = vld [vmem:[%s5562_s0 + $0xd0] sm:$0xff] }
  0x25   :  { %373 = vmatprep.subr.bf16.mxu0 %v244_v35  ;;  %v242_v40 = vpack.c.bf16 %v224_v32, %v222_v36  ;;  %v218_v43 = vld [vmem:[%s5562_s0 + $0xa8] sm:$0xff]  ;;  %v220_v34 = vld [vmem:[%s5562_s0 + $0xb8] sm:$0xff]  ;;  %v241_v37 = vpack.c.bf16 %v223_v41, %v221_v33  ;;  %v217_v42 = vld [vmem:[%s5562_s0 + $0xa0] sm:$0xff] }
  0x26   :  { %374 = vmatpush1.bf16.msra.mxu0 %v243_v38  ;;  %v240_v39 = vpack.c.bf16 %v220_v34, %v218_v43  ;;  %v219_v35 = vld [vmem:[%s5562_s0 + $0xb0] sm:$0xff]  ;;  %v214_v36 = vld [vmem:[%s5562_s0 + $0x88] sm:$0xff]  ;;  %v216_v32 = vld [vmem:[%s5562_s0 + $0x98] sm:$0xff] }
  0x27   :  { %375 = vmatprep.subr.bf16.mxu0 %v242_v40  ;;  %v239_v38 = vpack.c.bf16 %v219_v35, %v217_v42  ;;  %v238_v40 = vpack.c.bf16 %v216_v32, %v214_v36  ;;  %v213_v41 = vld [vmem:[%s5562_s0 + $0x80] sm:$0xff]  ;;  %v215_v43 = vld [vmem:[%s5562_s0 + $0x90] sm:$0xff]  ;;  %v210_v33 = vld [vmem:[%s5562_s0 + $0x68] sm:$0xff] }
  0x28   :  { %v212_v34 = vld [vmem:[%s5562_s0 + $0x78] sm:$0xff]  ;;  %v237_v42 = vpack.c.bf16 %v215_v43, %v213_v41  ;;  %v206_v36 = vld [vmem:[%s5562_s0 + $0x48] sm:$0xff]  ;;  %v205_v45 = vld [vmem:[%s5562_s0 + $0x40] sm:$0xff] }
  0x29   :  { %v236_v35 = vpack.c.bf16 %v212_v34, %v210_v33  ;;  %v208_v32 = vld [vmem:[%s5562_s0 + $0x58] sm:$0xff]  ;;  %v207_v41 = vld [vmem:[%s5562_s0 + $0x50] sm:$0xff]  ;;  %v202_v43 = vld [vmem:[%s5562_s0 + $0x28] sm:$0xff] }
  0x2a   :  { %376 = vmatpush1.bf16.msra.mxu0 %v241_v37  ;;  %v211_v37 = vld [vmem:[%s5562_s0 + $0x70] sm:$0xff]  ;;  %v204_v33 = vld [vmem:[%s5562_s0 + $0x38] sm:$0xff]  ;;  %v201_v34 = vld [vmem:[%s5562_s0 + $0x20] sm:$0xff] }
  0x2b   :  { %377 = vmatprep.subr.bf16.mxu0 %v240_v39  ;;  %v209_v39 = vld [vmem:[%s5562_s0 + $0x60] sm:$0xff]  ;;  %v987_v19 = vld [vmem:[%s5566_s4 + $0x28] sm:$0xff]  ;;  %v4304_v30 = vld [vmem:[%s5567_s5 + $0x58] sm:$0xff] }
  0x2c   :  { %v995_v28 = vld [vmem:[%s5566_s4 + $0x68] sm:$0xff] }
  0x2e   :  { %378 = vmatpush1.bf16.msra.mxu0 %v239_v38  ;;  %v235_v38 = vpack.c.bf16 %v211_v37, %v209_v39  ;;  %v233_v39 = vpack.c.bf16 %v207_v41, %v205_v45  ;;  %v232_v37 = vpack.c.bf16 %v204_v33, %v202_v43  ;;  %v197_v45 = vld [vmem:[%s5562_s0] sm:$0xff]  ;;  %v199_v41 = vld [vmem:[%s5562_s0 + $0x10] sm:$0xff]  ;;  %v5758_v33 = vmov 0  }
  0x2f   :  { %379 = vmatprep.subr.bf16.mxu0 %v238_v40  ;;  %v234_v40 = vpack.c.bf16 %v208_v32, %v206_v36  ;;  %v200_v36 = vld [vmem:[%s5562_s0 + $0x18] sm:$0xff]  ;;  %v3052_v43 = vld [vmem:[%s5564_s2] sm:$0xff]   ;;  %3133 = vset.pattern.permute.xlu1 %v5758_v33 }
  0x30   :  { %3132 = vset.pattern.permute.xlu0 %v5758_v33 }
  0x32   :  { %380 = vmatpush1.bf16.msra.mxu0 %v237_v42  ;;  %v203_v42 = vld [vmem:[%s5562_s0 + $0x30] sm:$0xff] }
  0x33   :  { %381 = vmatprep.subr.bf16.mxu0 %v236_v35  ;;  %v198_v35 = vld [vmem:[%s5562_s0 + $0x8] sm:$0xff]  ;;  %v231_v32 = vpack.c.bf16 %v203_v42, %v201_v34  ;;  %v3055_v42 = vld [vmem:[%s5564_s2 + $0x18] sm:$0xff]  }
  0x34   :  { %v3053_v34 = vld [vmem:[%s5564_s2 + $0x8] sm:$0xff]  }
  0x36   :  { %382 = vmatpush1.bf16.msra.mxu0 %v235_v38  ;;  %v230_v38 = vpack.c.bf16 %v200_v36, %v198_v35  ;;  %v3057_v35 = vld [vmem:[%s5564_s2 + $0x28] sm:$0xff]   ;;  %v3058_v36 = vld [vmem:[%s5564_s2 + $0x30] sm:$0xff]  }
  0x37   :  { %383 = vmatprep.subr.bf16.mxu0 %v234_v40  ;;  %v229_v40 = vpack.c.bf16 %v199_v41, %v197_v45  ;;  %v3060_v45 = vld [vmem:[%s5564_s2 + $0x40] sm:$0xff]   ;;  %v3062_v41 = vld [vmem:[%s5564_s2 + $0x50] sm:$0xff]  }
  0x3a   :  { %384 = vmatpush1.bf16.msra.mxu0 %v233_v39  ;;  %v3054_v39 = vld [vmem:[%s5564_s2 + $0x10] sm:$0xff]  }
  0x3b   :  { %385 = vmatprep.subr.bf16.mxu0 %v232_v37  ;;  %v3056_v37 = vld [vmem:[%s5564_s2 + $0x20] sm:$0xff]  }
  0x3e   :  { %386 = vmatpush1.bf16.msra.mxu0 %v231_v32  ;;  %v3059_v32 = vld [vmem:[%s5564_s2 + $0x38] sm:$0xff]  }
  0x3f   :  { %387 = vmatprep.subr.bf16.mxu0 %v230_v38  ;;  %v3061_v38 = vld [vmem:[%s5564_s2 + $0x48] sm:$0xff]  }
  0x42   :  { %388 = vmatpush1.bf16.msra.mxu0 %v229_v40  ;;  %v3063_v40 = vld [vmem:[%s5564_s2 + $0x58] sm:$0xff]  }
  0x45   :  { %406 = vmatmul.mubr.bf16.vlgmr.msra.gmra.mxu0 %v3052_v43  ;;  %v3064_v43 = vld [vmem:[%s5564_s2 + $0x60] sm:$0xff]  }
  0x46   :  { %415 = vmatprep.mubr.bf16.mxu0 %v5758_v33 }
  0x4d   :  { %416 = vmatmul.mubr.bf16.gmra.mxu0 %v3053_v34  ;;  %v3065_v34 = vld [vmem:[%s5564_s2 + $0x68] sm:$0xff]  }
  0x4e   :  { %425 = vmatprep.mubr.bf16.mxu0 %v5758_v33 }
  0x55   :  { %426 = vmatmul.mubr.bf16.gmra.mxu0 %v3054_v39  ;;  %v3066_v39 = vld [vmem:[%s5564_s2 + $0x70] sm:$0xff]  }
  0x56   :  { %435 = vmatprep.mubr.bf16.mxu0 %v5758_v33 }
  0x5d   :  { %436 = vmatmul.mubr.bf16.gmra.mxu0 %v3055_v42  ;;  %v3067_v42 = vld [vmem:[%s5564_s2 + $0x78] sm:$0xff]  }
  0x5e   :  { %445 = vmatprep.mubr.bf16.mxu0 %v5758_v33 }
  0x65   :  { %446 = vmatmul.mubr.bf16.gmra.mxu0 %v3056_v37 }
  0x66   :  { %455 = vmatprep.mubr.bf16.mxu0 %v5758_v33 }
  0x6d   :  { %456 = vmatmul.mubr.bf16.gmra.mxu0 %v3057_v35 }
  0x6e   :  { %465 = vmatprep.mubr.bf16.mxu0 %v5758_v33 }
  0x75   :  { %466 = vmatmul.mubr.bf16.gmra.mxu0 %v3058_v36 }
  0x76   :  { %475 = vmatprep.mubr.bf16.mxu0 %v5758_v33 }
  0x7d   :  { %476 = vmatmul.mubr.bf16.gmra.mxu0 %v3059_v32 }
  0x7e   :  { %485 = vmatprep.mubr.bf16.mxu0 %v5758_v33 }
  0x85   :  { %486 = vmatmul.mubr.bf16.gmra.mxu0 %v3060_v45 }
  0x86   :  { %495 = vmatprep.mubr.bf16.mxu0 %v5758_v33 }
  0x8d   :  { %496 = vmatmul.mubr.bf16.gmra.mxu0 %v3061_v38 }
  0x8e   :  { %505 = vmatprep.mubr.bf16.mxu0 %v5758_v33 }
  0x95   :  { %506 = vmatmul.mubr.bf16.gmra.mxu0 %v3062_v41 }
  0x96   :  { %515 = vmatprep.mubr.bf16.mxu0 %v5758_v33 }
  0x9d   :  { %516 = vmatmul.mubr.bf16.gmra.mxu0 %v3063_v40 }
  0x9e   :  { %525 = vmatprep.mubr.bf16.mxu0 %v5758_v33 }
  0xa5   :  { %526 = vmatmul.mubr.bf16.gmra.mxu0 %v3064_v43 }
  0xa6   :  { %535 = vmatprep.mubr.bf16.mxu0 %v5758_v33 }
  0xad   :  { %536 = vmatmul.mubr.bf16.gmra.mxu0 %v3065_v34 }
  0xae   :  { %545 = vmatprep.mubr.bf16.mxu0 %v5758_v33 }
  0xb5   :  { %546 = vmatmul.mubr.bf16.gmra.mxu0 %v3066_v39 }
  0xb6   :  { %555 = vmatprep.mubr.bf16.mxu0 %v5758_v33 }
  0xbd   :  { %556 = vmatmul.mubr.bf16.gmra.mxu0 %v3067_v42 }
 0x105   :  { %v3732_v37 = vpop.f32.mrf.mxu0 }
 0x106   :  { %5759 = vst [vmem:[#allocation80_spill] sm:$0xff] %v3732_v37  ;;  %v662_v38 = vmul.f32 %v3732_v37, %v3732_v37 }
 0x107   :  { %v3734_v35 = vpop.f32.mrf.mxu0 }
 0x108   :  { %5760 = vst [vmem:[#allocation81_spill] sm:$0xff] %v3734_v35  ;;  %v663_v36 = vmul.f32 %v3734_v35, %v3734_v35  ;;  %v566_v32 = vadd.f32 %v3734_v35, %v3732_v37 }
 0x109   :  { %v3740_v45 = vpop.f32.mrf.mxu0 }
 0x10a   :  { %5761 = vst [vmem:[#allocation82_spill] sm:$0xff] %v3740_v45  ;;  %567 = vadd.xlane.f32.xlu0 %v566_v32  ;;  %v664_v40 = vmul.f32 %v3740_v45, %v3740_v45  ;;  %v726_v34 = vadd.f32 %v663_v36, %v662_v38 }
 0x10b   :  { %v3744_v41 = vpop.f32.mrf.mxu0 }
 0x10c   :  { %5762 = vst [vmem:[#allocation83_spill] sm:$0xff] %v3744_v41  ;;  %v665_v43 = vmul.f32 %v3744_v41, %v3744_v41  ;;  %v569_v46 = vadd.f32 %v3744_v41, %v3740_v45 }
 0x10d   :  { %v3750_v39 = vpop.f32.mrf.mxu0 }
 0x10e   :  { %5763 = vst [vmem:[#allocation84_spill] sm:$0xff] %v3750_v39  ;;  %727 = vadd.xlane.f32.xlu0 %v726_v34  ;;  %v729_v42 = vadd.f32 %v665_v43, %v664_v40  ;;  %v666_v47 = vmul.f32 %v3750_v39, %v3750_v39 }
 0x10f   :  { %v3752_v44 = vpop.f32.mrf.mxu0 }
 0x110   :  { %5764 = vst [vmem:[#allocation85_spill] sm:$0xff] %v3752_v44  ;;  %v667_v32 = vmul.f32 %v3752_v44, %v3752_v44  ;;  %730 = vadd.xlane.f32.xlu1 %v729_v42  ;;  %v572_v36 = vadd.f32 %v3752_v44, %v3750_v39 }
 0x111   :  { %v3760_v49 = vpop.f32.mrf.mxu0 }
 0x112   :  { %5765 = vst [vmem:[#allocation86_spill] sm:$0xff] %v3760_v49  ;;  %570 = vadd.xlane.f32.xlu0 %v569_v46  ;;  %v732_v40 = vadd.f32 %v667_v32, %v666_v47  ;;  %v668_v46 = vmul.f32 %v3760_v49, %v3760_v49 }
 0x113   :  { %v3764_v38 = vpop.f32.mrf.mxu0 }
 0x114   :  { %5766 = vst [vmem:[#allocation87_spill] sm:$0xff] %v3764_v38  ;;  %573 = vadd.xlane.f32.xlu1 %v572_v36  ;;  %v669_v34 = vmul.f32 %v3764_v38, %v3764_v38  ;;  %v575_v42 = vadd.f32 %v3764_v38, %v3760_v49 }
 0x115   :  { %v3766_v43 = vpop.f32.mrf.mxu0 }
 0x116   :  { %5767 = vst [vmem:[#allocation88_spill] sm:$0xff] %v3766_v43  ;;  %733 = vadd.xlane.f32.xlu0 %v732_v40  ;;  %v670_v51 = vmul.f32 %v3766_v43, %v3766_v43  ;;  %v735_v40 = vadd.f32 %v669_v34, %v668_v46 }
 0x117   :  { %v3772_v48 = vpop.f32.mrf.mxu0 }
 0x118   :  { %5768 = vst [vmem:[#allocation89_spill] sm:$0xff] %v3772_v48  ;;  %v671_v47 = vmul.f32 %v3772_v48, %v3772_v48  ;;  %576 = vadd.xlane.f32.xlu1 %v575_v42  ;;  %v578_v32 = vadd.f32 %v3772_v48, %v3766_v43 }
 0x119   :  { %v3782_v36 = vpop.f32.mrf.mxu0 }
 0x11a   :  { %5769 = vst [vmem:[#allocation90_spill] sm:$0xff] %v3782_v36  ;;  %579 = vadd.xlane.f32.xlu0 %v578_v32  ;;  %v738_v53 = vadd.f32 %v671_v47, %v670_v51  ;;  %v672_v57 = vmul.f32 %v3782_v36, %v3782_v36 }
 0x11b   :  { %v3784_v50 = vpop.f32.mrf.mxu0 }
 0x11c   :  { %5770 = vst [vmem:[#allocation91_spill] sm:$0xff] %v3784_v50  ;;  %736 = vadd.xlane.f32.xlu1 %v735_v40  ;;  %v673_v55 = vmul.f32 %v3784_v50, %v3784_v50  ;;  %v581_v42 = vadd.f32 %v3784_v50, %v3782_v36 }
 0x11d   :  { %v3786_v52 = vpop.f32.mrf.mxu0 }
 0x11e   :  { %5771 = vst [vmem:[#allocation92_spill] sm:$0xff] %v3786_v52  ;;  %739 = vadd.xlane.f32.xlu0 %v738_v53  ;;  %v674_v34 = vmul.f32 %v3786_v52, %v3786_v52  ;;  %v741_v53 = vadd.f32 %v673_v55, %v672_v57 }
 0x11f   :  { %v3792_v54 = vpop.f32.mrf.mxu0 }
 0x120   :  { %5772 = vst [vmem:[#allocation93_spill] sm:$0xff] %v3792_v54  ;;  %v675_v51 = vmul.f32 %v3792_v54, %v3792_v54  ;;  %582 = vadd.xlane.f32.xlu1 %v581_v42  ;;  %v584_v46 = vadd.f32 %v3792_v54, %v3786_v52 }
 0x121   :  { %v3802_v47 = vpop.f32.mrf.mxu0 }
 0x122   :  { %5773 = vst [vmem:[#allocation94_spill] sm:$0xff] %v3802_v47  ;;  %585 = vadd.xlane.f32.xlu0 %v584_v46  ;;  %v744_v40 = vadd.f32 %v675_v51, %v674_v34  ;;  %v676_v61 = vmul.f32 %v3802_v47, %v3802_v47 }
 0x123   :  { %v3804_v32 = vpop.f32.mrf.mxu0 }
 0x124   :  { %5774 = vst [vmem:[#allocation95_spill] sm:$0xff] %v3804_v32  ;;  %742 = vadd.xlane.f32.xlu1 %v741_v53  ;;  %v677_v59 = vmul.f32 %v3804_v32, %v3804_v32  ;;  %v587_v42 = vadd.f32 %v3804_v32, %v3802_v47 }
 0x125   :  { %v3806_v56 = vpop.f32.mrf.mxu0 }
 0x126   :  { %5775 = vst [vmem:[#allocation96_spill] sm:$0xff] %v3806_v56  ;;  %745 = vadd.xlane.f32.xlu0 %v744_v40  ;;  %v678_v55 = vmul.f32 %v3806_v56, %v3806_v56  ;;  %v747_v46 = vadd.f32 %v677_v59, %v676_v61 }
 0x127   :  { %v3812_v58 = vpop.f32.mrf.mxu0 }
 0x128   :  { %5776 = vst [vmem:[#allocation97_spill] sm:$0xff] %v3812_v58  ;;  %v679_v57 = vmul.f32 %v3812_v58, %v3812_v58  ;;  %588 = vadd.xlane.f32.xlu1 %v587_v42  ;;  %v590_v34 = vadd.f32 %v3812_v58, %v3806_v56 }
 0x129   :  { %v3822_v51 = vpop.f32.mrf.mxu0 }
 0x12a   :  { %5777 = vst [vmem:[#allocation98_spill] sm:$0xff] %v3822_v51  ;;  %591 = vadd.xlane.f32.xlu0 %v590_v34  ;;  %v750_v40 = vadd.f32 %v679_v57, %v678_v55  ;;  %v680_v1 = vmul.f32 %v3822_v51, %v3822_v51 }
 0x12b   :  { %v3824_v53 = vpop.f32.mrf.mxu0 }
 0x12c   :  { %5778 = vst [vmem:[#allocation99_spill] sm:$0xff] %v3824_v53  ;;  %748 = vadd.xlane.f32.xlu1 %v747_v46  ;;  %v681_v63 = vmul.f32 %v3824_v53, %v3824_v53  ;;  %v593_v42 = vadd.f32 %v3824_v53, %v3822_v51 }
 0x12d   :  { %v3826_v60 = vpop.f32.mrf.mxu0 }
 0x12e   :  { %5779 = vst [vmem:[#allocation100_spill] sm:$0xff] %v3826_v60  ;;  %751 = vadd.xlane.f32.xlu0 %v750_v40  ;;  %v682_v59 = vmul.f32 %v3826_v60, %v3826_v60  ;;  %v753_v34 = vadd.f32 %v681_v63, %v680_v1 }
 0x12f   :  { %v3832_v62 = vpop.f32.mrf.mxu0 }
 0x130   :  { %5780 = vst [vmem:[#allocation101_spill] sm:$0xff] %v3832_v62  ;;  %v683_v61 = vmul.f32 %v3832_v62, %v3832_v62  ;;  %594 = vadd.xlane.f32.xlu1 %v593_v42  ;;  %v596_v55 = vadd.f32 %v3832_v62, %v3826_v60 }
 0x131   :  { %v3842_v57 = vpop.f32.mrf.mxu0 }
 0x132   :  { %5781 = vst [vmem:[#allocation102_spill] sm:$0xff] %v3842_v57  ;;  %597 = vadd.xlane.f32.xlu0 %v596_v55  ;;  %v756_v40 = vadd.f32 %v683_v61, %v682_v59  ;;  %v684_v35 = vmul.f32 %v3842_v57, %v3842_v57 }
 0x133   :  { %v3844_v46 = vpop.f32.mrf.mxu0 }
 0x134   :  { %5782 = vst [vmem:[#allocation103_spill] sm:$0xff] %v3844_v46  ;;  %754 = vadd.xlane.f32.xlu1 %v753_v34  ;;  %v685_v3 = vmul.f32 %v3844_v46, %v3844_v46  ;;  %v599_v42 = vadd.f32 %v3844_v46, %v3842_v57 }
 0x135   :  { %v3846_v0 = vpop.f32.mrf.mxu0 }
 0x136   :  { %5783 = vst [vmem:[#allocation104_spill] sm:$0xff] %v3846_v0  ;;  %757 = vadd.xlane.f32.xlu0 %v756_v40  ;;  %v686_v1 = vmul.f32 %v3846_v0, %v3846_v0  ;;  %v759_v55 = vadd.f32 %v685_v3, %v684_v35 }
 0x137   :  { %v3852_v2 = vpop.f32.mrf.mxu0 }
 0x138   :  { %5784 = vst [vmem:[#allocation105_spill] sm:$0xff] %v3852_v2  ;;  %v687_v63 = vmul.f32 %v3852_v2, %v3852_v2  ;;  %600 = vadd.xlane.f32.xlu1 %v599_v42  ;;  %v602_v59 = vadd.f32 %v3852_v2, %v3846_v0 }
 0x139   :  { %v3862_v61 = vpop.f32.mrf.mxu0 }
 0x13a   :  { %5785 = vst [vmem:[#allocation106_spill] sm:$0xff] %v3862_v61  ;;  %603 = vadd.xlane.f32.xlu0 %v602_v59  ;;  %v762_v40 = vadd.f32 %v687_v63, %v686_v1  ;;  %v688_v5 = vmul.f32 %v3862_v61, %v3862_v61 }
 0x13b   :  { %v3864_v34 = vpop.f32.mrf.mxu0 }
 0x13c   :  { %5786 = vst [vmem:[#allocation107_spill] sm:$0xff] %v3864_v34  ;;  %760 = vadd.xlane.f32.xlu1 %v759_v55  ;;  %v689_v41 = vmul.f32 %v3864_v34, %v3864_v34  ;;  %v605_v42 = vadd.f32 %v3864_v34, %v3862_v61 }
 0x13d   :  { %v3866_v37 = vpop.f32.mrf.mxu0 }
 0x13e   :  { %5787 = vst [vmem:[#allocation108_spill] sm:$0xff] %v3866_v37  ;;  %763 = vadd.xlane.f32.xlu0 %v762_v40  ;;  %v690_v3 = vmul.f32 %v3866_v37, %v3866_v37  ;;  %v765_v59 = vadd.f32 %v689_v41, %v688_v5 }
 0x13f   :  { %v3872_v45 = vpop.f32.mrf.mxu0 }
 0x140   :  { %5788 = vst [vmem:[#allocation109_spill] sm:$0xff] %v3872_v45  ;;  %v691_v35 = vmul.f32 %v3872_v45, %v3872_v45  ;;  %606 = vadd.xlane.f32.xlu1 %v605_v42  ;;  %v608_v1 = vadd.f32 %v3872_v45, %v3866_v37 }
 0x141   :  { %v3882_v63 = vpop.f32.mrf.mxu0 }
 0x142   :  { %5789 = vst [vmem:[#allocation110_spill] sm:$0xff] %v3882_v63  ;;  %609 = vadd.xlane.f32.xlu0 %v608_v1  ;;  %v768_v40 = vadd.f32 %v691_v35, %v690_v3  ;;  %v692_v44 = vmul.f32 %v3882_v63, %v3882_v63 }
 0x143   :  { %v3884_v55 = vpop.f32.mrf.mxu0 }
 0x144   :  { %5790 = vst [vmem:[#allocation111_spill] sm:$0xff] %v3884_v55  ;;  %766 = vadd.xlane.f32.xlu1 %v765_v59  ;;  %v693_v7 = vmul.f32 %v3884_v55, %v3884_v55  ;;  %v611_v42 = vadd.f32 %v3884_v55, %v3882_v63 }
 0x145   :  { %v3886_v4 = vpop.f32.mrf.mxu0 }
 0x146   :  { %5791 = vst [vmem:[#allocation112_spill] sm:$0xff] %v3886_v4  ;;  %769 = vadd.xlane.f32.xlu0 %v768_v40  ;;  %v694_v5 = vmul.f32 %v3886_v4, %v3886_v4  ;;  %v771_v1 = vadd.f32 %v693_v7, %v692_v44 }
 0x147   :  { %v3892_v6 = vpop.f32.mrf.mxu0 }
 0x148   :  { %5792 = vst [vmem:[#allocation113_spill] sm:$0xff] %v3892_v6  ;;  %v695_v41 = vmul.f32 %v3892_v6, %v3892_v6  ;;  %612 = vadd.xlane.f32.xlu1 %v611_v42  ;;  %v614_v3 = vadd.f32 %v3892_v6, %v3886_v4 }
 0x149   :  { %v3902_v35 = vpop.f32.mrf.mxu0 }
 0x14a   :  { %5793 = vst [vmem:[#allocation114_spill] sm:$0xff] %v3902_v35  ;;  %615 = vadd.xlane.f32.xlu0 %v614_v3  ;;  %v774_v40 = vadd.f32 %v695_v41, %v694_v5  ;;  %v696_v6 = vmul.f32 %v3902_v35, %v3902_v35 }
 0x14b   :  { %v3904_v59 = vpop.f32.mrf.mxu0 }
 0x14c   :  { %5794 = vst [vmem:[#allocation115_spill] sm:$0xff] %v3904_v59  ;;  %772 = vadd.xlane.f32.xlu1 %v771_v1  ;;  %v697_v38 = vmul.f32 %v3904_v59, %v3904_v59  ;;  %v617_v42 = vadd.f32 %v3904_v59, %v3902_v35 }
 0x14d   :  { %v3906_v39 = vpop.f32.mrf.mxu0 }
 0x14e   :  { %5795 = vst [vmem:[#allocation116_spill] sm:$0xff] %v3906_v39  ;;  %775 = vadd.xlane.f32.xlu0 %v774_v40  ;;  %v698_v7 = vmul.f32 %v3906_v39, %v3906_v39  ;;  %v777_v3 = vadd.f32 %v697_v38, %v696_v6 }
 0x14f   :  { %v3912_v49 = vpop.f32.mrf.mxu0 }
 0x150   :  { %5796 = vst [vmem:[#allocation117_spill] sm:$0xff] %v3912_v49  ;;  %v699_v44 = vmul.f32 %v3912_v49, %v3912_v49  ;;  %618 = vadd.xlane.f32.xlu1 %v617_v42  ;;  %v620_v5 = vadd.f32 %v3912_v49, %v3906_v39 }
 0x151   :  { %v3922_v41 = vpop.f32.mrf.mxu0 }
 0x152   :  { %5797 = vst [vmem:[#allocation118_spill] sm:$0xff] %v3922_v41  ;;  %621 = vadd.xlane.f32.xlu0 %v620_v5  ;;  %v780_v40 = vadd.f32 %v699_v44, %v698_v7  ;;  %v700_v49 = vmul.f32 %v3922_v41, %v3922_v41 }
 0x153   :  { %v3924_v1 = vpop.f32.mrf.mxu0 }
 0x154   :  { %5798 = vst [vmem:[#allocation119_spill] sm:$0xff] %v3924_v1  ;;  %778 = vadd.xlane.f32.xlu1 %v777_v3  ;;  %v701_v59 = vmul.f32 %v3924_v1, %v3924_v1  ;;  %v623_v42 = vadd.f32 %v3924_v1, %v3922_v41 }
 0x155   :  { %v3926_v4 = vpop.f32.mrf.mxu0 }
 0x156   :  { %5799 = vst [vmem:[#allocation120_spill] sm:$0xff] %v3926_v4  ;;  %781 = vadd.xlane.f32.xlu0 %v780_v40  ;;  %v702_v6 = vmul.f32 %v3926_v4, %v3926_v4  ;;  %v783_v5 = vadd.f32 %v701_v59, %v700_v49 }
 0x157   :  { %v3932_v35 = vpop.f32.mrf.mxu0 }
 0x158   :  { %5800 = vst [vmem:[#allocation121_spill] sm:$0xff] %v3932_v35  ;;  %v703_v38 = vmul.f32 %v3932_v35, %v3932_v35  ;;  %624 = vadd.xlane.f32.xlu1 %v623_v42  ;;  %v626_v7 = vadd.f32 %v3932_v35, %v3926_v4 }
 0x159   :  { %v3942_v44 = vpop.f32.mrf.mxu0 }
 0x15a   :  { %5801 = vst [vmem:[#allocation122_spill] sm:$0xff] %v3942_v44  ;;  %627 = vadd.xlane.f32.xlu0 %v626_v7  ;;  %v786_v40 = vadd.f32 %v703_v38, %v702_v6  ;;  %v704_v35 = vmul.f32 %v3942_v44, %v3942_v44 }
 0x15b   :  { %v3944_v3 = vpop.f32.mrf.mxu0 }
 0x15c   :  { %5802 = vst [vmem:[#allocation123_spill] sm:$0xff] %v3944_v3  ;;  %784 = vadd.xlane.f32.xlu1 %v783_v5  ;;  %v705_v1 = vmul.f32 %v3944_v3, %v3944_v3  ;;  %v629_v42 = vadd.f32 %v3944_v3, %v3942_v44 }
 0x15d   :  { %v3946_v39 = vpop.f32.mrf.mxu0 }
 0x15e   :  { %5803 = vst [vmem:[#allocation124_spill] sm:$0xff] %v3946_v39  ;;  %787 = vadd.xlane.f32.xlu0 %v786_v40  ;;  %v706_v49 = vmul.f32 %v3946_v39, %v3946_v39  ;;  %v789_v7 = vadd.f32 %v705_v1, %v704_v35 }
 0x15f   :  { %v3952_v41 = vpop.f32.mrf.mxu0 }
 0x160   :  { %5804 = vst [vmem:[#allocation125_spill] sm:$0xff] %v3952_v41  ;;  %v707_v59 = vmul.f32 %v3952_v41, %v3952_v41  ;;  %630 = vadd.xlane.f32.xlu1 %v629_v42  ;;  %v632_v6 = vadd.f32 %v3952_v41, %v3946_v39 }
 0x161   :  { %v3962_v38 = vpop.f32.mrf.mxu0 }
 0x162   :  { %5805 = vst [vmem:[#allocation126_spill] sm:$0xff] %v3962_v38  ;;  %633 = vadd.xlane.f32.xlu0 %v632_v6  ;;  %v792_v40 = vadd.f32 %v707_v59, %v706_v49  ;;  %v708_v41 = vmul.f32 %v3962_v38, %v3962_v38 }
 0x163   :  { %v3964_v5 = vpop.f32.mrf.mxu0 }
 0x164   :  { %5806 = vst [vmem:[#allocation127_spill] sm:$0xff] %v3964_v5  ;;  %790 = vadd.xlane.f32.xlu1 %v789_v7  ;;  %v709_v3 = vmul.f32 %v3964_v5, %v3964_v5  ;;  %v635_v42 = vadd.f32 %v3964_v5, %v3962_v38 }
 0x165   :  { %v3966_v4 = vpop.f32.mrf.mxu0 }
 0x166   :  { %5807 = vst [vmem:[#allocation128_spill] sm:$0xff] %v3966_v4  ;;  %793 = vadd.xlane.f32.xlu0 %v792_v40  ;;  %v710_v35 = vmul.f32 %v3966_v4, %v3966_v4  ;;  %v795_v6 = vadd.f32 %v709_v3, %v708_v41 }
 0x167   :  { %v3972_v44 = vpop.f32.mrf.mxu0 }
 0x168   :  { %5808 = vst [vmem:[#allocation129_spill] sm:$0xff] %v3972_v44  ;;  %v711_v1 = vmul.f32 %v3972_v44, %v3972_v44  ;;  %636 = vadd.xlane.f32.xlu1 %v635_v42  ;;  %v638_v49 = vadd.f32 %v3972_v44, %v3966_v4 }
 0x169   :  { %v3982_v59 = vpop.f32.mrf.mxu0 }
 0x16a   :  { %5809 = vst [vmem:[#allocation130_spill] sm:$0xff] %v3982_v59  ;;  %639 = vadd.xlane.f32.xlu0 %v638_v49  ;;  %v798_v40 = vadd.f32 %v711_v1, %v710_v35  ;;  %v712_v44 = vmul.f32 %v3982_v59, %v3982_v59 }
 0x16b   :  { %v3984_v7 = vpop.f32.mrf.mxu0 }
 0x16c   :  { %5810 = vst [vmem:[#allocation131_spill] sm:$0xff] %v3984_v7  ;;  %796 = vadd.xlane.f32.xlu1 %v795_v6  ;;  %v713_v5 = vmul.f32 %v3984_v7, %v3984_v7  ;;  %v641_v42 = vadd.f32 %v3984_v7, %v3982_v59 }
 0x16d   :  { %v3986_v39 = vpop.f32.mrf.mxu0 }
 0x16e   :  { %5811 = vst [vmem:[#allocation132_spill] sm:$0xff] %v3986_v39  ;;  %799 = vadd.xlane.f32.xlu0 %v798_v40  ;;  %v714_v41 = vmul.f32 %v3986_v39, %v3986_v39  ;;  %v801_v49 = vadd.f32 %v713_v5, %v712_v44 }
 0x16f   :  { %v3992_v38 = vpop.f32.mrf.mxu0 }
 0x170   :  { %5812 = vst [vmem:[#allocation133_spill] sm:$0xff] %v3992_v38  ;;  %v715_v3 = vmul.f32 %v3992_v38, %v3992_v38  ;;  %642 = vadd.xlane.f32.xlu1 %v641_v42  ;;  %v644_v35 = vadd.f32 %v3992_v38, %v3986_v39 }
 0x171   :  { %v4002_v1 = vpop.f32.mrf.mxu0 }
 0x172   :  { %5813 = vst [vmem:[#allocation134_spill] sm:$0xff] %v4002_v1  ;;  %645 = vadd.xlane.f32.xlu0 %v644_v35  ;;  %v804_v40 = vadd.f32 %v715_v3, %v714_v41  ;;  %v716_v38 = vmul.f32 %v4002_v1, %v4002_v1 }
 0x173   :  { %v4004_v6 = vpop.f32.mrf.mxu0 }
 0x174   :  { %5814 = vst [vmem:[#allocation135_spill] sm:$0xff] %v4004_v6  ;;  %802 = vadd.xlane.f32.xlu1 %v801_v49  ;;  %v717_v7 = vmul.f32 %v4004_v6, %v4004_v6  ;;  %v647_v42 = vadd.f32 %v4004_v6, %v4002_v1 }
 0x175   :  { %v4006_v4 = vpop.f32.mrf.mxu0 }
 0x176   :  { %5815 = vst [vmem:[#allocation136_spill] sm:$0xff] %v4006_v4  ;;  %805 = vadd.xlane.f32.xlu0 %v804_v40  ;;  %v718_v44 = vmul.f32 %v4006_v4, %v4006_v4  ;;  %v807_v35 = vadd.f32 %v717_v7, %v716_v38 }
 0x177   :  { %v4012_v59 = vpop.f32.mrf.mxu0 }
 0x178   :  { %5816 = vst [vmem:[#allocation137_spill] sm:$0xff] %v4012_v59  ;;  %v719_v5 = vmul.f32 %v4012_v59, %v4012_v59  ;;  %648 = vadd.xlane.f32.xlu1 %v647_v42  ;;  %v650_v41 = vadd.f32 %v4012_v59, %v4006_v4 }
 0x179   :  { %v4022_v3 = vpop.f32.mrf.mxu0 }
 0x17a   :  { %5817 = vst [vmem:[#allocation138_spill] sm:$0xff] %v4022_v3  ;;  %651 = vadd.xlane.f32.xlu0 %v650_v41  ;;  %v810_v40 = vadd.f32 %v719_v5, %v718_v44  ;;  %v720_v59 = vmul.f32 %v4022_v3, %v4022_v3 }
 0x17b   :  { %v4024_v49 = vpop.f32.mrf.mxu0 }
 0x17c   :  { %5818 = vst [vmem:[#allocation139_spill] sm:$0xff] %v4024_v49  ;;  %808 = vadd.xlane.f32.xlu1 %v807_v35  ;;  %v721_v6 = vmul.f32 %v4024_v49, %v4024_v49  ;;  %v653_v42 = vadd.f32 %v4024_v49, %v4022_v3 }
 0x17d   :  { %v4026_v39 = vpop.f32.mrf.mxu0 }
 0x17e   :  { %5819 = vst [vmem:[#allocation140_spill] sm:$0xff] %v4026_v39  ;;  %811 = vadd.xlane.f32.xlu0 %v810_v40  ;;  %v722_v38 = vmul.f32 %v4026_v39, %v4026_v39  ;;  %v813_v41 = vadd.f32 %v721_v6, %v720_v59 }
 0x17f   :  { %v4032_v1 = vpop.f32.mrf.mxu0 }
 0x180   :  { %5820 = vst [vmem:[#allocation141_spill] sm:$0xff] %v4032_v1  ;;  %v723_v7 = vmul.f32 %v4032_v1, %v4032_v1  ;;  %654 = vadd.xlane.f32.xlu1 %v653_v42  ;;  %v656_v44 = vadd.f32 %v4032_v1, %v4026_v39 }
 0x181   :  { %v4042_v5 = vpop.f32.mrf.mxu0 }
 0x182   :  { %5821 = vst [vmem:[#allocation142_spill] sm:$0xff] %v4042_v5  ;;  %657 = vadd.xlane.f32.xlu0 %v656_v44  ;;  %v816_v40 = vadd.f32 %v723_v7, %v722_v38  ;;  %v724_v42 = vmul.f32 %v4042_v5, %v4042_v5 }
 0x183   :  { %v4044_v35 = vpop.f32.mrf.mxu0 }
 0x184   :  { %5822 = vst [vmem:[#allocation143_spill] sm:$0xff] %v4044_v35  ;;  %814 = vadd.xlane.f32.xlu1 %v813_v41  ;;  %v659_v4 = vadd.f32 %v4044_v35, %v4042_v5  ;;  %v725_v49 = vmul.f32 %v4044_v35, %v4044_v35 }
 0x186   :  { %817 = vadd.xlane.f32.xlu0 %v816_v40  ;;  %v819_v3 = vadd.f32 %v725_v49, %v724_v42 }
 0x188   :  { %660 = vadd.xlane.f32.xlu1 %v659_v4 }
 0x18c   :  { %820 = vadd.xlane.f32.xlu1 %v819_v3 }
 0x193   :  { %v568_v1 = vpop.xlane.xlu0 %567 }
 0x194   :  { %v822_v44 = vmul.f32 0.00390625, %v568_v1 }
 0x196   :  { %v886_v6 = vmul.f32 %v822_v44, %v822_v44 }
 0x197   :  { %v728_v59 = vpop.xlane.xlu0 %727 }
 0x198   :  { %v854_v39 = vmul.f32 0.00390625, %v728_v59 }
 0x199   :  { %v731_v41 = vpop.xlane.xlu1 %730 }
 0x19a   :  { %v918_v38 = vsub.f32 %v854_v39, %v886_v6  ;;  %v855_v40 = vmul.f32 0.00390625, %v731_v41 }
 0x19b   :  { %v571_v7 = vpop.xlane.xlu0 %570 }
 0x19c   :  { %v950_v9 = vmax.f32 %v918_v38, 0.0  ;;  %v4052_v8 = vmul.f32 0.00390625, %v571_v7 }
 0x19d   :  { %v574_v11 = vpop.xlane.xlu1 %573 }
 0x19e   :  { %v1014_v35 = vadd.f32 1e-05, %v950_v9  ;;  %v887_v5 = vmul.f32 %v4052_v8, %v4052_v8  ;;  %v4056_v4 = vmul.f32 0.00390625, %v574_v11 }
 0x19f   :  { %v734_v3 = vpop.xlane.xlu0 %733 }
 0x1a0   :  { %3068 = vrsqrt.f32 %v1014_v35  ;;  %v919_v1 = vsub.f32 %v855_v40, %v887_v5  ;;  %v888_v49 = vmul.f32 %v4056_v4, %v4056_v4  ;;  %v856_v42 = vmul.f32 0.00390625, %v734_v3 }
 0x1a1   :  { %v577_v39 = vpop.xlane.xlu1 %576 }
 0x1a2   :  { %v951_v59 = vmax.f32 %v919_v1, 0.0  ;;  %v920_v6 = vsub.f32 %v856_v42, %v888_v49  ;;  %v4060_v38 = vmul.f32 0.00390625, %v577_v39 }
 0x1a3   :  { %v580_v7 = vpop.xlane.xlu0 %579 }
 0x1a4   :  { %v1015_v9 = vadd.f32 1e-05, %v951_v59  ;;  %v952_v41 = vmax.f32 %v920_v6, 0.0  ;;  %v4062_v10 = vmul.f32 0.00390625, %v580_v7  ;;  %v889_v5 = vmul.f32 %v4060_v38, %v4060_v38  ;;  %v982_v6 = vld [vmem:[%s5566_s4] sm:$0xff] }
 0x1a5   :  { %v737_v48 = vpop.xlane.xlu1 %736 }
 0x1a6   :  { %3070 = vrsqrt.f32 %v1015_v9  ;;  %v1016_v11 = vadd.f32 1e-05, %v952_v41  ;;  %v857_v35 = vmul.f32 0.00390625, %v737_v48  ;;  %v890_v3 = vmul.f32 %v4062_v10, %v4062_v10 }
 0x1a7   :  { %v740_v40 = vpop.xlane.xlu0 %739 }
 0x1a8   :  { %3072 = vrsqrt.f32 %v1016_v11  ;;  %v921_v1 = vsub.f32 %v857_v35, %v889_v5  ;;  %v858_v49 = vmul.f32 0.00390625, %v740_v40  ;;  %v4080_v35 = vld [vmem:[%s5567_s5] sm:$0xff] }
 0x1a9   :  { %v583_v42 = vpop.xlane.xlu1 %582  ;;  %5824 = vst [vmem:[#allocation145_spill] sm:$0xff] %v4080_v35 }
 0x1aa   :  { %v953_v39 = vmax.f32 %v921_v1, 0.0  ;;  %v922_v59 = vsub.f32 %v858_v49, %v890_v3  ;;  %v4071_v7 = vmul.f32 0.00390625, %v583_v42 }
 0x1ab   :  { %v586_v9 = vpop.xlane.xlu0 %585 }
 0x1ac   :  { %v1017_v41 = vadd.f32 1e-05, %v953_v39  ;;  %v954_v43 = vmax.f32 %v922_v59, 0.0  ;;  %v4073_v48 = vmul.f32 0.00390625, %v586_v9  ;;  %v891_v40 = vmul.f32 %v4071_v7, %v4071_v7 }
 0x1ad   :  { %v3069_v11 = vpop.eup %3068  ;;  %v743_v50 = vpop.xlane.xlu1 %742 }
 0x1ae   :  { %v4075_v36 = vmul.f32 %v3069_v11, %v982_v6  ;;  %3074 = vrsqrt.f32 %v1017_v41  ;;  %v1018_v5 = vadd.f32 1e-05, %v954_v43  ;;  %v859_v3 = vmul.f32 0.00390625, %v743_v50  ;;  %v983_v43 = vld [vmem:[%s5566_s4 + $0x8] sm:$0xff] }
 0x1af   :  { %v746_v1 = vpop.xlane.xlu0 %745  ;;  %v892_v42 = vmul.f32 %v4073_v48, %v4073_v48 }
 0x1b0   :  { %5823 = vst [vmem:[#allocation144_spill] sm:$0xff] %v4075_v36  ;;  %v4085_v49 = vmul.f32 %v4075_v36, %v822_v44  ;;  %3076 = vrsqrt.f32 %v1018_v5  ;;  %v860_v39 = vmul.f32 0.00390625, %v746_v1  ;;  %v923_v59 = vsub.f32 %v859_v3, %v891_v40  ;;  %v984_v44 = vld [vmem:[%s5566_s4 + $0x10] sm:$0xff]  ;;  %v4106_v3 = vld [vmem:[%s5567_s5 + $0x8] sm:$0xff]  ;;  %v4384_v36 = vld [vmem:[%s5567_s5 + $0x78] sm:$0xff] }
 0x1b1   :  { %v589_v6 = vpop.xlane.xlu1 %588  ;;  %5827 = vst [vmem:[#allocation148_spill] sm:$0xff] %v4106_v3 }
 0x1b2   :  { %5825 = vst [vmem:[#allocation146_spill] sm:$0xff] %v4085_v49  ;;  %v924_v41 = vsub.f32 %v860_v39, %v892_v42  ;;  %v955_v11 = vmax.f32 %v923_v59, 0.0  ;;  %v4097_v5 = vmul.f32 0.00390625, %v589_v6 }
 0x1b3   :  { %v3071_v50 = vpop.eup %3070  ;;  %v592_v13 = vpop.xlane.xlu0 %591 }
 0x1b4   :  { %v4099_v1 = vmul.f32 %v3071_v50, %v983_v43  ;;  %v956_v12 = vmax.f32 %v924_v41, 0.0  ;;  %v4101_v15 = vmul.f32 0.00390625, %v592_v13  ;;  %v1019_v42 = vadd.f32 1e-05, %v955_v11  ;;  %v4117_v13 = vld [vmem:[%s5567_s5 + $0x10] sm:$0xff] }
 0x1b5   :  { %v3073_v40 = vpop.eup %3072  ;;  %v749_v39 = vpop.xlane.xlu1 %748  ;;  %5830 = vst [vmem:[#allocation151_spill] sm:$0xff] %v4117_v13  ;;  %v893_v43 = vmul.f32 %v4097_v5, %v4097_v5 }
 0x1b6   :  { %5826 = vst [vmem:[#allocation147_spill] sm:$0xff] %v4099_v1  ;;  %v4110_v9 = vmul.f32 %v4099_v1, %v4052_v8  ;;  %v4112_v59 = vmul.f32 %v3073_v40, %v984_v44  ;;  %v1020_v6 = vadd.f32 1e-05, %v956_v12  ;;  %3078 = vrsqrt.f32 %v1019_v42  ;;  %v985_v40 = vld [vmem:[%s5566_s4 + $0x18] sm:$0xff]  ;;  %v986_v8 = vld [vmem:[%s5566_s4 + $0x20] sm:$0xff] }
 0x1b7   :  { %v894_v41 = vmul.f32 %v4101_v15, %v4101_v15  ;;  %v861_v50 = vmul.f32 0.00390625, %v749_v39  ;;  %v752_v11 = vpop.xlane.xlu0 %751 }
 0x1b8   :  { %5828 = vst [vmem:[#allocation149_spill] sm:$0xff] %v4110_v9  ;;  %5829 = vst [vmem:[#allocation150_spill] sm:$0xff] %v4112_v59  ;;  %v4127_v12 = vmul.f32 %v4112_v59, %v4056_v4  ;;  %3080 = vrsqrt.f32 %v1020_v6  ;;  %v862_v44 = vmul.f32 0.00390625, %v752_v11 }
 0x1b9   :  { %v925_v42 = vsub.f32 %v861_v50, %v893_v43  ;;  %v595_v14 = vpop.xlane.xlu1 %594  ;;  %v4146_v50 = vld [vmem:[%s5567_s5 + $0x18] sm:$0xff] }
 0x1ba   :  { %5831 = vst [vmem:[#allocation152_spill] sm:$0xff] %v4127_v12  ;;  %v926_v39 = vsub.f32 %v862_v44, %v894_v41  ;;  %v4137_v4 = vmul.f32 0.00390625, %v595_v14  ;;  %5832 = vst [vmem:[#allocation153_spill] sm:$0xff] %v4146_v50  ;;  %v999_v12 = vld [vmem:[%s5566_s4 + $0x88] sm:$0xff] }
 0x1bb   :  { %v3075_v52 = vpop.eup %3074  ;;  %v957_v32 = vmax.f32 %v925_v42, 0.0  ;;  %v598_v6 = vpop.xlane.xlu0 %597 }
 0x1bc   :  { %v4139_v11 = vmul.f32 %v3075_v52, %v985_v40  ;;  %v958_v47 = vmax.f32 %v926_v39, 0.0  ;;  %v4141_v17 = vmul.f32 0.00390625, %v598_v6  ;;  %v4157_v52 = vld [vmem:[%s5567_s5 + $0x20] sm:$0xff]  ;;  %v895_v40 = vmul.f32 %v4137_v4, %v4137_v4 }
 0x1bd   :  { %v3077_v43 = vpop.eup %3076  ;;  %v1021_v41 = vadd.f32 1e-05, %v957_v32  ;;  %v755_v44 = vpop.xlane.xlu1 %754 }
 0x1be   :  { %v4150_v54 = vmul.f32 %v4139_v11, %v4060_v38  ;;  %v4152_v14 = vmul.f32 %v3077_v43, %v986_v8  ;;  %v1022_v42 = vadd.f32 1e-05, %v958_v47  ;;  %v896_v32 = vmul.f32 %v4141_v17, %v4141_v17  ;;  %v988_v38 = vld [vmem:[%s5566_s4 + $0x30] sm:$0xff] }
 0x1bf   :  { %3082 = vrsqrt.f32 %v1021_v41  ;;  %v863_v39 = vmul.f32 0.00390625, %v755_v44  ;;  %v758_v6 = vpop.xlane.xlu0 %757 }
 0x1c0   :  { %5833 = vst [vmem:[#allocation154_spill] sm:$0xff] %v4150_v54  ;;  %v4167_v47 = vmul.f32 %v4152_v14, %v4062_v10  ;;  %3084 = vrsqrt.f32 %v1022_v42  ;;  %v864_v8 = vmul.f32 0.00390625, %v758_v6 }
 0x1c1   :  { %v927_v43 = vsub.f32 %v863_v39, %v895_v40  ;;  %v601_v16 = vpop.xlane.xlu1 %600 }
 0x1c2   :  { %v928_v44 = vsub.f32 %v864_v8, %v896_v32  ;;  %v4174_v18 = vmul.f32 0.00390625, %v601_v16  ;;  %v4186_v16 = vld [vmem:[%s5567_s5 + $0x28] sm:$0xff] }
 0x1c3   :  { %v959_v10 = vmax.f32 %v927_v43, 0.0  ;;  %v604_v58 = vpop.xlane.xlu0 %603  ;;  %v3079_v42 = vpop.eup %3078 }
 0x1c4   :  { %v960_v6 = vmax.f32 %v928_v44, 0.0  ;;  %v4179_v40 = vmul.f32 0.00390625, %v604_v58  ;;  %v4181_v56 = vmul.f32 %v3079_v42, %v987_v19  ;;  %v897_v43 = vmul.f32 %v4174_v18, %v4174_v18  ;;  %v4199_v19 = vld [vmem:[%s5567_s5 + $0x30] sm:$0xff] }
 0x1c5   :  { %v3081_v39 = vpop.eup %3080  ;;  %v1023_v41 = vadd.f32 1e-05, %v959_v10  ;;  %v761_v53 = vpop.xlane.xlu1 %760 }
 0x1c6   :  { %v4188_v32 = vmul.f32 %v3081_v39, %v988_v38  ;;  %v1024_v8 = vadd.f32 1e-05, %v960_v6  ;;  %v865_v51 = vmul.f32 0.00390625, %v761_v53  ;;  %v4194_v58 = vmul.f32 %v4181_v56, %v4071_v7 }
 0x1c7   :  { %3086 = vrsqrt.f32 %v1023_v41  ;;  %v898_v44 = vmul.f32 %v4179_v40, %v4179_v40  ;;  %v764_v38 = vpop.xlane.xlu0 %763  ;;  %v989_v41 = vld [vmem:[%s5566_s4 + $0x38] sm:$0xff] }
 0x1c8   :  { %v4205_v10 = vmul.f32 %v4188_v32, %v4073_v48  ;;  %3088 = vrsqrt.f32 %v1024_v8  ;;  %v929_v53 = vsub.f32 %v865_v51, %v897_v43  ;;  %v866_v42 = vmul.f32 0.00390625, %v764_v38  ;;  %v990_v48 = vld [vmem:[%s5566_s4 + $0x40] sm:$0xff] }
 0x1c9   :  { %v607_v6 = vpop.xlane.xlu1 %606 }
 0x1ca   :  { %v961_v21 = vmax.f32 %v929_v53, 0.0  ;;  %v930_v20 = vsub.f32 %v866_v42, %v898_v44  ;;  %v4217_v8 = vmul.f32 0.00390625, %v607_v6  ;;  %v4226_v44 = vld [vmem:[%s5567_s5 + $0x38] sm:$0xff] }
 0x1cb   :  { %v610_v51 = vpop.xlane.xlu0 %609 }
 0x1cc   :  { %v3083_v43 = vpop.eup %3082  ;;  %v1025_v38 = vadd.f32 1e-05, %v961_v21  ;;  %v962_v7 = vmax.f32 %v930_v20, 0.0  ;;  %v4219_v23 = vmul.f32 0.00390625, %v610_v51  ;;  %v4237_v20 = vld [vmem:[%s5567_s5 + $0x40] sm:$0xff]  ;;  %v899_v21 = vmul.f32 %v4217_v8, %v4217_v8 }
 0x1cd   :  { %v3085_v22 = vpop.eup %3084  ;;  %v4221_v39 = vmul.f32 %v3083_v43, %v989_v41  ;;  %v767_v62 = vpop.xlane.xlu1 %766 }
 0x1ce   :  { %v4228_v53 = vmul.f32 %v3085_v22, %v990_v48  ;;  %3090 = vrsqrt.f32 %v1025_v38  ;;  %v1026_v42 = vadd.f32 1e-05, %v962_v7  ;;  %v867_v41 = vmul.f32 0.00390625, %v767_v62  ;;  %v991_v62 = vld [vmem:[%s5566_s4 + $0x48] sm:$0xff] }
 0x1cf   :  { %v4232_v6 = vmul.f32 %v4221_v39, %v4097_v5  ;;  %v770_v51 = vpop.xlane.xlu0 %769  ;;  %v900_v7 = vmul.f32 %v4219_v23, %v4219_v23 }
 0x1d0   :  { %v4243_v22 = vmul.f32 %v4228_v53, %v4101_v15  ;;  %3092 = vrsqrt.f32 %v1026_v42  ;;  %v868_v5 = vmul.f32 0.00390625, %v770_v51  ;;  %v931_v43 = vsub.f32 %v867_v41, %v899_v21  ;;  %v992_v42 = vld [vmem:[%s5566_s4 + $0x50] sm:$0xff] }
 0x1d1   :  { %v613_v38 = vpop.xlane.xlu1 %612 }
 0x1d2   :  { %v932_v46 = vsub.f32 %v868_v5, %v900_v7  ;;  %v4254_v15 = vmul.f32 0.00390625, %v613_v38  ;;  %v963_v51 = vmax.f32 %v931_v43, 0.0  ;;  %v4266_v7 = vld [vmem:[%s5567_s5 + $0x48] sm:$0xff] }
 0x1d3   :  { %v616_v57 = vpop.xlane.xlu0 %615 }
 0x1d4   :  { %v3087_v25 = vpop.eup %3086  ;;  %v964_v48 = vmax.f32 %v932_v46, 0.0  ;;  %v4259_v21 = vmul.f32 0.00390625, %v616_v57  ;;  %v1027_v60 = vadd.f32 1e-05, %v963_v51  ;;  %v901_v43 = vmul.f32 %v4254_v15, %v4254_v15  ;;  %v993_v51 = vld [vmem:[%s5566_s4 + $0x58] sm:$0xff] }
 0x1d5   :  { %v3089_v41 = vpop.eup %3088  ;;  %v4261_v24 = vmul.f32 %v3087_v25, %v991_v62  ;;  %v773_v27 = vpop.xlane.xlu1 %772  ;;  %v4279_v25 = vld [vmem:[%s5567_s5 + $0x50] sm:$0xff] }
 0x1d6   :  { %v4268_v5 = vmul.f32 %v3089_v41, %v992_v42  ;;  %v1028_v38 = vadd.f32 1e-05, %v964_v48  ;;  %v869_v26 = vmul.f32 0.00390625, %v773_v27  ;;  %3094 = vrsqrt.f32 %v1027_v60 }
 0x1d7   :  { %v4274_v57 = vmul.f32 %v4261_v24, %v4137_v4  ;;  %v902_v46 = vmul.f32 %v4259_v21, %v4259_v21  ;;  %v776_v62 = vpop.xlane.xlu0 %775 }
 0x1d8   :  { %v4285_v48 = vmul.f32 %v4268_v5, %v4141_v17  ;;  %3096 = vrsqrt.f32 %v1028_v38  ;;  %v933_v27 = vsub.f32 %v869_v26, %v901_v43  ;;  %v870_v42 = vmul.f32 0.00390625, %v776_v62  ;;  %v994_v17 = vld [vmem:[%s5566_s4 + $0x60] sm:$0xff] }
 0x1d9   :  { %v619_v41 = vpop.xlane.xlu1 %618 }
 0x1da   :  { %v965_v2 = vmax.f32 %v933_v27, 0.0  ;;  %v934_v0 = vsub.f32 %v870_v42, %v902_v46  ;;  %v4297_v26 = vmul.f32 0.00390625, %v619_v41 }
 0x1db   :  { %v3091_v34 = vpop.eup %3090  ;;  %v622_v38 = vpop.xlane.xlu0 %621 }
 0x1dc   :  { %v4299_v43 = vmul.f32 %v3091_v34, %v993_v51  ;;  %v1029_v62 = vadd.f32 1e-05, %v965_v2  ;;  %v966_v4 = vmax.f32 %v934_v0, 0.0  ;;  %v4306_v27 = vmul.f32 0.00390625, %v622_v38  ;;  %v4317_v0 = vld [vmem:[%s5567_s5 + $0x60] sm:$0xff] }
 0x1dd   :  { %v3093_v61 = vpop.eup %3092  ;;  %v779_v46 = vpop.xlane.xlu1 %778  ;;  %v903_v2 = vmul.f32 %v4297_v26, %v4297_v26 }
 0x1de   :  { %v4310_v42 = vmul.f32 %v4299_v43, %v4174_v18  ;;  %v4312_v41 = vmul.f32 %v3093_v61, %v994_v17  ;;  %3098 = vrsqrt.f32 %v1029_v62  ;;  %v1030_v34 = vadd.f32 1e-05, %v966_v4  ;;  %v996_v18 = vld [vmem:[%s5566_s4 + $0x70] sm:$0xff] }
 0x1df   :  { %v904_v51 = vmul.f32 %v4306_v27, %v4306_v27  ;;  %v871_v38 = vmul.f32 0.00390625, %v779_v46  ;;  %v782_v60 = vpop.xlane.xlu0 %781 }
 0x1e0   :  { %v4327_v61 = vmul.f32 %v4312_v41, %v4179_v40  ;;  %3100 = vrsqrt.f32 %v1030_v34  ;;  %v872_v4 = vmul.f32 0.00390625, %v782_v60 }
 0x1e1   :  { %v935_v17 = vsub.f32 %v871_v38, %v903_v2  ;;  %v625_v62 = vpop.xlane.xlu1 %624 }
 0x1e2   :  { %v936_v46 = vsub.f32 %v872_v4, %v904_v51  ;;  %v4334_v29 = vmul.f32 0.00390625, %v625_v62  ;;  %v4346_v51 = vld [vmem:[%s5567_s5 + $0x68] sm:$0xff] }
 0x1e3   :  { %v967_v40 = vmax.f32 %v935_v17, 0.0  ;;  %v628_v55 = vpop.xlane.xlu0 %627  ;;  %v3095_v34 = vpop.eup %3094 }
 0x1e4   :  { %v968_v60 = vmax.f32 %v936_v46, 0.0  ;;  %v4339_v2 = vmul.f32 0.00390625, %v628_v55  ;;  %v4341_v63 = vmul.f32 %v3095_v34, %v995_v28  ;;  %v905_v17 = vmul.f32 %v4334_v29, %v4334_v29  ;;  %v4359_v28 = vld [vmem:[%s5567_s5 + $0x70] sm:$0xff] }
 0x1e5   :  { %v3097_v38 = vpop.eup %3096  ;;  %v1031_v31 = vadd.f32 1e-05, %v967_v40  ;;  %v785_v45 = vpop.xlane.xlu1 %784 }
 0x1e6   :  { %v4348_v4 = vmul.f32 %v3097_v38, %v996_v18  ;;  %v1032_v62 = vadd.f32 1e-05, %v968_v60  ;;  %v873_v37 = vmul.f32 0.00390625, %v785_v45  ;;  %v4354_v55 = vmul.f32 %v4341_v63, %v4217_v8  ;;  %v997_v60 = vld [vmem:[%s5566_s4 + $0x78] sm:$0xff] }
 0x1e7   :  { %3102 = vrsqrt.f32 %v1031_v31  ;;  %v906_v46 = vmul.f32 %v4339_v2, %v4339_v2  ;;  %v788_v18 = vpop.xlane.xlu0 %787 }
 0x1e8   :  { %v4365_v40 = vmul.f32 %v4348_v4, %v4219_v23  ;;  %3104 = vrsqrt.f32 %v1032_v62  ;;  %v937_v45 = vsub.f32 %v873_v37, %v905_v17  ;;  %v874_v34 = vmul.f32 0.00390625, %v788_v18  ;;  %v998_v23 = vld [vmem:[%s5566_s4 + $0x80] sm:$0xff] }
 0x1e9   :  { %v631_v38 = vpop.xlane.xlu1 %630 }
 0x1ea   :  { %v969_v49 = vmax.f32 %v937_v45, 0.0  ;;  %v938_v35 = vsub.f32 %v874_v34, %v906_v46  ;;  %v4377_v37 = vmul.f32 0.00390625, %v631_v38 }
 0x1eb   :  { %v3099_v9 = vpop.eup %3098  ;;  %v634_v62 = vpop.xlane.xlu0 %633 }
 0x1ec   :  { %v4379_v17 = vmul.f32 %v3099_v9, %v997_v60  ;;  %v1033_v18 = vadd.f32 1e-05, %v969_v49  ;;  %v970_v8 = vmax.f32 %v938_v35, 0.0  ;;  %v4386_v45 = vmul.f32 0.00390625, %v634_v62  ;;  %v4397_v35 = vld [vmem:[%s5567_s5 + $0x80] sm:$0xff] }
 0x1ed   :  { %v3101_v3 = vpop.eup %3100  ;;  %v791_v46 = vpop.xlane.xlu1 %790  ;;  %5835 = vst [vmem:[#allocation156_spill] sm:$0xff] %v4397_v35  ;;  %v907_v49 = vmul.f32 %v4377_v37, %v4377_v37 }
 0x1ee   :  { %v4390_v34 = vmul.f32 %v4379_v17, %v4254_v15  ;;  %v4392_v38 = vmul.f32 %v3101_v3, %v998_v23  ;;  %3106 = vrsqrt.f32 %v1033_v18  ;;  %v1034_v9 = vadd.f32 1e-05, %v970_v8  ;;  %v1000_v15 = vld [vmem:[%s5566_s4 + $0x90] sm:$0xff] }
 0x1ef   :  { %v908_v60 = vmul.f32 %v4386_v45, %v4386_v45  ;;  %v875_v62 = vmul.f32 0.00390625, %v791_v46  ;;  %v794_v31 = vpop.xlane.xlu0 %793 }
 0x1f0   :  { %5834 = vst [vmem:[#allocation155_spill] sm:$0xff] %v4392_v38  ;;  %v4407_v3 = vmul.f32 %v4392_v38, %v4259_v21  ;;  %3108 = vrsqrt.f32 %v1034_v9  ;;  %v876_v8 = vmul.f32 0.00390625, %v794_v31 }
 0x1f1   :  { %v939_v23 = vsub.f32 %v875_v62, %v907_v49  ;;  %v637_v18 = vpop.xlane.xlu1 %636 }
 0x1f2   :  { %5836 = vst [vmem:[#allocation157_spill] sm:$0xff] %v4407_v3  ;;  %v940_v46 = vsub.f32 %v876_v8, %v908_v60  ;;  %v4414_v13 = vmul.f32 0.00390625, %v637_v18  ;;  %v4426_v60 = vld [vmem:[%s5567_s5 + $0x88] sm:$0xff] }
 0x1f3   :  { %v971_v21 = vmax.f32 %v939_v23, 0.0  ;;  %v640_v38 = vpop.xlane.xlu0 %639  ;;  %5838 = vst [vmem:[#allocation159_spill] sm:$0xff] %v4426_v60  ;;  %v4464_v60 = vld [vmem:[%s5567_s5 + $0x98] sm:$0xff] }
 0x1f4   :  { %v3103_v9 = vpop.eup %3102  ;;  %v972_v31 = vmax.f32 %v940_v46, 0.0  ;;  %v4419_v49 = vmul.f32 0.00390625, %v640_v38  ;;  %v909_v23 = vmul.f32 %v4414_v13, %v4414_v13  ;;  %5844 = vst [vmem:[#allocation165_spill] sm:$0xff] %v4464_v60 }
 0x1f5   :  { %v3105_v62 = vpop.eup %3104  ;;  %v4421_v54 = vmul.f32 %v3103_v9, %v999_v12  ;;  %v1035_v1 = vadd.f32 1e-05, %v971_v21  ;;  %v797_v3 = vpop.xlane.xlu1 %796  ;;  %v4439_v12 = vld [vmem:[%s5567_s5 + $0x90] sm:$0xff] }
 0x1f6   :  { %v4428_v8 = vmul.f32 %v3105_v62, %v1000_v15  ;;  %v1036_v18 = vadd.f32 1e-05, %v972_v31  ;;  %v877_v35 = vmul.f32 0.00390625, %v797_v3  ;;  %5841 = vst [vmem:[#allocation162_spill] sm:$0xff] %v4439_v12  ;;  %v910_v46 = vmul.f32 %v4419_v49, %v4419_v49  ;;  %v1001_v31 = vld [vmem:[%s5566_s4 + $0x98] sm:$0xff]  ;;  %v1003_v12 = vld [vmem:[%s5566_s4 + $0xa8] sm:$0xff] }
 0x1f7   :  { %5837 = vst [vmem:[#allocation158_spill] sm:$0xff] %v4421_v54  ;;  %v4434_v38 = vmul.f32 %v4421_v54, %v4297_v26  ;;  %3110 = vrsqrt.f32 %v1035_v1  ;;  %v800_v15 = vpop.xlane.xlu0 %799 }
 0x1f8   :  { %5839 = vst [vmem:[#allocation160_spill] sm:$0xff] %v4428_v8  ;;  %v4445_v21 = vmul.f32 %v4428_v8, %v4306_v27  ;;  %3112 = vrsqrt.f32 %v1036_v18  ;;  %v941_v3 = vsub.f32 %v877_v35, %v909_v23  ;;  %v878_v9 = vmul.f32 0.00390625, %v800_v15  ;;  %v1002_v27 = vld [vmem:[%s5566_s4 + $0xa0] sm:$0xff] }
 0x1f9   :  { %5840 = vst [vmem:[#allocation161_spill] sm:$0xff] %v4434_v38  ;;  %v643_v62 = vpop.xlane.xlu1 %642 }
 0x1fa   :  { %5842 = vst [vmem:[#allocation163_spill] sm:$0xff] %v4445_v21  ;;  %v973_v54 = vmax.f32 %v941_v3, 0.0  ;;  %v942_v50 = vsub.f32 %v878_v9, %v910_v46  ;;  %v4457_v35 = vmul.f32 0.00390625, %v643_v62 }
 0x1fb   :  { %v3107_v59 = vpop.eup %3106  ;;  %v646_v18 = vpop.xlane.xlu0 %645 }
 0x1fc   :  { %v4459_v23 = vmul.f32 %v3107_v59, %v1001_v31  ;;  %v1037_v15 = vadd.f32 1e-05, %v973_v54  ;;  %v974_v26 = vmax.f32 %v942_v50, 0.0  ;;  %v4466_v3 = vmul.f32 0.00390625, %v646_v18  ;;  %v4477_v54 = vld [vmem:[%s5567_s5 + $0xa0] sm:$0xff] }
 0x1fd   :  { %v3109_v38 = vpop.eup %3108  ;;  %v803_v46 = vpop.xlane.xlu1 %802  ;;  %5847 = vst [vmem:[#allocation168_spill] sm:$0xff] %v4477_v54  ;;  %v911_v50 = vmul.f32 %v4457_v35, %v4457_v35 }
 0x1fe   :  { %5843 = vst [vmem:[#allocation164_spill] sm:$0xff] %v4459_v23  ;;  %v4470_v9 = vmul.f32 %v4459_v23, %v4334_v29  ;;  %v4472_v62 = vmul.f32 %v3109_v38, %v1002_v27  ;;  %3114 = vrsqrt.f32 %v1037_v15  ;;  %v1038_v59 = vadd.f32 1e-05, %v974_v26  ;;  %v1004_v29 = vld [vmem:[%s5566_s4 + $0xb0] sm:$0xff] }
 0x1ff   :  { %v912_v31 = vmul.f32 %v4466_v3, %v4466_v3  ;;  %v879_v18 = vmul.f32 0.00390625, %v803_v46  ;;  %v806_v1 = vpop.xlane.xlu0 %805 }
 0x200   :  { %5845 = vst [vmem:[#allocation166_spill] sm:$0xff] %v4470_v9  ;;  %5846 = vst [vmem:[#allocation167_spill] sm:$0xff] %v4472_v62  ;;  %v4487_v38 = vmul.f32 %v4472_v62, %v4339_v2  ;;  %3116 = vrsqrt.f32 %v1038_v59  ;;  %v880_v26 = vmul.f32 0.00390625, %v806_v1 }
 0x201   :  { %v943_v27 = vsub.f32 %v879_v18, %v911_v50  ;;  %v649_v15 = vpop.xlane.xlu1 %648 }
 0x202   :  { %5848 = vst [vmem:[#allocation169_spill] sm:$0xff] %v4487_v38  ;;  %v944_v46 = vsub.f32 %v880_v26, %v912_v31  ;;  %v4494_v8 = vmul.f32 0.00390625, %v649_v15  ;;  %v4506_v31 = vld [vmem:[%s5567_s5 + $0xa8] sm:$0xff] }
 0x203   :  { %v975_v2 = vmax.f32 %v943_v27, 0.0  ;;  %v652_v9 = vpop.xlane.xlu0 %651  ;;  %5850 = vst [vmem:[#allocation171_spill] sm:$0xff] %v4506_v31  ;;  %v4544_v31 = vld [vmem:[%s5567_s5 + $0xb8] sm:$0xff] }
 0x204   :  { %v3111_v59 = vpop.eup %3110  ;;  %v976_v1 = vmax.f32 %v944_v46, 0.0  ;;  %v4499_v50 = vmul.f32 0.00390625, %v652_v9  ;;  %v913_v27 = vmul.f32 %v4494_v8, %v4494_v8  ;;  %5856 = vst [vmem:[#allocation177_spill] sm:$0xff] %v4544_v31 }
 0x205   :  { %v3113_v18 = vpop.eup %3112  ;;  %v4501_v60 = vmul.f32 %v3111_v59, %v1003_v12  ;;  %v1039_v21 = vadd.f32 1e-05, %v975_v2  ;;  %v809_v23 = vpop.xlane.xlu1 %808  ;;  %v4519_v12 = vld [vmem:[%s5567_s5 + $0xb0] sm:$0xff] }
 0x206   :  { %v4508_v26 = vmul.f32 %v3113_v18, %v1004_v29  ;;  %v1040_v15 = vadd.f32 1e-05, %v976_v1  ;;  %v881_v38 = vmul.f32 0.00390625, %v809_v23  ;;  %5853 = vst [vmem:[#allocation174_spill] sm:$0xff] %v4519_v12  ;;  %v914_v46 = vmul.f32 %v4499_v50, %v4499_v50  ;;  %v1005_v1 = vld [vmem:[%s5566_s4 + $0xb8] sm:$0xff]  ;;  %v1007_v12 = vld [vmem:[%s5566_s4 + $0xc8] sm:$0xff] }
 0x207   :  { %5849 = vst [vmem:[#allocation170_spill] sm:$0xff] %v4501_v60  ;;  %v4514_v9 = vmul.f32 %v4501_v60, %v4377_v37  ;;  %3118 = vrsqrt.f32 %v1039_v21  ;;  %v812_v29 = vpop.xlane.xlu0 %811 }
 0x208   :  { %5851 = vst [vmem:[#allocation172_spill] sm:$0xff] %v4508_v26  ;;  %v4525_v2 = vmul.f32 %v4508_v26, %v4386_v45  ;;  %3120 = vrsqrt.f32 %v1040_v15  ;;  %v945_v23 = vsub.f32 %v881_v38, %v913_v27  ;;  %v882_v59 = vmul.f32 0.00390625, %v812_v29  ;;  %v1006_v45 = vld [vmem:[%s5566_s4 + $0xc0] sm:$0xff] }
 0x209   :  { %5852 = vst [vmem:[#allocation173_spill] sm:$0xff] %v4514_v9  ;;  %v655_v18 = vpop.xlane.xlu1 %654 }
 0x20a   :  { %5854 = vst [vmem:[#allocation175_spill] sm:$0xff] %v4525_v2  ;;  %v977_v54 = vmax.f32 %v945_v23, 0.0  ;;  %v946_v62 = vsub.f32 %v882_v59, %v914_v46  ;;  %v4537_v38 = vmul.f32 0.00390625, %v655_v18  ;;  %v4582_v2 = vld [vmem:[%s5567_s5 + $0xc8] sm:$0xff] }
 0x20b   :  { %v3115_v60 = vpop.eup %3114  ;;  %v658_v15 = vpop.xlane.xlu0 %657  ;;  %5860 = vst [vmem:[#allocation181_spill] sm:$0xff] %v4582_v2 }
 0x20c   :  { %v4539_v27 = vmul.f32 %v3115_v60, %v1005_v1  ;;  %v1041_v29 = vadd.f32 1e-05, %v977_v54  ;;  %v978_v37 = vmax.f32 %v946_v62, 0.0  ;;  %v4546_v23 = vmul.f32 0.00390625, %v658_v15  ;;  %v4557_v62 = vld [vmem:[%s5567_s5 + $0xc0] sm:$0xff] }
 0x20d   :  { %v3117_v9 = vpop.eup %3116  ;;  %v815_v46 = vpop.xlane.xlu1 %814  ;;  %5858 = vst [vmem:[#allocation179_spill] sm:$0xff] %v4557_v62  ;;  %v915_v54 = vmul.f32 %v4537_v38, %v4537_v38 }
 0x20e   :  { %5855 = vst [vmem:[#allocation176_spill] sm:$0xff] %v4539_v27  ;;  %v4550_v59 = vmul.f32 %v4539_v27, %v4414_v13  ;;  %v4552_v18 = vmul.f32 %v3117_v9, %v1006_v45  ;;  %3122 = vrsqrt.f32 %v1041_v29  ;;  %v1042_v60 = vadd.f32 1e-05, %v978_v37  ;;  %v1008_v13 = vld [vmem:[%s5566_s4 + $0xd0] sm:$0xff] }
 0x20f   :  { %v916_v1 = vmul.f32 %v4546_v23, %v4546_v23  ;;  %v883_v15 = vmul.f32 0.00390625, %v815_v46  ;;  %v818_v21 = vpop.xlane.xlu0 %817 }
 0x210   :  { %5857 = vst [vmem:[#allocation178_spill] sm:$0xff] %v4550_v59  ;;  %v4567_v9 = vmul.f32 %v4552_v18, %v4419_v49  ;;  %3124 = vrsqrt.f32 %v1042_v60  ;;  %v884_v37 = vmul.f32 0.00390625, %v818_v21 }
 0x211   :  { %v947_v45 = vsub.f32 %v883_v15, %v915_v54  ;;  %v661_v29 = vpop.xlane.xlu1 %660 }
 0x212   :  { %5859 = vst [vmem:[#allocation180_spill] sm:$0xff] %v4567_v9  ;;  %v948_v46 = vsub.f32 %v884_v37, %v916_v1  ;;  %v853_v26 = vmul.f32 0.00390625, %v661_v29 }
 0x213   :  { %v979_v59 = vmax.f32 %v947_v45, 0.0 }
 0x214   :  { %v3119_v49 = vpop.eup %3118  ;;  %v980_v31 = vmax.f32 %v948_v46, 0.0  ;;  %v917_v37 = vmul.f32 %v853_v26, %v853_v26 }
 0x215   :  { %v3121_v60 = vpop.eup %3120  ;;  %v4577_v21 = vmul.f32 %v3119_v49, %v1007_v12  ;;  %v1043_v54 = vadd.f32 1e-05, %v979_v59  ;;  %v821_v15 = vpop.xlane.xlu1 %820  ;;  %v4593_v12 = vld [vmem:[%s5567_s5 + $0xd0] sm:$0xff] }
 0x216   :  { %v4584_v27 = vmul.f32 %v3121_v60, %v1008_v13  ;;  %v1044_v1 = vadd.f32 1e-05, %v980_v31  ;;  %v885_v29 = vmul.f32 0.00390625, %v821_v15 }
 0x217   :  { %v4588_v45 = vmul.f32 %v4577_v21, %v4457_v35  ;;  %3126 = vrsqrt.f32 %v1043_v54  ;;  %v1009_v35 = vld [vmem:[%s5566_s4 + $0xd8] sm:$0xff]  ;;  %v1010_v54 = vld [vmem:[%s5566_s4 + $0xe0] sm:$0xff] }
 0x218   :  { %v4597_v59 = vmul.f32 %v4584_v27, %v4466_v3  ;;  %3128 = vrsqrt.f32 %v1044_v1  ;;  %v949_v13 = vsub.f32 %v885_v29, %v917_v37  ;;  %v4614_v37 = vld [vmem:[%s5567_s5 + $0xd8] sm:$0xff] }
 0x219   :  { %5861 = vst [vmem:[#allocation182_spill] sm:$0xff] %v4588_v45  ;;  %v1013_v45 = vld [vmem:[%s5566_s4 + $0xf8] sm:$0xff] }
 0x21a   :  { %v981_v49 = vmax.f32 %v949_v13, 0.0  ;;  %v4625_v13 = vld [vmem:[%s5567_s5 + $0xe0] sm:$0xff] }
 0x21b   :  { %v3123_v60 = vpop.eup %3122 }
 0x21c   :  { %v4609_v3 = vmul.f32 %v3123_v60, %v1009_v35  ;;  %v1045_v15 = vadd.f32 1e-05, %v981_v49  ;;  %v1139_v35 = vld [vmem:[%s5567_s5 + $0xe8] sm:$0xff] }
 0x21d   :  { %v3125_v1 = vpop.eup %3124 }
 0x21e   :  { %v4618_v29 = vmul.f32 %v4609_v3, %v4494_v8  ;;  %v4620_v31 = vmul.f32 %v3125_v1, %v1010_v54  ;;  %3130 = vrsqrt.f32 %v1045_v15  ;;  %v1011_v8 = vld [vmem:[%s5566_s4 + $0xe8] sm:$0xff]  ;;  %v1012_v54 = vld [vmem:[%s5566_s4 + $0xf0] sm:$0xff] }
 0x220   :  { %v4631_v49 = vmul.f32 %v4620_v31, %v4499_v50 }
 0x222   :  { %v1202_v60 = vsub.f32 %v4625_v13, %v4631_v49  ;;  %v1140_v13 = vld [vmem:[%s5567_s5 + $0xf0] sm:$0xff] }
 0x224   :  { %v3127_v15 = vpop.eup %3126 }
 0x225   :  { %v3129_v1 = vpop.eup %3128  ;;  %v1107_v46 = vmul.f32 %v3127_v15, %v1011_v8 }
 0x226   :  { %v1108_v50 = vmul.f32 %v3129_v1, %v1012_v54  ;;  %v1141_v54 = vld [vmem:[%s5567_s5 + $0xf8] sm:$0xff] }
 0x227   :  { %v1171_v9 = vmul.f32 %v1107_v46, %v4537_v38 }
 0x228   :  { %v1172_v49 = vmul.f32 %v1108_v50, %v4546_v23 }
 0x229   :  { %v1203_v62 = vsub.f32 %v1139_v35, %v1171_v9 }
 0x22a   :  { %v1204_v2 = vsub.f32 %v1140_v13, %v1172_v49 }
 0x22b   :  { %v3131_v8 = vpop.eup %3130 }
 0x22c   :  { %v1109_v15 = vmul.f32 %v3131_v8, %v1013_v45 }
 0x22e   :  { %v1173_v1 = vmul.f32 %v1109_v15, %v853_v26 }
 0x230   :  { %v1205_v38 = vsub.f32 %v1141_v54, %v1173_v1 }
 0x231   :  { %3196 = dma.done.wait [#allocation4], 8192 }
 0x232   :  { %3197 = vsyncadd [#allocation4], 4294959104  ;;  %v5862_v23 = vsub.f32 %v4359_v28, %v4365_v40  ;;  %1282 = vperm.xlu0 %3132, %v4348_v4   ;;  %v5863_v9 = vsub.f32 %v4384_v36, %v4390_v34  ;;  %v5864_v26 = vsub.f32 %v4346_v51, %v4354_v55  ;;  %v5865_v28 = vsub.f32 %v4317_v0, %v4327_v61  ;;  %v5894_v0 = vld [vmem:[#allocation179_spill] sm:$0xff]  ;;  %v5895_v61 = vld [vmem:[#allocation180_spill] sm:$0xff] }
 0x233   :  { %v5866_v36 = vsub.f32 %v4304_v30, %v4310_v42  ;;  %v5870_v30 = vsub.f32 %v4226_v44, %v4232_v6  ;;  %v5875_v44 = vld [vmem:[#allocation153_spill] sm:$0xff]  ;;  %v5876_v6 = vld [vmem:[#allocation154_spill] sm:$0xff]  ;;  %v5896_v51 = vsub.f32 %v5894_v0, %v5895_v61  ;;  %v5897_v4 = vld [vmem:[#allocation176_spill] sm:$0xff] }
 0x234   :  { %1506 = vperm.xlu1 %3133, %v5862_v23   ;;  %v5898_v55 = vld [vmem:[#allocation172_spill] sm:$0xff]  ;;  %v5899_v40 = vld [vmem:[#allocation177_spill] sm:$0xff]  ;;  %v5907_v45 = vld [vmem:[#allocation171_spill] sm:$0xff] }
 0x235   :  { %v5915_v35 = vld [vmem:[#allocation165_spill] sm:$0xff]  ;;  %v5918_v13 = vld [vmem:[#allocation162_spill] sm:$0xff]  ;;  %v5919_v49 = vld [vmem:[#allocation163_spill] sm:$0xff] }
 0x236   :  { %1287 = vperm.xlu0 %3132, %v4379_v17   ;;  %v5900_v17 = vld [vmem:[#allocation178_spill] sm:$0xff]  ;;  %v5920_v8 = vsub.f32 %v5918_v13, %v5919_v49  ;;  %v5922_v54 = vld [vmem:[#allocation155_spill] sm:$0xff]  ;;  %v5923_v23 = vld [vmem:[#allocation108_spill] sm:$0xff] }
 0x237   :  { %v5901_v34 = vsub.f32 %v5899_v40, %v5900_v17  ;;  %v5938_v61 = vld [vmem:[#allocation107_spill] sm:$0xff]  ;;  %v5940_v40 = vld [vmem:[#allocation105_spill] sm:$0xff] }
 0x238   :  { %1511 = vperm.xlu1 %3133, %v5863_v9   ;;  %v5944_v49 = vld [vmem:[#allocation41_spill] sm:$0xff] }
 0x23a   :  { %1272 = vperm.xlu0 %3132, %v4312_v41   ;;  %v5868_v41 = vsub.f32 %v4266_v7, %v4274_v57  ;;  %v5890_v57 = vsub.f32 %v4593_v12, %v4597_v59  ;;  %v5908_v12 = vld [vmem:[#allocation173_spill] sm:$0xff] }
 0x23b   :  { %v5909_v59 = vsub.f32 %v5907_v45, %v5908_v12 }
 0x23c   :  { %1277 = vperm.xlu1 %3133, %v4341_v63   ;;  %v5867_v63 = vsub.f32 %v4279_v25, %v4285_v48  ;;  %v5891_v25 = vld [vmem:[#allocation181_spill] sm:$0xff]  ;;  %v5892_v48 = vld [vmem:[#allocation182_spill] sm:$0xff] }
 0x23d   :  { %v5893_v42 = vsub.f32 %v5891_v25, %v5892_v48  ;;  %v5936_v25 = vld [vmem:[#allocation46_spill] sm:$0xff] }
 0x23e   :  { %1496 = vperm.xlu0 %3132, %v5865_v28  }
 0x240   :  { %1501 = vperm.xlu1 %3133, %v5864_v26   ;;  %v5924_v26 = vld [vmem:[#allocation109_spill] sm:$0xff] }
 0x242   :  { %1262 = vperm.xlu0 %3132, %v4268_v5   ;;  %v5889_v5 = vsub.f32 %v4614_v37, %v4618_v29  ;;  %v5913_v37 = vld [vmem:[#allocation164_spill] sm:$0xff] }
 0x243   :  { %v5914_v29 = vld [vmem:[#allocation160_spill] sm:$0xff] }
 0x244   :  { %1267 = vperm.xlu1 %3133, %v4299_v43   ;;  %v5869_v43 = vsub.f32 %v4237_v20, %v4243_v22  ;;  %v5884_v22 = vld [vmem:[#allocation149_spill] sm:$0xff] }
 0x246   :  { %1486 = vperm.xlu0 %3132, %v5867_v63   ;;  %v5926_v63 = vld [vmem:[#allocation161_spill] sm:$0xff] }
 0x248   :  { %1491 = vperm.xlu1 %3133, %v5866_v36   ;;  %v5925_v36 = vld [vmem:[#allocation159_spill] sm:$0xff] }
 0x24a   :  { %1252 = vperm.xlu0 %3132, %v4228_v53   ;;  %v5872_v53 = vsub.f32 %v4186_v16, %v4194_v58  ;;  %v5882_v16 = vld [vmem:[#allocation144_spill] sm:$0xff] }
 0x24b   :  { %v5883_v58 = vld [vmem:[#allocation148_spill] sm:$0xff] }
 0x24c   :  { %1257 = vperm.xlu1 %3133, %v4261_v24   ;;  %v5871_v24 = vsub.f32 %v4199_v19, %v4205_v10  ;;  %v5877_v19 = vsub.f32 %v5875_v44, %v5876_v6  ;;  %v5878_v10 = vld [vmem:[#allocation151_spill] sm:$0xff]  ;;  %v5931_v6 = vld [vmem:[#allocation110_spill] sm:$0xff] }
 0x24e   :  { %1476 = vperm.xlu0 %3132, %v5869_v43   ;;  %v5928_v43 = vld [vmem:[#allocation156_spill] sm:$0xff] }
 0x250   :  { %1481 = vperm.xlu1 %3133, %v5868_v41   ;;  %v5927_v41 = vsub.f32 %v5925_v36, %v5926_v63  ;;  %v5946_v36 = vld [vmem:[#allocation103_spill] sm:$0xff] }
 0x252   :  { %1242 = vperm.xlu0 %3132, %v4188_v32   ;;  %v5874_v32 = vld [vmem:[#allocation150_spill] sm:$0xff] }
 0x254   :  { %1247 = vperm.xlu1 %3133, %v4221_v39   ;;  %v5873_v39 = vsub.f32 %v4157_v52, %v4167_v47  ;;  %v5885_v52 = vsub.f32 %v5883_v58, %v5884_v22  ;;  %v5886_v47 = vld [vmem:[#allocation145_spill] sm:$0xff] }
 0x256   :  { %1466 = vperm.xlu0 %3132, %v5871_v24  }
 0x258   :  { %1471 = vperm.xlu1 %3133, %v5870_v30   ;;  %v5929_v30 = vld [vmem:[#allocation157_spill] sm:$0xff] }
 0x259   :  { %v5930_v24 = vsub.f32 %v5928_v43, %v5929_v30  ;;  %v5948_v30 = vld [vmem:[#allocation101_spill] sm:$0xff] }
 0x25a   :  { %1232 = vperm.xlu0 %3132, %v4152_v14   ;;  %v5881_v14 = vld [vmem:[#allocation147_spill] sm:$0xff] }
 0x25c   :  { %1237 = vperm.xlu1 %3133, %v4181_v56   ;;  %v5879_v56 = vld [vmem:[#allocation152_spill] sm:$0xff] }
 0x25d   :  { %v5880_v20 = vsub.f32 %v5878_v10, %v5879_v56  ;;  %v5932_v10 = vld [vmem:[#allocation111_spill] sm:$0xff] }
 0x25e   :  { %1456 = vperm.xlu0 %3132, %v5873_v39  }
 0x260   :  { %1461 = vperm.xlu1 %3133, %v5872_v53  }
 0x262   :  { %1222 = vperm.xlu0 %3132, %v5874_v32  }
 0x264   :  { %1227 = vperm.xlu1 %3133, %v4139_v11   ;;  %v5887_v11 = vld [vmem:[#allocation146_spill] sm:$0xff] }
 0x265   :  { %v5888_v7 = vsub.f32 %v5886_v47, %v5887_v11  ;;  %v5934_v11 = vld [vmem:[#allocation44_spill] sm:$0xff] }
 0x266   :  { %1446 = vperm.xlu0 %3132, %v5880_v20   ;;  %v3136_v20 = vld [vmem:[%s5565_s3 + $0x4] ss:$8 sps:$4 sm:$0xff]  }
 0x267   :  { %2010 = vmatprep.mubr.bf16.mxu1 %v3136_v20  ;;  %v5949_v20 = vld [vmem:[#allocation38_spill] sm:$0xff] }
 0x268   :  { %1451 = vperm.xlu1 %3133, %v5877_v19  }
 0x26a   :  { %1212 = vperm.xlu0 %3132, %v5882_v16  }
 0x26c   :  { %1217 = vperm.xlu1 %3133, %v5881_v14  }
 0x26e   :  { %1436 = vperm.xlu0 %3132, %v5888_v7  }
 0x270   :  { %1441 = vperm.xlu1 %3133, %v5885_v52   ;;  %v5933_v52 = vld [vmem:[#allocation45_spill] sm:$0xff] }
 0x272   :  { %1362 = vperm.xlu0 %3132, %v1108_v50  }
 0x274   :  { %1367 = vperm.xlu1 %3133, %v1109_v15   ;;  %v5921_v15 = vld [vmem:[#allocation158_spill] sm:$0xff] }
 0x276   :  { %1586 = vperm.xlu0 %3132, %v1204_v2   ;;  %v5902_v2 = vld [vmem:[#allocation174_spill] sm:$0xff] }
 0x278   :  { %1591 = vperm.xlu1 %3133, %v1205_v38  }
 0x27a   :  { %1352 = vperm.xlu0 %3132, %v4620_v31   ;;  %v5910_v31 = vld [vmem:[#allocation168_spill] sm:$0xff] }
 0x27c   :  { %1357 = vperm.xlu1 %3133, %v1107_v46   ;;  %v5911_v46 = vld [vmem:[#allocation169_spill] sm:$0xff] }
 0x27e   :  { %1576 = vperm.xlu0 %3132, %v1202_v60   ;;  %v5916_v60 = vld [vmem:[#allocation166_spill] sm:$0xff] }
 0x27f   :  { %v5917_v50 = vsub.f32 %v5915_v35, %v5916_v60  ;;  %v5942_v35 = vld [vmem:[#allocation43_spill] sm:$0xff] }
 0x280   :  { %1581 = vperm.xlu1 %3133, %v1203_v62  }
 0x282   :  { %1342 = vperm.xlu0 %3132, %v4584_v27   ;;  %v5903_v27 = vld [vmem:[#allocation175_spill] sm:$0xff] }
 0x283   :  { %v5904_v62 = vsub.f32 %v5902_v2, %v5903_v27 }
 0x284   :  { %1347 = vperm.xlu1 %3133, %v4609_v3   ;;  %v5912_v3 = vsub.f32 %v5910_v31, %v5911_v46 }
 0x286   :  { %1566 = vperm.xlu0 %3132, %v5890_v57  }
 0x288   :  { %1571 = vperm.xlu1 %3133, %v5889_v5   ;;  %v5935_v5 = vld [vmem:[#allocation47_spill] sm:$0xff] }
 0x28a   :  { %1332 = vperm.xlu0 %3132, %v4552_v18   ;;  %v5905_v18 = vld [vmem:[#allocation170_spill] sm:$0xff] }
 0x28c   :  { %1337 = vperm.xlu1 %3133, %v4577_v21   ;;  %v5906_v21 = vld [vmem:[#allocation167_spill] sm:$0xff] }
 0x28e   :  { %1556 = vperm.xlu0 %3132, %v5896_v51  }
 0x290   :  { %1561 = vperm.xlu1 %3133, %v5893_v42   ;;  %v5937_v42 = vld [vmem:[#allocation106_spill] sm:$0xff] }
 0x292   :  { %1322 = vperm.xlu0 %3132, %v5898_v55  }
 0x294   :  { %1327 = vperm.xlu1 %3133, %v5897_v4   ;;  %v5939_v4 = vld [vmem:[#allocation104_spill] sm:$0xff] }
 0x296   :  { %1546 = vperm.xlu0 %3132, %v5904_v62  }
 0x298   :  { %1551 = vperm.xlu1 %3133, %v5901_v34  }
 0x29a   :  { %1312 = vperm.xlu0 %3132, %v5906_v21  }
 0x29c   :  { %1317 = vperm.xlu1 %3133, %v5905_v18  }
 0x29e   :  { %1536 = vperm.xlu0 %3132, %v5912_v3  }
 0x2a0   :  { %1541 = vperm.xlu1 %3133, %v5909_v59  }
 0x2a2   :  { %1302 = vperm.xlu0 %3132, %v5914_v29  }
 0x2a4   :  { %1307 = vperm.xlu1 %3133, %v5913_v37   ;;  %v5941_v37 = vld [vmem:[#allocation42_spill] sm:$0xff] }
 0x2a6   :  { %1526 = vperm.xlu0 %3132, %v5920_v8  }
 0x2a8   :  { %1531 = vperm.xlu1 %3133, %v5917_v50   ;;  %v5943_v50 = vld [vmem:[#allocation40_spill] sm:$0xff] }
 0x2aa   :  { %1292 = vperm.xlu0 %3132, %v5922_v54  }
 0x2ac   :  { %1297 = vperm.xlu1 %3133, %v5921_v15  }
 0x2ad   :  { %v1283_v38 = vpop.permute.xlu0 %1282 }
 0x2ae   :  { %v1398_v9 = vmul.f32 %v1283_v38, %v5923_v23  ;;  %v1399_v28 = vmul.f32 %v1283_v38, %v5924_v26  ;;  %1516 = vperm.xlu0 %3132, %v5930_v24   ;;  %v5945_v26 = vld [vmem:[#allocation102_spill] sm:$0xff] }
 0x2af   :  { %v1507_v1 = vpop.permute.xlu1 %1506 }
 0x2b0   :  { %1521 = vperm.xlu1 %3133, %v5927_v41   ;;  %v1623_v32 = vadd.f32 %v1507_v1, %v1399_v28  ;;  %v1622_v44 = vadd.f32 %v1507_v1, %v1398_v9  ;;  %v5947_v41 = vld [vmem:[#allocation100_spill] sm:$0xff] }
 0x2b1   :  { %v1288_v39 = vpop.permute.xlu0 %1287 }
 0x2b2   :  { %v1400_v19 = vmul.f32 %v1288_v39, %v5931_v6  ;;  %v1401_v56 = vmul.f32 %v1288_v39, %v5932_v10  ;;  %v1751_v47 = vadd.f32 %v1623_v32, %v5933_v52  ;;  %v1750_v7 = vadd.f32 %v1622_v44, %v5934_v11 }
 0x2b3   :  { %v1512_v53 = vpop.permute.xlu1 %1511 }
 0x2b4   :  { %v1625_v14 = vadd.f32 %v1512_v53, %v1401_v56  ;;  %v1624_v16 = vadd.f32 %v1512_v53, %v1400_v19  ;;  %v1815_v27 = vmax.f32 %v1751_v47, 0.0  ;;  %v1814_v18 = vmax.f32 %v1750_v7, 0.0  ;;  %v5952_v47 = vld [vmem:[#allocation37_spill] sm:$0xff] }
 0x2b5   :  { %v1273_v22 = vpop.permute.xlu0 %1272 }
 0x2b6   :  { %v1753_v57 = vadd.f32 %v1625_v14, %v5935_v5  ;;  %v1752_v48 = vadd.f32 %v1624_v16, %v5936_v25  ;;  %v1394_v55 = vmul.f32 %v1273_v22, %v5939_v4  ;;  %v1395_v17 = vmul.f32 %v1273_v22, %v5940_v40  ;;  %v5950_v16 = vld [vmem:[#allocation39_spill] sm:$0xff]  ;;  %v5951_v22 = vld [vmem:[#allocation36_spill] sm:$0xff] }
 0x2b7   :  { %v1278_v58 = vpop.permute.xlu1 %1277 }
 0x2b8   :  { %v1396_v0 = vmul.f32 %v1278_v58, %v5937_v42  ;;  %v1397_v51 = vmul.f32 %v1278_v58, %v5938_v61  ;;  %v1817_v62 = vmax.f32 %v1753_v57, 0.0  ;;  %v1816_v21 = vmax.f32 %v1752_v48, 0.0 }
 0x2b9   :  { %v1497_v2 = vpop.permute.xlu0 %1496 }
 0x2ba   :  { %v1618_v59 = vadd.f32 %v1497_v2, %v1394_v55  ;;  %v1619_v31 = vadd.f32 %v1497_v2, %v1395_v17  ;;  %v1865_v46 = vpack.c.bf16 %v1817_v62, %v1815_v27  ;;  %v1864_v3 = vpack.c.bf16 %v1816_v21, %v1814_v18  ;;  %v5955_v55 = vld [vmem:[#allocation96_spill] sm:$0xff]  ;;  %v5956_v17 = vld [vmem:[#allocation97_spill] sm:$0xff] }
 0x2bb   :  { %v1502_v34 = vpop.permute.xlu1 %1501 }
 0x2bc   :  { %v1620_v45 = vadd.f32 %v1502_v34, %v1396_v0  ;;  %v1621_v12 = vadd.f32 %v1502_v34, %v1397_v51  ;;  %v1746_v13 = vadd.f32 %v1618_v59, %v5943_v50  ;;  %v1747_v8 = vadd.f32 %v1619_v31, %v5944_v49  ;;  %1978 = vmatprep.subr.bf16.mxu1 %v1865_v46  ;;  %v5953_v0 = vld [vmem:[#allocation98_spill] sm:$0xff]  ;;  %v5954_v51 = vld [vmem:[#allocation99_spill] sm:$0xff] }
 0x2bd   :  { %v1263_v54 = vpop.permute.xlu0 %1262  ;;  %1979 = vmatpush1.bf16.msra.mxu1 %v1864_v3  ;;  %v5957_v31 = vld [vmem:[#allocation34_spill] sm:$0xff]  ;;  %v5958_v3 = vld [vmem:[#allocation35_spill] sm:$0xff] }
 0x2be   :  { %v1748_v29 = vadd.f32 %v1620_v45, %v5941_v37  ;;  %v1749_v60 = vadd.f32 %v1621_v12, %v5942_v35  ;;  %v1810_v23 = vmax.f32 %v1746_v13, 0.0  ;;  %v1811_v9 = vmax.f32 %v1747_v8, 0.0 }
 0x2bf   :  { %v1268_v15 = vpop.permute.xlu1 %1267  ;;  %v1390_v43 = vmul.f32 %v1263_v54, %v5947_v41  ;;  %v1391_v24 = vmul.f32 %v1263_v54, %v5948_v30 }
 0x2c0   :  { %v1812_v1 = vmax.f32 %v1748_v29, 0.0  ;;  %v1813_v38 = vmax.f32 %v1749_v60, 0.0  ;;  %v1392_v28 = vmul.f32 %v1268_v15, %v5945_v26  ;;  %v1393_v63 = vmul.f32 %v1268_v15, %v5946_v36  ;;  %v5959_v29 = vld [vmem:[#allocation32_spill] sm:$0xff]  ;;  %v5960_v60 = vld [vmem:[#allocation33_spill] sm:$0xff] }
 0x2c1   :  { %v1487_v44 = vpop.permute.xlu0 %1486 }
 0x2c2   :  { %v1863_v53 = vpack.c.bf16 %v1813_v38, %v1811_v9  ;;  %v1862_v39 = vpack.c.bf16 %v1812_v1, %v1810_v23  ;;  %v1614_v10 = vadd.f32 %v1487_v44, %v1390_v43  ;;  %v1615_v56 = vadd.f32 %v1487_v44, %v1391_v24  ;;  %v5961_v38 = vld [vmem:[#allocation94_spill] sm:$0xff]  ;;  %v5962_v9 = vld [vmem:[#allocation95_spill] sm:$0xff] }
 0x2c3   :  { %v1492_v32 = vpop.permute.xlu1 %1491 }
 0x2c4   :  { %v1616_v6 = vadd.f32 %v1492_v32, %v1392_v28  ;;  %v1617_v19 = vadd.f32 %v1492_v32, %v1393_v63  ;;  %1980 = vmatprep.subr.bf16.mxu1 %v1863_v53  ;;  %v1742_v52 = vadd.f32 %v1614_v10, %v5951_v22  ;;  %v1743_v11 = vadd.f32 %v1615_v56, %v5952_v47  ;;  %v5963_v28 = vld [vmem:[#allocation92_spill] sm:$0xff]  ;;  %v5964_v63 = vld [vmem:[#allocation93_spill] sm:$0xff]  ;;  %v5966_v56 = vld [vmem:[#allocation31_spill] sm:$0xff] }
 0x2c5   :  { %1981 = vmatpush1.bf16.msra.mxu1 %v1862_v39  ;;  %v1253_v5 = vpop.permute.xlu0 %1252 }
 0x2c6   :  { %v1744_v14 = vadd.f32 %v1616_v6, %v5949_v20  ;;  %v1745_v58 = vadd.f32 %v1617_v19, %v5950_v16  ;;  %v1806_v48 = vmax.f32 %v1742_v52, 0.0  ;;  %v1807_v42 = vmax.f32 %v1743_v11, 0.0  ;;  %v5965_v19 = vld [vmem:[#allocation30_spill] sm:$0xff] }
 0x2c7   :  { %v1258_v7 = vpop.permute.xlu1 %1257  ;;  %v1386_v40 = vmul.f32 %v1253_v5, %v5955_v55  ;;  %v1387_v34 = vmul.f32 %v1253_v5, %v5956_v17 }
 0x2c8   :  { %v1808_v57 = vmax.f32 %v1744_v14, 0.0  ;;  %v1809_v25 = vmax.f32 %v1745_v58, 0.0  ;;  %v1388_v61 = vmul.f32 %v1258_v7, %v5953_v0  ;;  %v1389_v4 = vmul.f32 %v1258_v7, %v5954_v51  ;;  %v5967_v14 = vld [vmem:[#allocation28_spill] sm:$0xff]  ;;  %v5968_v58 = vld [vmem:[#allocation29_spill] sm:$0xff] }
 0x2c9   :  { %v1477_v18 = vpop.permute.xlu0 %1476 }
 0x2ca   :  { %v1861_v2 = vpack.c.bf16 %v1809_v25, %v1807_v42  ;;  %v1860_v27 = vpack.c.bf16 %v1808_v57, %v1806_v48  ;;  %v1610_v12 = vadd.f32 %v1477_v18, %v1386_v40  ;;  %v1611_v59 = vadd.f32 %v1477_v18, %v1387_v34  ;;  %v5969_v25 = vld [vmem:[#allocation90_spill] sm:$0xff]  ;;  %v5970_v42 = vld [vmem:[#allocation91_spill] sm:$0xff] }
 0x2cb   :  { %v1482_v62 = vpop.permute.xlu1 %1481 }
 0x2cc   :  { %v1612_v21 = vadd.f32 %v1482_v62, %v1388_v61  ;;  %v1613_v45 = vadd.f32 %v1482_v62, %v1389_v4  ;;  %1982 = vmatprep.subr.bf16.mxu1 %v1861_v2  ;;  %v1738_v35 = vadd.f32 %v1610_v12, %v5959_v29  ;;  %v1739_v50 = vadd.f32 %v1611_v59, %v5960_v60  ;;  %v5971_v61 = vld [vmem:[#allocation88_spill] sm:$0xff]  ;;  %v5972_v4 = vld [vmem:[#allocation89_spill] sm:$0xff]  ;;  %v5974_v59 = vld [vmem:[#allocation27_spill] sm:$0xff] }
 0x2cd   :  { %1983 = vmatpush1.bf16.msra.mxu1 %v1860_v27  ;;  %v1243_v49 = vpop.permute.xlu0 %1242 }
 0x2ce   :  { %v1740_v46 = vadd.f32 %v1612_v21, %v5957_v31  ;;  %v1741_v37 = vadd.f32 %v1613_v45, %v5958_v3  ;;  %v1802_v54 = vmax.f32 %v1738_v35, 0.0  ;;  %v1803_v1 = vmax.f32 %v1739_v50, 0.0  ;;  %v5973_v45 = vld [vmem:[#allocation26_spill] sm:$0xff] }
 0x2cf   :  { %v1248_v13 = vpop.permute.xlu1 %1247  ;;  %v1382_v36 = vmul.f32 %v1243_v49, %v5963_v28  ;;  %v1383_v41 = vmul.f32 %v1243_v49, %v5964_v63 }
 0x2d0   :  { %v1804_v8 = vmax.f32 %v1740_v46, 0.0  ;;  %v1805_v15 = vmax.f32 %v1741_v37, 0.0  ;;  %v1384_v23 = vmul.f32 %v1248_v13, %v5961_v38  ;;  %v1385_v26 = vmul.f32 %v1248_v13, %v5962_v9  ;;  %v5975_v46 = vld [vmem:[#allocation24_spill] sm:$0xff]  ;;  %v5976_v37 = vld [vmem:[#allocation25_spill] sm:$0xff] }
 0x2d1   :  { %v1467_v53 = vpop.permute.xlu0 %1466 }
 0x2d2   :  { %v1859_v43 = vpack.c.bf16 %v1805_v15, %v1803_v1  ;;  %v1858_v30 = vpack.c.bf16 %v1804_v8, %v1802_v54  ;;  %v1606_v44 = vadd.f32 %v1467_v53, %v1382_v36  ;;  %v1607_v6 = vadd.f32 %v1467_v53, %v1383_v41  ;;  %v5977_v15 = vld [vmem:[#allocation86_spill] sm:$0xff]  ;;  %v5978_v1 = vld [vmem:[#allocation87_spill] sm:$0xff] }
 0x2d3   :  { %v1472_v24 = vpop.permute.xlu1 %1471 }
 0x2d4   :  { %v1608_v39 = vadd.f32 %v1472_v24, %v1384_v23  ;;  %v1609_v32 = vadd.f32 %v1472_v24, %v1385_v26  ;;  %1984 = vmatprep.subr.bf16.mxu1 %v1859_v43  ;;  %v1734_v16 = vadd.f32 %v1606_v44, %v5967_v14  ;;  %v1735_v22 = vadd.f32 %v1607_v6, %v5968_v58  ;;  %v5979_v23 = vld [vmem:[#allocation84_spill] sm:$0xff]  ;;  %v5980_v26 = vld [vmem:[#allocation85_spill] sm:$0xff]  ;;  %v5982_v6 = vld [vmem:[#allocation23_spill] sm:$0xff] }
 0x2d5   :  { %1985 = vmatpush1.bf16.msra.mxu1 %v1858_v30  ;;  %v1233_v47 = vpop.permute.xlu0 %1232 }
 0x2d6   :  { %v1736_v10 = vadd.f32 %v1608_v39, %v5965_v19  ;;  %v1737_v20 = vadd.f32 %v1609_v32, %v5966_v56  ;;  %v1798_v5 = vmax.f32 %v1734_v16, 0.0  ;;  %v1799_v57 = vmax.f32 %v1735_v22, 0.0  ;;  %v5981_v32 = vld [vmem:[#allocation22_spill] sm:$0xff] }
 0x2d7   :  { %v1238_v52 = vpop.permute.xlu1 %1237  ;;  %v1378_v51 = vmul.f32 %v1233_v47, %v5971_v61  ;;  %v1379_v55 = vmul.f32 %v1233_v47, %v5972_v4 }
 0x2d8   :  { %v1800_v11 = vmax.f32 %v1736_v10, 0.0  ;;  %v1801_v7 = vmax.f32 %v1737_v20, 0.0  ;;  %v1380_v48 = vmul.f32 %v1238_v52, %v5969_v25  ;;  %v1381_v0 = vmul.f32 %v1238_v52, %v5970_v42  ;;  %v5983_v10 = vld [vmem:[#allocation20_spill] sm:$0xff]  ;;  %v5984_v20 = vld [vmem:[#allocation21_spill] sm:$0xff] }
 0x2d9   :  { %v1457_v2 = vpop.permute.xlu0 %1456 }
 0x2da   :  { %v1857_v40 = vpack.c.bf16 %v1801_v7, %v1799_v57  ;;  %v1856_v17 = vpack.c.bf16 %v1800_v11, %v1798_v5  ;;  %v1602_v18 = vadd.f32 %v1457_v2, %v1378_v51  ;;  %v1603_v21 = vadd.f32 %v1457_v2, %v1379_v55  ;;  %v5985_v7 = vld [vmem:[#allocation82_spill] sm:$0xff]  ;;  %v5986_v57 = vld [vmem:[#allocation83_spill] sm:$0xff] }
 0x2db   :  { %v1462_v34 = vpop.permute.xlu1 %1461 }
 0x2dc   :  { %v1604_v27 = vadd.f32 %v1462_v34, %v1380_v48  ;;  %v1605_v62 = vadd.f32 %v1462_v34, %v1381_v0  ;;  %1986 = vmatprep.subr.bf16.mxu1 %v1857_v40  ;;  %v1730_v3 = vadd.f32 %v1602_v18, %v5975_v46  ;;  %v1731_v29 = vadd.f32 %v1603_v21, %v5976_v37  ;;  %v5987_v48 = vld [vmem:[#allocation80_spill] sm:$0xff]  ;;  %v5988_v0 = vld [vmem:[#allocation81_spill] sm:$0xff]  ;;  %v5990_v21 = vld [vmem:[#allocation19_spill] sm:$0xff] }
 0x2dd   :  { %1987 = vmatpush1.bf16.msra.mxu1 %v1856_v17  ;;  %v1223_v60 = vpop.permute.xlu0 %1222 }
 0x2de   :  { %v1732_v12 = vadd.f32 %v1604_v27, %v5973_v45  ;;  %v1733_v31 = vadd.f32 %v1605_v62, %v5974_v59  ;;  %v1794_v49 = vmax.f32 %v1730_v3, 0.0  ;;  %v1795_v8 = vmax.f32 %v1731_v29, 0.0  ;;  %v5989_v62 = vld [vmem:[#allocation18_spill] sm:$0xff] }
 0x2df   :  { %v1228_v35 = vpop.permute.xlu1 %1227  ;;  %v1374_v9 = vmul.f32 %v1223_v60, %v5979_v23  ;;  %v1375_v28 = vmul.f32 %v1223_v60, %v5980_v26 }
 0x2e0   :  { %v1796_v50 = vmax.f32 %v1732_v12, 0.0  ;;  %v1797_v13 = vmax.f32 %v1733_v31, 0.0  ;;  %v1376_v54 = vmul.f32 %v1228_v35, %v5977_v15  ;;  %v1377_v38 = vmul.f32 %v1228_v35, %v5978_v1  ;;  %v5991_v12 = vld [vmem:[#allocation16_spill] sm:$0xff]  ;;  %v5992_v31 = vld [vmem:[#allocation17_spill] sm:$0xff] }
 0x2e1   :  { %v1447_v43 = vpop.permute.xlu0 %1446 }
 0x2e2   :  { %v1855_v36 = vpack.c.bf16 %v1797_v13, %v1795_v8  ;;  %v1854_v63 = vpack.c.bf16 %v1796_v50, %v1794_v49  ;;  %v1598_v53 = vadd.f32 %v1447_v43, %v1374_v9  ;;  %v1599_v39 = vadd.f32 %v1447_v43, %v1375_v28  ;;  %v5993_v13 = vld [vmem:[#allocation142_spill] sm:$0xff]  ;;  %v5994_v8 = vld [vmem:[#allocation143_spill] sm:$0xff] }
 0x2e3   :  { %v1452_v41 = vpop.permute.xlu1 %1451 }
 0x2e4   :  { %v1600_v30 = vadd.f32 %v1452_v41, %v1376_v54  ;;  %v1601_v24 = vadd.f32 %v1452_v41, %v1377_v38  ;;  %1988 = vmatprep.subr.bf16.mxu1 %v1855_v36  ;;  %v1726_v56 = vadd.f32 %v1598_v53, %v5983_v10  ;;  %v1727_v14 = vadd.f32 %v1599_v39, %v5984_v20  ;;  %v5995_v54 = vld [vmem:[#allocation140_spill] sm:$0xff]  ;;  %v5996_v38 = vld [vmem:[#allocation141_spill] sm:$0xff]  ;;  %v5998_v39 = vld [vmem:[#allocation79_spill] sm:$0xff] }
 0x2e5   :  { %1989 = vmatpush1.bf16.msra.mxu1 %v1854_v63  ;;  %v1213_v58 = vpop.permute.xlu0 %1212 }
 0x2e6   :  { %v1728_v44 = vadd.f32 %v1600_v30, %v5981_v32  ;;  %v1729_v19 = vadd.f32 %v1601_v24, %v5982_v6  ;;  %v1790_v47 = vmax.f32 %v1726_v56, 0.0  ;;  %v1791_v11 = vmax.f32 %v1727_v14, 0.0  ;;  %v5997_v24 = vld [vmem:[#allocation78_spill] sm:$0xff] }
 0x2e7   :  { %v1218_v16 = vpop.permute.xlu1 %1217  ;;  %v1370_v42 = vmul.f32 %v1213_v58, %v5987_v48  ;;  %v1371_v61 = vmul.f32 %v1213_v58, %v5988_v0 }
 0x2e8   :  { %v1792_v22 = vmax.f32 %v1728_v44, 0.0  ;;  %v1793_v52 = vmax.f32 %v1729_v19, 0.0  ;;  %v1372_v5 = vmul.f32 %v1218_v16, %v5985_v7  ;;  %v1373_v25 = vmul.f32 %v1218_v16, %v5986_v57  ;;  %v5999_v44 = vld [vmem:[#allocation76_spill] sm:$0xff]  ;;  %v6000_v19 = vld [vmem:[#allocation77_spill] sm:$0xff] }
 0x2e9   :  { %v1437_v40 = vpop.permute.xlu0 %1436 }
 0x2ea   :  { %v1853_v51 = vpack.c.bf16 %v1793_v52, %v1791_v11  ;;  %v1852_v4 = vpack.c.bf16 %v1792_v22, %v1790_v47  ;;  %v1594_v2 = vadd.f32 %v1437_v40, %v1370_v42  ;;  %v1595_v27 = vadd.f32 %v1437_v40, %v1371_v61  ;;  %v6001_v52 = vld [vmem:[#allocation138_spill] sm:$0xff]  ;;  %v6002_v11 = vld [vmem:[#allocation139_spill] sm:$0xff] }
 0x2eb   :  { %v1442_v55 = vpop.permute.xlu1 %1441 }
 0x2ec   :  { %v1596_v17 = vadd.f32 %v1442_v55, %v1372_v5  ;;  %v1597_v34 = vadd.f32 %v1442_v55, %v1373_v25  ;;  %1990 = vmatprep.subr.bf16.mxu1 %v1853_v51  ;;  %v1722_v59 = vadd.f32 %v1594_v2, %v5991_v12  ;;  %v1723_v46 = vadd.f32 %v1595_v27, %v5992_v31  ;;  %v6003_v5 = vld [vmem:[#allocation136_spill] sm:$0xff]  ;;  %v6004_v25 = vld [vmem:[#allocation137_spill] sm:$0xff]  ;;  %v6006_v27 = vld [vmem:[#allocation75_spill] sm:$0xff] }
 0x2ed   :  { %1991 = vmatpush1.bf16.msra.mxu1 %v1852_v4  ;;  %v1363_v37 = vpop.permute.xlu0 %1362 }
 0x2ee   :  { %v1724_v18 = vadd.f32 %v1596_v17, %v5989_v62  ;;  %v1725_v45 = vadd.f32 %v1597_v34, %v5990_v21  ;;  %v1786_v60 = vmax.f32 %v1722_v59, 0.0  ;;  %v1787_v50 = vmax.f32 %v1723_v46, 0.0  ;;  %v6005_v34 = vld [vmem:[#allocation74_spill] sm:$0xff] }
 0x2ef   :  { %v1368_v3 = vpop.permute.xlu1 %1367  ;;  %v1430_v1 = vmul.f32 %v1363_v37, %v5995_v54  ;;  %v1431_v23 = vmul.f32 %v1363_v37, %v5996_v38 }
 0x2f0   :  { %v1788_v29 = vmax.f32 %v1724_v18, 0.0  ;;  %v1789_v35 = vmax.f32 %v1725_v45, 0.0  ;;  %v1432_v49 = vmul.f32 %v1368_v3, %v5993_v13  ;;  %v1433_v15 = vmul.f32 %v1368_v3, %v5994_v8  ;;  %v6007_v18 = vld [vmem:[#allocation72_spill] sm:$0xff]  ;;  %v6008_v45 = vld [vmem:[#allocation73_spill] sm:$0xff] }
 0x2f1   :  { %v1587_v36 = vpop.permute.xlu0 %1586 }
 0x2f2   :  { %v1851_v9 = vpack.c.bf16 %v1789_v35, %v1787_v50  ;;  %v1850_v26 = vpack.c.bf16 %v1788_v29, %v1786_v60  ;;  %v1654_v43 = vadd.f32 %v1587_v36, %v1430_v1  ;;  %v1655_v30 = vadd.f32 %v1587_v36, %v1431_v23  ;;  %v6009_v35 = vld [vmem:[#allocation134_spill] sm:$0xff]  ;;  %v6010_v50 = vld [vmem:[#allocation135_spill] sm:$0xff] }
 0x2f3   :  { %v1592_v28 = vpop.permute.xlu1 %1591 }
 0x2f4   :  { %v1656_v63 = vadd.f32 %v1592_v28, %v1432_v49  ;;  %v1657_v41 = vadd.f32 %v1592_v28, %v1433_v15  ;;  %1992 = vmatprep.subr.bf16.mxu1 %v1851_v9  ;;  %v1782_v6 = vadd.f32 %v1654_v43, %v5999_v44  ;;  %v1783_v10 = vadd.f32 %v1655_v30, %v6000_v19  ;;  %v6011_v49 = vld [vmem:[#allocation132_spill] sm:$0xff]  ;;  %v6012_v15 = vld [vmem:[#allocation133_spill] sm:$0xff]  ;;  %v6014_v30 = vld [vmem:[#allocation71_spill] sm:$0xff] }
 0x2f5   :  { %1993 = vmatpush1.bf16.msra.mxu1 %v1850_v26  ;;  %v1353_v20 = vpop.permute.xlu0 %1352 }
 0x2f6   :  { %v1784_v53 = vadd.f32 %v1656_v63, %v5997_v24  ;;  %v1785_v32 = vadd.f32 %v1657_v41, %v5998_v39  ;;  %v1846_v58 = vmax.f32 %v1782_v6, 0.0  ;;  %v1847_v22 = vmax.f32 %v1783_v10, 0.0  ;;  %v6013_v41 = vld [vmem:[#allocation70_spill] sm:$0xff] }
 0x2f7   :  { %v1358_v56 = vpop.permute.xlu1 %1357  ;;  %v1426_v57 = vmul.f32 %v1353_v20, %v6003_v5  ;;  %v1427_v48 = vmul.f32 %v1353_v20, %v6004_v25 }
 0x2f8   :  { %v1848_v14 = vmax.f32 %v1784_v53, 0.0  ;;  %v1849_v16 = vmax.f32 %v1785_v32, 0.0  ;;  %v1428_v47 = vmul.f32 %v1358_v56, %v6001_v52  ;;  %v1429_v7 = vmul.f32 %v1358_v56, %v6002_v11  ;;  %v6015_v53 = vld [vmem:[#allocation68_spill] sm:$0xff]  ;;  %v6016_v32 = vld [vmem:[#allocation69_spill] sm:$0xff] }
 0x2f9   :  { %v1577_v51 = vpop.permute.xlu0 %1576 }
 0x2fa   :  { %v1881_v42 = vpack.c.bf16 %v1849_v16, %v1847_v22  ;;  %v1880_v0 = vpack.c.bf16 %v1848_v14, %v1846_v58  ;;  %v1650_v40 = vadd.f32 %v1577_v51, %v1426_v57  ;;  %v1651_v17 = vadd.f32 %v1577_v51, %v1427_v48  ;;  %v6017_v16 = vld [vmem:[#allocation130_spill] sm:$0xff]  ;;  %v6018_v22 = vld [vmem:[#allocation131_spill] sm:$0xff] }
 0x2fb   :  { %v1582_v61 = vpop.permute.xlu1 %1581 }
 0x2fc   :  { %v1652_v4 = vadd.f32 %v1582_v61, %v1428_v47  ;;  %v1653_v55 = vadd.f32 %v1582_v61, %v1429_v7  ;;  %1994 = vmatprep.subr.bf16.mxu1 %v1881_v42  ;;  %v1778_v21 = vadd.f32 %v1650_v40, %v6007_v18  ;;  %v1779_v12 = vadd.f32 %v1651_v17, %v6008_v45  ;;  %v6019_v47 = vld [vmem:[#allocation128_spill] sm:$0xff]  ;;  %v6020_v7 = vld [vmem:[#allocation129_spill] sm:$0xff]  ;;  %v6022_v17 = vld [vmem:[#allocation67_spill] sm:$0xff] }
 0x2fd   :  { %1995 = vmatpush2.bf16.msra.mxu1 %v1880_v0  ;;  %v1343_v31 = vpop.permute.xlu0 %1342 }
 0x2fe   :  { %v1780_v2 = vadd.f32 %v1652_v4, %v6005_v34  ;;  %v1781_v62 = vadd.f32 %v1653_v55, %v6006_v27  ;;  %v1842_v37 = vmax.f32 %v1778_v21, 0.0  ;;  %v1843_v29 = vmax.f32 %v1779_v12, 0.0  ;;  %v6021_v55 = vld [vmem:[#allocation66_spill] sm:$0xff] }
 0x2ff   :  { %v1348_v59 = vpop.permute.xlu1 %1347  ;;  %v1422_v8 = vmul.f32 %v1343_v31, %v6011_v49  ;;  %v1423_v54 = vmul.f32 %v1343_v31, %v6012_v15 }
 0x300   :  { %v1844_v46 = vmax.f32 %v1780_v2, 0.0  ;;  %v1845_v3 = vmax.f32 %v1781_v62, 0.0  ;;  %v1424_v60 = vmul.f32 %v1348_v59, %v6009_v35  ;;  %v1425_v13 = vmul.f32 %v1348_v59, %v6010_v50  ;;  %v6023_v2 = vld [vmem:[#allocation64_spill] sm:$0xff]  ;;  %v6024_v62 = vld [vmem:[#allocation65_spill] sm:$0xff] }
 0x301   :  { %v1567_v9 = vpop.permute.xlu0 %1566 }
 0x302   :  { %v1879_v1 = vpack.c.bf16 %v1845_v3, %v1843_v29  ;;  %v1878_v38 = vpack.c.bf16 %v1844_v46, %v1842_v37  ;;  %v1646_v36 = vadd.f32 %v1567_v9, %v1422_v8  ;;  %v1647_v63 = vadd.f32 %v1567_v9, %v1423_v54  ;;  %v6025_v3 = vld [vmem:[#allocation126_spill] sm:$0xff]  ;;  %v6026_v29 = vld [vmem:[#allocation127_spill] sm:$0xff] }
 0x303   :  { %v1572_v23 = vpop.permute.xlu1 %1571 }
 0x304   :  { %v1648_v26 = vadd.f32 %v1572_v23, %v1424_v60  ;;  %v1649_v28 = vadd.f32 %v1572_v23, %v1425_v13  ;;  %1996 = vmatprep.subr.bf16.mxu1 %v1879_v1  ;;  %v1774_v39 = vadd.f32 %v1646_v36, %v6015_v53  ;;  %v1775_v44 = vadd.f32 %v1647_v63, %v6016_v32  ;;  %v6027_v60 = vld [vmem:[#allocation124_spill] sm:$0xff]  ;;  %v6028_v13 = vld [vmem:[#allocation125_spill] sm:$0xff]  ;;  %v6030_v63 = vld [vmem:[#allocation63_spill] sm:$0xff] }
 0x305   :  { %1997 = vmatpush2.bf16.msra.mxu1 %v1878_v38  ;;  %v1333_v19 = vpop.permute.xlu0 %1332 }
 0x306   :  { %v1776_v43 = vadd.f32 %v1648_v26, %v6013_v41  ;;  %v1777_v24 = vadd.f32 %v1649_v28, %v6014_v30  ;;  %v1838_v20 = vmax.f32 %v1774_v39, 0.0  ;;  %v1839_v14 = vmax.f32 %v1775_v44, 0.0  ;;  %v6029_v28 = vld [vmem:[#allocation62_spill] sm:$0xff] }
 0x307   :  { %v1338_v6 = vpop.permute.xlu1 %1337  ;;  %v1418_v11 = vmul.f32 %v1333_v19, %v6019_v47  ;;  %v1419_v5 = vmul.f32 %v1333_v19, %v6020_v7 }
 0x308   :  { %v1840_v10 = vmax.f32 %v1776_v43, 0.0  ;;  %v1841_v56 = vmax.f32 %v1777_v24, 0.0  ;;  %v1420_v58 = vmul.f32 %v1338_v6, %v6017_v16  ;;  %v1421_v52 = vmul.f32 %v1338_v6, %v6018_v22  ;;  %v6031_v43 = vld [vmem:[#allocation60_spill] sm:$0xff]  ;;  %v6032_v24 = vld [vmem:[#allocation61_spill] sm:$0xff] }
 0x309   :  { %v1557_v42 = vpop.permute.xlu0 %1556 }
 0x30a   :  { %v1877_v57 = vpack.c.bf16 %v1841_v56, %v1839_v14  ;;  %v1876_v25 = vpack.c.bf16 %v1840_v10, %v1838_v20  ;;  %v1642_v51 = vadd.f32 %v1557_v42, %v1418_v11  ;;  %v1643_v4 = vadd.f32 %v1557_v42, %v1419_v5  ;;  %v6033_v56 = vld [vmem:[#allocation122_spill] sm:$0xff]  ;;  %v6034_v14 = vld [vmem:[#allocation123_spill] sm:$0xff] }
 0x30b   :  { %v1562_v48 = vpop.permute.xlu1 %1561 }
 0x30c   :  { %v1644_v0 = vadd.f32 %v1562_v48, %v1420_v58  ;;  %v1645_v61 = vadd.f32 %v1562_v48, %v1421_v52  ;;  %1998 = vmatprep.subr.bf16.mxu1 %v1877_v57  ;;  %v1770_v27 = vadd.f32 %v1642_v51, %v6023_v2  ;;  %v1771_v18 = vadd.f32 %v1643_v4, %v6024_v62  ;;  %v6035_v58 = vld [vmem:[#allocation120_spill] sm:$0xff]  ;;  %v6036_v52 = vld [vmem:[#allocation121_spill] sm:$0xff]  ;;  %v6038_v4 = vld [vmem:[#allocation59_spill] sm:$0xff] }
 0x30d   :  { %1999 = vmatpush2.bf16.msra.mxu1 %v1876_v25  ;;  %v1323_v45 = vpop.permute.xlu0 %1322 }
 0x30e   :  { %v1772_v40 = vadd.f32 %v1644_v0, %v6021_v55  ;;  %v1773_v34 = vadd.f32 %v1645_v61, %v6022_v17  ;;  %v1834_v31 = vmax.f32 %v1770_v27, 0.0  ;;  %v1835_v46 = vmax.f32 %v1771_v18, 0.0  ;;  %v6037_v61 = vld [vmem:[#allocation58_spill] sm:$0xff] }
 0x30f   :  { %v1328_v21 = vpop.permute.xlu1 %1327  ;;  %v1414_v50 = vmul.f32 %v1323_v45, %v6027_v60  ;;  %v1415_v49 = vmul.f32 %v1323_v45, %v6028_v13 }
 0x310   :  { %v1836_v12 = vmax.f32 %v1772_v40, 0.0  ;;  %v1837_v59 = vmax.f32 %v1773_v34, 0.0  ;;  %v1416_v37 = vmul.f32 %v1328_v21, %v6025_v3  ;;  %v1417_v35 = vmul.f32 %v1328_v21, %v6026_v29  ;;  %v6039_v40 = vld [vmem:[#allocation56_spill] sm:$0xff]  ;;  %v6040_v34 = vld [vmem:[#allocation57_spill] sm:$0xff] }
 0x311   :  { %v1547_v1 = vpop.permute.xlu0 %1546 }
 0x312   :  { %v1875_v8 = vpack.c.bf16 %v1837_v59, %v1835_v46  ;;  %v1874_v15 = vpack.c.bf16 %v1836_v12, %v1834_v31  ;;  %v1638_v9 = vadd.f32 %v1547_v1, %v1414_v50  ;;  %v1639_v26 = vadd.f32 %v1547_v1, %v1415_v49  ;;  %v6041_v59 = vld [vmem:[#allocation118_spill] sm:$0xff]  ;;  %v6042_v46 = vld [vmem:[#allocation119_spill] sm:$0xff] }
 0x313   :  { %v1552_v54 = vpop.permute.xlu1 %1551 }
 0x314   :  { %v1640_v38 = vadd.f32 %v1552_v54, %v1416_v37  ;;  %v1641_v23 = vadd.f32 %v1552_v54, %v1417_v35  ;;  %2000 = vmatprep.subr.bf16.mxu1 %v1875_v8  ;;  %v1766_v30 = vadd.f32 %v1638_v9, %v6031_v43  ;;  %v1767_v53 = vadd.f32 %v1639_v26, %v6032_v24  ;;  %v6043_v37 = vld [vmem:[#allocation116_spill] sm:$0xff]  ;;  %v6044_v35 = vld [vmem:[#allocation117_spill] sm:$0xff]  ;;  %v6046_v26 = vld [vmem:[#allocation55_spill] sm:$0xff] }
 0x315   :  { %2001 = vmatpush2.bf16.msra.mxu1 %v1874_v15  ;;  %v1313_v32 = vpop.permute.xlu0 %1312 }
 0x316   :  { %v1768_v36 = vadd.f32 %v1640_v38, %v6029_v28  ;;  %v1769_v41 = vadd.f32 %v1641_v23, %v6030_v63  ;;  %v1830_v19 = vmax.f32 %v1766_v30, 0.0  ;;  %v1831_v10 = vmax.f32 %v1767_v53, 0.0  ;;  %v6045_v23 = vld [vmem:[#allocation54_spill] sm:$0xff] }
 0x317   :  { %v1318_v39 = vpop.permute.xlu1 %1317  ;;  %v1410_v22 = vmul.f32 %v1313_v32, %v6035_v58  ;;  %v1411_v47 = vmul.f32 %v1313_v32, %v6036_v52 }
 0x318   :  { %v1832_v44 = vmax.f32 %v1768_v36, 0.0  ;;  %v1833_v6 = vmax.f32 %v1769_v41, 0.0  ;;  %v1412_v20 = vmul.f32 %v1318_v39, %v6033_v56  ;;  %v1413_v16 = vmul.f32 %v1318_v39, %v6034_v14  ;;  %v6047_v36 = vld [vmem:[#allocation52_spill] sm:$0xff]  ;;  %v6048_v41 = vld [vmem:[#allocation53_spill] sm:$0xff] }
 0x319   :  { %v1537_v57 = vpop.permute.xlu0 %1536 }
 0x31a   :  { %v1873_v11 = vpack.c.bf16 %v1833_v6, %v1831_v10  ;;  %v1872_v7 = vpack.c.bf16 %v1832_v44, %v1830_v19  ;;  %v1634_v42 = vadd.f32 %v1537_v57, %v1410_v22  ;;  %v1635_v0 = vadd.f32 %v1537_v57, %v1411_v47  ;;  %v6049_v6 = vld [vmem:[#allocation114_spill] sm:$0xff]  ;;  %v6050_v10 = vld [vmem:[#allocation115_spill] sm:$0xff] }
 0x31b   :  { %v1542_v5 = vpop.permute.xlu1 %1541 }
 0x31c   :  { %v1636_v25 = vadd.f32 %v1542_v5, %v1412_v20  ;;  %v1637_v48 = vadd.f32 %v1542_v5, %v1413_v16  ;;  %2002 = vmatprep.subr.bf16.mxu1 %v1873_v11  ;;  %v1762_v17 = vadd.f32 %v1634_v42, %v6039_v40  ;;  %v1763_v2 = vadd.f32 %v1635_v0, %v6040_v34  ;;  %v6051_v20 = vld [vmem:[#allocation112_spill] sm:$0xff]  ;;  %v6052_v16 = vld [vmem:[#allocation113_spill] sm:$0xff]  ;;  %v6054_v0 = vld [vmem:[#allocation51_spill] sm:$0xff] }
 0x31d   :  { %2003 = vmatpush2.bf16.msra.mxu1 %v1872_v7  ;;  %v1303_v62 = vpop.permute.xlu0 %1302 }
 0x31e   :  { %v1764_v51 = vadd.f32 %v1636_v25, %v6037_v61  ;;  %v1765_v55 = vadd.f32 %v1637_v48, %v6038_v4  ;;  %v1826_v45 = vmax.f32 %v1762_v17, 0.0  ;;  %v1827_v12 = vmax.f32 %v1763_v2, 0.0  ;;  %v6053_v48 = vld [vmem:[#allocation50_spill] sm:$0xff] }
 0x31f   :  { %v1308_v27 = vpop.permute.xlu1 %1307  ;;  %v1406_v29 = vmul.f32 %v1303_v62, %v6043_v37  ;;  %v1407_v60 = vmul.f32 %v1303_v62, %v6044_v35  ;;  %v3146_v37 = vld [vmem:[%s5565_s3 + $0x44] ss:$8 sps:$4 sm:$0xff]   ;;  %v3149_v35 = vld [vmem:[%s5565_s3 + $0x54] ss:$8 sps:$4 sm:$0xff]  }
 0x320   :  { %v1828_v18 = vmax.f32 %v1764_v51, 0.0  ;;  %v1829_v21 = vmax.f32 %v1765_v55, 0.0  ;;  %v1408_v31 = vmul.f32 %v1308_v27, %v6041_v59  ;;  %v1409_v3 = vmul.f32 %v1308_v27, %v6042_v46  ;;  %v6055_v51 = vld [vmem:[#allocation48_spill] sm:$0xff]  ;;  %v6056_v55 = vld [vmem:[#allocation49_spill] sm:$0xff]  ;;  %v3143_v46 = vld [vmem:[%s5565_s3 + $0x34] ss:$8 sps:$4 sm:$0xff]  }
 0x321   :  { %v1527_v8 = vpop.permute.xlu0 %1526  ;;  %v3140_v59 = vld [vmem:[%s5565_s3 + $0x24] ss:$8 sps:$4 sm:$0xff]  }
 0x322   :  { %v1871_v50 = vpack.c.bf16 %v1829_v21, %v1827_v12  ;;  %v1870_v13 = vpack.c.bf16 %v1828_v18, %v1826_v45  ;;  %v1630_v1 = vadd.f32 %v1527_v8, %v1406_v29  ;;  %v1631_v38 = vadd.f32 %v1527_v8, %v1407_v60  ;;  %v3134_v21 = vld [vmem:[%s5565_s3] ss:$8 sps:$4 sm:$0xff]   ;;  %v3137_v45 = vld [vmem:[%s5565_s3 + $0x14] ss:$8 sps:$4 sm:$0xff]   ;;  %v3139_v12 = vld [vmem:[%s5565_s3 + $0x10] ss:$8 sps:$4 sm:$0xff]  }
 0x323   :  { %v1532_v49 = vpop.permute.xlu1 %1531  ;;  %v3148_v29 = vld [vmem:[%s5565_s3 + $0x40] ss:$8 sps:$4 sm:$0xff]   ;;  %v3151_v60 = vld [vmem:[%s5565_s3 + $0x50] ss:$8 sps:$4 sm:$0xff]  }
 0x324   :  { %v1632_v15 = vadd.f32 %v1532_v49, %v1408_v31  ;;  %v1633_v54 = vadd.f32 %v1532_v49, %v1409_v3  ;;  %2004 = vmatprep.subr.bf16.mxu1 %v1871_v50  ;;  %v1758_v63 = vadd.f32 %v1630_v1, %v6047_v36  ;;  %v1759_v43 = vadd.f32 %v1631_v38, %v6048_v41  ;;  %v3142_v31 = vld [vmem:[%s5565_s3 + $0x20] ss:$8 sps:$4 sm:$0xff]   ;;  %v3145_v3 = vld [vmem:[%s5565_s3 + $0x30] ss:$8 sps:$4 sm:$0xff]   ;;  %v3152_v50 = vld [vmem:[%s5565_s3 + $0x64] ss:$8 sps:$4 sm:$0xff]  }
 0x325   :  { %2005 = vmatpush2.bf16.msra.mxu1 %v1870_v13  ;;  %v1293_v24 = vpop.permute.xlu0 %1292  ;;  %v3154_v13 = vld [vmem:[%s5565_s3 + $0x60] ss:$8 sps:$4 sm:$0xff]   ;;  %v3155_v49 = vld [vmem:[%s5565_s3 + $0x74] ss:$8 sps:$4 sm:$0xff]   ;;  %v3157_v8 = vld [vmem:[%s5565_s3 + $0x70] ss:$8 sps:$4 sm:$0xff]  }
 0x326   :  { %v1760_v9 = vadd.f32 %v1632_v15, %v6045_v23  ;;  %v1761_v28 = vadd.f32 %v1633_v54, %v6046_v26  ;;  %v1822_v32 = vmax.f32 %v1758_v63, 0.0  ;;  %v1823_v44 = vmax.f32 %v1759_v43, 0.0 }
 0x327   :  { %v1298_v30 = vpop.permute.xlu1 %1297  ;;  %v1402_v14 = vmul.f32 %v1293_v24, %v6051_v20  ;;  %v1403_v58 = vmul.f32 %v1293_v24, %v6052_v16 }
 0x328   :  { %v1824_v53 = vmax.f32 %v1760_v9, 0.0  ;;  %v1825_v39 = vmax.f32 %v1761_v28, 0.0  ;;  %v1404_v19 = vmul.f32 %v1298_v30, %v6049_v6  ;;  %v1405_v56 = vmul.f32 %v1298_v30, %v6050_v10 }
 0x329   :  { %v1517_v11 = vpop.permute.xlu0 %1516 }
 0x32a   :  { %v1869_v22 = vpack.c.bf16 %v1825_v39, %v1823_v44  ;;  %v1868_v52 = vpack.c.bf16 %v1824_v53, %v1822_v32  ;;  %v1626_v57 = vadd.f32 %v1517_v11, %v1402_v14  ;;  %v1627_v25 = vadd.f32 %v1517_v11, %v1403_v58 }
 0x32b   :  { %v1522_v47 = vpop.permute.xlu1 %1521 }
 0x32c   :  { %v1628_v7 = vadd.f32 %v1522_v47, %v1404_v19  ;;  %v1629_v5 = vadd.f32 %v1522_v47, %v1405_v56  ;;  %2006 = vmatprep.subr.bf16.mxu1 %v1869_v22  ;;  %v1754_v4 = vadd.f32 %v1626_v57, %v6055_v51  ;;  %v1755_v40 = vadd.f32 %v1627_v25, %v6056_v55 }
 0x32d   :  { %2007 = vmatpush2.bf16.msra.mxu1 %v1868_v52 }
 0x32e   :  { %v1756_v42 = vadd.f32 %v1628_v7, %v6053_v48  ;;  %v1757_v61 = vadd.f32 %v1629_v5, %v6054_v0  ;;  %v1818_v2 = vmax.f32 %v1754_v4, 0.0  ;;  %v1819_v27 = vmax.f32 %v1755_v40, 0.0 }
 0x330   :  { %v1820_v17 = vmax.f32 %v1756_v42, 0.0  ;;  %v1821_v34 = vmax.f32 %v1757_v61, 0.0 }
 0x332   :  { %v1867_v62 = vpack.c.bf16 %v1821_v34, %v1819_v27  ;;  %v1866_v18 = vpack.c.bf16 %v1820_v17, %v1818_v2 }
 0x334   :  { %2008 = vmatprep.subr.bf16.mxu1 %v1867_v62 }
 0x335   :  { %2009 = vmatpush2.bf16.msra.mxu1 %v1866_v18 }
 0x338   :  { %2011 = vmatmul.mubr.bf16.vlgmr.msra.gmra.mxu1 %v3134_v21 }
 0x339   :  { %2020 = vmatprep.mubr.bf16.mxu1 %v3137_v45 }
 0x340   :  { %2021 = vmatmul.mubr.bf16.gmra.mxu1 %v3139_v12 }
 0x341   :  { %2030 = vmatprep.mubr.bf16.mxu1 %v3140_v59 }
 0x348   :  { %2031 = vmatmul.mubr.bf16.gmra.mxu1 %v3142_v31 }
 0x349   :  { %2040 = vmatprep.mubr.bf16.mxu1 %v3143_v46 }
 0x350   :  { %2041 = vmatmul.mubr.bf16.gmra.mxu1 %v3145_v3 }
 0x351   :  { %2050 = vmatprep.mubr.bf16.mxu1 %v3146_v37 }
 0x358   :  { %2051 = vmatmul.mubr.bf16.gmra.mxu1 %v3148_v29 }
 0x359   :  { %2060 = vmatprep.mubr.bf16.mxu1 %v3149_v35 }
 0x360   :  { %2061 = vmatmul.mubr.bf16.gmra.mxu1 %v3151_v60 }
 0x361   :  { %2070 = vmatprep.mubr.bf16.mxu1 %v3152_v50 }
 0x368   :  { %2071 = vmatmul.mubr.bf16.gmra.mxu1 %v3154_v13 }
 0x369   :  { %2080 = vmatprep.mubr.bf16.mxu1 %v3155_v49 }
 0x370   :  { %2081 = vmatmul.mubr.bf16.gmra.mxu1 %v3157_v8 }
 0x3f8   :  { %v4946_v15 = vpop.f32.mrf.mxu1 }
 0x3f9   :  { %v2139_v38 = vmul.f32 %v4946_v15, %v4946_v15 }
 0x3fa   :  { %v4948_v54 = vpop.f32.mrf.mxu1 }
 0x3fb   :  { %v2091_v1 = vadd.f32 %v4948_v54, %v4946_v15  ;;  %v2140_v23 = vmul.f32 %v4948_v54, %v4948_v54 }
 0x3fc   :  { %v4956_v9 = vpop.f32.mrf.mxu1 }
 0x3fd   :  { %2092 = vadd.xlane.f32.xlu0 %v2091_v1  ;;  %v2171_v26 = vadd.f32 %v2140_v23, %v2139_v38  ;;  %v2141_v36 = vmul.f32 %v4956_v9, %v4956_v9 }
 0x3fe   :  { %v4958_v28 = vpop.f32.mrf.mxu1 }
 0x3ff   :  { %2172 = vadd.xlane.f32.xlu1 %v2171_v26  ;;  %v2142_v63 = vmul.f32 %v4958_v28, %v4958_v28  ;;  %v2094_v30 = vadd.f32 %v4958_v28, %v4956_v9 }
 0x400   :  { %v4964_v41 = vpop.f32.mrf.mxu1 }
 0x401   :  { %v2174_v43 = vadd.f32 %v2142_v63, %v2141_v36  ;;  %v2143_v24 = vmul.f32 %v4964_v41, %v4964_v41 }
 0x402   :  { %v4970_v53 = vpop.f32.mrf.mxu1 }
 0x403   :  { %2175 = vadd.xlane.f32.xlu0 %v2174_v43  ;;  %2095 = vadd.xlane.f32.xlu1 %v2094_v30  ;;  %v2144_v39 = vmul.f32 %v4970_v53, %v4970_v53  ;;  %v2097_v6 = vadd.f32 %v4970_v53, %v4964_v41 }
 0x404   :  { %v4974_v32 = vpop.f32.mrf.mxu1 }
 0x405   :  { %v2177_v44 = vadd.f32 %v2144_v39, %v2143_v24  ;;  %v2145_v58 = vmul.f32 %v4974_v32, %v4974_v32 }
 0x406   :  { %v4978_v19 = vpop.f32.mrf.mxu1 }
 0x407   :  { %2178 = vadd.xlane.f32.xlu1 %v2177_v44  ;;  %2098 = vadd.xlane.f32.xlu0 %v2097_v6  ;;  %v2100_v56 = vadd.f32 %v4978_v19, %v4974_v32  ;;  %v2146_v20 = vmul.f32 %v4978_v19, %v4978_v19 }
 0x408   :  { %v4980_v10 = vpop.f32.mrf.mxu1 }
 0x409   :  { %v2147_v14 = vmul.f32 %v4980_v10, %v4980_v10  ;;  %v2180_v11 = vadd.f32 %v2146_v20, %v2145_v58 }
 0x40a   :  { %v4988_v16 = vpop.f32.mrf.mxu1 }
 0x40b   :  { %2101 = vadd.xlane.f32.xlu0 %v2100_v56  ;;  %v2148_v22 = vmul.f32 %v4988_v16, %v4988_v16  ;;  %v2103_v52 = vadd.f32 %v4988_v16, %v4980_v10 }
 0x40c   :  { %v4996_v47 = vpop.f32.mrf.mxu1 }
 0x40d   :  { %2104 = vadd.xlane.f32.xlu1 %v2103_v52  ;;  %v2183_v7 = vadd.f32 %v2148_v22, %v2147_v14  ;;  %v2149_v57 = vmul.f32 %v4996_v47, %v4996_v47 }
 0x40e   :  { %v4998_v5 = vpop.f32.mrf.mxu1 }
 0x40f   :  { %2181 = vadd.xlane.f32.xlu0 %v2180_v11  ;;  %v2150_v25 = vmul.f32 %v4998_v5, %v4998_v5  ;;  %v2106_v48 = vadd.f32 %v4998_v5, %v4996_v47 }
 0x410   :  { %v5006_v42 = vpop.f32.mrf.mxu1 }
 0x411   :  { %v2151_v0 = vmul.f32 %v5006_v42, %v5006_v42  ;;  %2184 = vadd.xlane.f32.xlu1 %v2183_v7  ;;  %v2186_v4 = vadd.f32 %v2150_v25, %v2149_v57 }
 0x412   :  { %v5010_v61 = vpop.f32.mrf.mxu1 }
 0x413   :  { %2107 = vadd.xlane.f32.xlu0 %v2106_v48  ;;  %v2152_v51 = vmul.f32 %v5010_v61, %v5010_v61  ;;  %v2109_v55 = vadd.f32 %v5010_v61, %v5006_v42 }
 0x414   :  { %v5016_v40 = vpop.f32.mrf.mxu1 }
 0x415   :  { %2110 = vadd.xlane.f32.xlu1 %v2109_v55  ;;  %v2189_v17 = vadd.f32 %v2152_v51, %v2151_v0  ;;  %v2153_v2 = vmul.f32 %v5016_v40, %v5016_v40 }
 0x416   :  { %v5018_v34 = vpop.f32.mrf.mxu1 }
 0x417   :  { %2187 = vadd.xlane.f32.xlu0 %v2186_v4  ;;  %v2154_v27 = vmul.f32 %v5018_v34, %v5018_v34  ;;  %v2112_v62 = vadd.f32 %v5018_v34, %v5016_v40 }
 0x418   :  { %v5026_v18 = vpop.f32.mrf.mxu1 }
 0x419   :  { %v2155_v21 = vmul.f32 %v5026_v18, %v5026_v18  ;;  %2190 = vadd.xlane.f32.xlu1 %v2189_v17  ;;  %v2192_v59 = vadd.f32 %v2154_v27, %v2153_v2 }
 0x41a   :  { %v5030_v45 = vpop.f32.mrf.mxu1 }
 0x41b   :  { %2113 = vadd.xlane.f32.xlu0 %v2112_v62  ;;  %v2156_v12 = vmul.f32 %v5030_v45, %v5030_v45  ;;  %v2115_v31 = vadd.f32 %v5030_v45, %v5026_v18 }
 0x41c   :  { %v5036_v46 = vpop.f32.mrf.mxu1 }
 0x41d   :  { %2116 = vadd.xlane.f32.xlu1 %v2115_v31  ;;  %v2195_v3 = vadd.f32 %v2156_v12, %v2155_v21  ;;  %v2157_v29 = vmul.f32 %v5036_v46, %v5036_v46 }
 0x41e   :  { %v5038_v37 = vpop.f32.mrf.mxu1 }
 0x41f   :  { %2193 = vadd.xlane.f32.xlu0 %v2192_v59  ;;  %v2158_v35 = vmul.f32 %v5038_v37, %v5038_v37  ;;  %v2118_v60 = vadd.f32 %v5038_v37, %v5036_v46 }
 0x420   :  { %v5046_v50 = vpop.f32.mrf.mxu1 }
 0x421   :  { %v2159_v13 = vmul.f32 %v5046_v50, %v5046_v50  ;;  %2196 = vadd.xlane.f32.xlu1 %v2195_v3  ;;  %v2198_v1 = vadd.f32 %v2158_v35, %v2157_v29 }
 0x422   :  { %v5050_v49 = vpop.f32.mrf.mxu1 }
 0x423   :  { %2119 = vadd.xlane.f32.xlu0 %v2118_v60  ;;  %v2160_v8 = vmul.f32 %v5050_v49, %v5050_v49  ;;  %v2121_v38 = vadd.f32 %v5050_v49, %v5046_v50 }
 0x424   :  { %v5056_v23 = vpop.f32.mrf.mxu1 }
 0x425   :  { %2122 = vadd.xlane.f32.xlu1 %v2121_v38  ;;  %v2201_v26 = vadd.f32 %v2160_v8, %v2159_v13  ;;  %v2161_v63 = vmul.f32 %v5056_v23, %v5056_v23 }
 0x426   :  { %v5058_v36 = vpop.f32.mrf.mxu1 }
 0x427   :  { %2199 = vadd.xlane.f32.xlu0 %v2198_v1  ;;  %v2162_v43 = vmul.f32 %v5058_v36, %v5058_v36  ;;  %v2124_v30 = vadd.f32 %v5058_v36, %v5056_v23 }
 0x428   :  { %v5066_v24 = vpop.f32.mrf.mxu1 }
 0x429   :  { %6057 = vst [vmem:[#allocation150_spill] sm:$0xff] %v5066_v24  ;;  %v2163_v39 = vmul.f32 %v5066_v24, %v5066_v24  ;;  %2202 = vadd.xlane.f32.xlu1 %v2201_v26  ;;  %v2204_v56 = vadd.f32 %v2162_v43, %v2161_v63 }
 0x42a   :  { %v5070_v44 = vpop.f32.mrf.mxu1 }
 0x42b   :  { %6058 = vst [vmem:[#allocation153_spill] sm:$0xff] %v5070_v44  ;;  %2125 = vadd.xlane.f32.xlu0 %v2124_v30  ;;  %v2164_v6 = vmul.f32 %v5070_v44, %v5070_v44  ;;  %v2127_v20 = vadd.f32 %v5070_v44, %v5066_v24 }
 0x42c   :  { %v5076_v14 = vpop.f32.mrf.mxu1 }
 0x42d   :  { %6059 = vst [vmem:[#allocation154_spill] sm:$0xff] %v5076_v14  ;;  %2128 = vadd.xlane.f32.xlu1 %v2127_v20  ;;  %v2207_v58 = vadd.f32 %v2164_v6, %v2163_v39  ;;  %v2165_v52 = vmul.f32 %v5076_v14, %v5076_v14 }
 0x42e   :  { %v5078_v22 = vpop.f32.mrf.mxu1 }
 0x42f   :  { %6060 = vst [vmem:[#allocation151_spill] sm:$0xff] %v5078_v22  ;;  %2205 = vadd.xlane.f32.xlu0 %v2204_v56  ;;  %v2166_v11 = vmul.f32 %v5078_v22, %v5078_v22  ;;  %v2130_v7 = vadd.f32 %v5078_v22, %v5076_v14 }
 0x430   :  { %v5086_v57 = vpop.f32.mrf.mxu1 }
 0x431   :  { %6061 = vst [vmem:[#allocation152_spill] sm:$0xff] %v5086_v57  ;;  %v2167_v25 = vmul.f32 %v5086_v57, %v5086_v57  ;;  %2208 = vadd.xlane.f32.xlu1 %v2207_v58  ;;  %v2210_v51 = vadd.f32 %v2166_v11, %v2165_v52 }
 0x432   :  { %v5090_v48 = vpop.f32.mrf.mxu1 }
 0x433   :  { %6062 = vst [vmem:[#allocation147_spill] sm:$0xff] %v5090_v48  ;;  %2131 = vadd.xlane.f32.xlu0 %v2130_v7  ;;  %v2168_v0 = vmul.f32 %v5090_v48, %v5090_v48  ;;  %v2133_v4 = vadd.f32 %v5090_v48, %v5086_v57 }
 0x434   :  { %v5096_v55 = vpop.f32.mrf.mxu1 }
 0x435   :  { %6063 = vst [vmem:[#allocation144_spill] sm:$0xff] %v5096_v55  ;;  %2134 = vadd.xlane.f32.xlu1 %v2133_v4  ;;  %v2213_v17 = vadd.f32 %v2168_v0, %v2167_v25  ;;  %v2169_v27 = vmul.f32 %v5096_v55, %v5096_v55 }
 0x436   :  { %v5098_v2 = vpop.f32.mrf.mxu1 }
 0x437   :  { %6064 = vst [vmem:[#allocation148_spill] sm:$0xff] %v5098_v2  ;;  %2211 = vadd.xlane.f32.xlu0 %v2210_v51  ;;  %v2136_v62 = vadd.f32 %v5098_v2, %v5096_v55  ;;  %v2170_v21 = vmul.f32 %v5098_v2, %v5098_v2 }
 0x439   :  { %2214 = vadd.xlane.f32.xlu1 %v2213_v17  ;;  %v2216_v12 = vadd.f32 %v2170_v21, %v2169_v27 }
 0x43b   :  { %2137 = vadd.xlane.f32.xlu0 %v2136_v62 }
 0x43f   :  { %2217 = vadd.xlane.f32.xlu0 %v2216_v12 }
 0x486   :  { %v2093_v59 = vpop.xlane.xlu0 %2092 }
 0x487   :  { %v2219_v31 = vmul.f32 0.00390625, %v2093_v59 }
 0x488   :  { %v2173_v3 = vpop.xlane.xlu1 %2172 }
 0x489   :  { %v2251_v29 = vmul.f32 %v2219_v31, %v2219_v31  ;;  %v2235_v35 = vmul.f32 0.00390625, %v2173_v3 }
 0x48b   :  { %v2267_v60 = vsub.f32 %v2235_v35, %v2251_v29 }
 0x48c   :  { %v2176_v13 = vpop.xlane.xlu0 %2175  ;;  %v2096_v8 = vpop.xlane.xlu1 %2095 }
 0x48d   :  { %v2283_v1 = vmax.f32 %v2267_v60, 0.0  ;;  %v5106_v38 = vmul.f32 0.00390625, %v2096_v8  ;;  %v2236_v63 = vmul.f32 0.00390625, %v2176_v13  ;;  %v2299_v60 = vld [vmem:[%s5568_s6] sm:$0xff] }
 0x48f   :  { %v2315_v26 = vadd.f32 1e-05, %v2283_v1  ;;  %v2252_v43 = vmul.f32 %v5106_v38, %v5106_v38 }
 0x490   :  { %v2179_v30 = vpop.xlane.xlu1 %2178  ;;  %v2099_v39 = vpop.xlane.xlu0 %2098 }
 0x491   :  { %3158 = vrsqrt.f32 %v2315_v26  ;;  %v2268_v6 = vsub.f32 %v2236_v63, %v2252_v43  ;;  %v5110_v56 = vmul.f32 0.00390625, %v2099_v39  ;;  %v2237_v58 = vmul.f32 0.00390625, %v2179_v30 }
 0x493   :  { %v2284_v20 = vmax.f32 %v2268_v6, 0.0  ;;  %v2253_v52 = vmul.f32 %v5110_v56, %v5110_v56 }
 0x494   :  { %v2102_v11 = vpop.xlane.xlu0 %2101 }
 0x495   :  { %v2316_v7 = vadd.f32 1e-05, %v2284_v20  ;;  %v2269_v25 = vsub.f32 %v2237_v58, %v2253_v52  ;;  %v5114_v0 = vmul.f32 0.00390625, %v2102_v11 }
 0x496   :  { %v2105_v51 = vpop.xlane.xlu1 %2104 }
 0x497   :  { %3160 = vrsqrt.f32 %v2316_v7  ;;  %v2285_v4 = vmax.f32 %v2269_v25, 0.0  ;;  %v5116_v17 = vmul.f32 0.00390625, %v2105_v51  ;;  %v2254_v21 = vmul.f32 %v5114_v0, %v5114_v0  ;;  %v2300_v25 = vld [vmem:[%s5568_s6 + $0x8] sm:$0xff] }
 0x498   :  { %v2182_v27 = vpop.xlane.xlu0 %2181 }
 0x499   :  { %v2317_v62 = vadd.f32 1e-05, %v2285_v4  ;;  %v2238_v12 = vmul.f32 0.00390625, %v2182_v27  ;;  %v2255_v59 = vmul.f32 %v5116_v17, %v5116_v17 }
 0x49a   :  { %v2185_v3 = vpop.xlane.xlu1 %2184 }
 0x49b   :  { %3162 = vrsqrt.f32 %v2317_v62  ;;  %v2270_v29 = vsub.f32 %v2238_v12, %v2254_v21  ;;  %v2239_v35 = vmul.f32 0.00390625, %v2185_v3 }
 0x49c   :  { %v2108_v13 = vpop.xlane.xlu0 %2107 }
 0x49d   :  { %v2286_v8 = vmax.f32 %v2270_v29, 0.0  ;;  %v5125_v1 = vmul.f32 0.00390625, %v2108_v13  ;;  %v2271_v26 = vsub.f32 %v2239_v35, %v2255_v59  ;;  %v2363_v29 = vld [vmem:[%s5569_s7] sm:$0xff] }
 0x49e   :  { %v3159_v63 = vpop.eup %3158  ;;  %v2111_v43 = vpop.xlane.xlu1 %2110 }
 0x49f   :  { %v2318_v30 = vadd.f32 1e-05, %v2286_v8  ;;  %v2347_v39 = vmul.f32 %v3159_v63, %v2299_v60  ;;  %v2256_v6 = vmul.f32 %v5125_v1, %v5125_v1  ;;  %v2287_v20 = vmax.f32 %v2271_v26, 0.0  ;;  %v2301_v8 = vld [vmem:[%s5568_s6 + $0x10] sm:$0xff] }
 0x4a0   :  { %v2188_v58 = vpop.xlane.xlu0 %2187  ;;  %v5129_v52 = vmul.f32 0.00390625, %v2111_v43 }
 0x4a1   :  { %3164 = vrsqrt.f32 %v2318_v30  ;;  %2413 = vperm.xlu1 %3133, %v2347_v39   ;;  %v2319_v11 = vadd.f32 1e-05, %v2287_v20  ;;  %v2240_v7 = vmul.f32 0.00390625, %v2188_v58  ;;  %v2379_v12 = vmul.f32 %v2347_v39, %v2219_v31 }
 0x4a2   :  { %v2257_v51 = vmul.f32 %v5129_v52, %v5129_v52  ;;  %v2191_v4 = vpop.xlane.xlu1 %2190 }
 0x4a3   :  { %3166 = vrsqrt.f32 %v2319_v11  ;;  %v2272_v27 = vsub.f32 %v2240_v7, %v2256_v6  ;;  %v2241_v62 = vmul.f32 0.00390625, %v2191_v4  ;;  %v2395_v31 = vsub.f32 %v2363_v29, %v2379_v12  ;;  %v2302_v12 = vld [vmem:[%s5568_s6 + $0x18] sm:$0xff] }
 0x4a4   :  { %v3161_v21 = vpop.eup %3160  ;;  %v2114_v59 = vpop.xlane.xlu0 %2113 }
 0x4a5   :  { %v2348_v3 = vmul.f32 %v3161_v21, %v2300_v25  ;;  %v2288_v35 = vmax.f32 %v2272_v27, 0.0  ;;  %v5139_v60 = vmul.f32 0.00390625, %v2114_v59  ;;  %v2273_v13 = vsub.f32 %v2241_v62, %v2257_v51  ;;  %v2364_v25 = vld [vmem:[%s5569_s7 + $0x8] sm:$0xff]  ;;  %v2365_v51 = vld [vmem:[%s5569_s7 + $0x10] sm:$0xff] }
 0x4a6   :  { %v2117_v26 = vpop.xlane.xlu1 %2116 }
 0x4a7   :  { %2418 = vperm.xlu0 %3132, %v2348_v3   ;;  %v2320_v63 = vadd.f32 1e-05, %v2288_v35  ;;  %v2289_v43 = vmax.f32 %v2273_v13, 0.0  ;;  %v2258_v39 = vmul.f32 %v5139_v60, %v5139_v60  ;;  %v5146_v20 = vmul.f32 0.00390625, %v2117_v26 }
 0x4a8   :  { %v3163_v30 = vpop.eup %3162  ;;  %v2194_v6 = vpop.xlane.xlu0 %2193  ;;  %v2380_v58 = vmul.f32 %v2348_v3, %v5106_v38 }
 0x4a9   :  { %v2349_v11 = vmul.f32 %v3163_v30, %v2301_v8  ;;  %3168 = vrsqrt.f32 %v2320_v63  ;;  %v2321_v7 = vadd.f32 1e-05, %v2289_v43  ;;  %v2242_v4 = vmul.f32 0.00390625, %v2194_v6 }
 0x4aa   :  { %v2259_v27 = vmul.f32 %v5146_v20, %v5146_v20  ;;  %v2197_v62 = vpop.xlane.xlu1 %2196  ;;  %v2396_v29 = vsub.f32 %v2364_v25, %v2380_v58 }
 0x4ab   :  { %v2381_v21 = vmul.f32 %v2349_v11, %v5110_v56  ;;  %2423 = vperm.xlu1 %3133, %v2349_v11   ;;  %2441 = vperm.xlu0 %3132, %v2395_v31   ;;  %3170 = vrsqrt.f32 %v2321_v7  ;;  %v2243_v38 = vmul.f32 0.00390625, %v2197_v62  ;;  %v2274_v59 = vsub.f32 %v2242_v4, %v2258_v39  ;;  %v2303_v56 = vld [vmem:[%s5568_s6 + $0x20] sm:$0xff]  ;;  %v2366_v62 = vld [vmem:[%s5569_s7 + $0x18] sm:$0xff] }
 0x4ac   :  { %v2120_v3 = vpop.xlane.xlu0 %2119 }
 0x4ad   :  { %v2397_v35 = vsub.f32 %v2365_v51, %v2381_v21  ;;  %v5161_v13 = vmul.f32 0.00390625, %v2120_v3  ;;  %v2275_v8 = vsub.f32 %v2243_v38, %v2259_v27  ;;  %v2290_v63 = vmax.f32 %v2274_v59, 0.0  ;;  %v5179_v21 = vld [vmem:[%s5569_s7 + $0x20] sm:$0xff]  ;;  %v2304_v3 = vld [vmem:[%s5568_s6 + $0x28] sm:$0xff] }
 0x4ae   :  { %v3165_v26 = vpop.eup %3164  ;;  %v2123_v43 = vpop.xlane.xlu1 %2122 }
 0x4af   :  { %2446 = vperm.xlu1 %3133, %v2396_v29   ;;  %2451 = vperm.xlu0 %3132, %v2397_v35   ;;  %v2350_v30 = vmul.f32 %v3165_v26, %v2302_v12  ;;  %v2260_v31 = vmul.f32 %v5161_v13, %v5161_v13  ;;  %v2291_v39 = vmax.f32 %v2275_v8, 0.0  ;;  %v5168_v6 = vmul.f32 0.00390625, %v2123_v43 }
 0x4b0   :  { %v3167_v58 = vpop.eup %3166  ;;  %v2322_v11 = vadd.f32 1e-05, %v2290_v63  ;;  %v2200_v7 = vpop.xlane.xlu0 %2199 }
 0x4b1   :  { %v2382_v25 = vmul.f32 %v2350_v30, %v5114_v0  ;;  %v5171_v51 = vmul.f32 %v3167_v58, %v2303_v56  ;;  %v2323_v4 = vadd.f32 1e-05, %v2291_v39  ;;  %v2244_v27 = vmul.f32 0.00390625, %v2200_v7 }
 0x4b2   :  { %3172 = vrsqrt.f32 %v2322_v11  ;;  %v2261_v38 = vmul.f32 %v5168_v6, %v5168_v6  ;;  %v2203_v12 = vpop.xlane.xlu1 %2202 }
 0x4b3   :  { %2428 = vperm.xlu1 %3133, %v2350_v30   ;;  %v5185_v0 = vmul.f32 %v5171_v51, %v5116_v17  ;;  %3174 = vrsqrt.f32 %v2323_v4  ;;  %v2276_v59 = vsub.f32 %v2244_v27, %v2260_v31  ;;  %v2245_v35 = vmul.f32 0.00390625, %v2203_v12  ;;  %v2305_v17 = vld [vmem:[%s5568_s6 + $0x30] sm:$0xff]  ;;  %v5206_v4 = vld [vmem:[%s5569_s7 + $0x28] sm:$0xff]  ;;  %3190 = vset.pattern.permute.xlu0 %v5758_v33 }
 0x4b4   :  { %v2126_v29 = vpop.xlane.xlu0 %2125  ;;  %v2398_v8 = vsub.f32 %v2366_v62, %v2382_v25 }
 0x4b5   :  { %v2292_v56 = vmax.f32 %v2276_v59, 0.0  ;;  %v5192_v63 = vmul.f32 0.00390625, %v2126_v29  ;;  %v2277_v30 = vsub.f32 %v2245_v35, %v2261_v38 }
 0x4b6   :  { %v3169_v43 = vpop.eup %3168  ;;  %v2129_v31 = vpop.xlane.xlu1 %2128 }
 0x4b7   :  { %2456 = vperm.xlu1 %3133, %v2398_v8   ;;  %v5197_v39 = vmul.f32 %v3169_v43, %v2304_v3  ;;  %v2324_v58 = vadd.f32 1e-05, %v2292_v56  ;;  %v2262_v11 = vmul.f32 %v5192_v63, %v5192_v63  ;;  %v5201_v7 = vmul.f32 0.00390625, %v2129_v31  ;;  %v5217_v3 = vld [vmem:[%s5569_s7 + $0x30] sm:$0xff] }
 0x4b8   :  { %v3171_v25 = vpop.eup %3170  ;;  %v2293_v27 = vmax.f32 %v2277_v30, 0.0  ;;  %v2206_v62 = vpop.xlane.xlu0 %2205 }
 0x4b9   :  { %v5210_v38 = vmul.f32 %v5197_v39, %v5125_v1  ;;  %v5212_v12 = vmul.f32 %v3171_v25, %v2305_v17  ;;  %3176 = vrsqrt.f32 %v2324_v58  ;;  %v2246_v59 = vmul.f32 0.00390625, %v2206_v62  ;;  %v2306_v58 = vld [vmem:[%s5568_s6 + $0x38] sm:$0xff] }
 0x4ba   :  { %v2325_v29 = vadd.f32 1e-05, %v2293_v27  ;;  %v2263_v35 = vmul.f32 %v5201_v7, %v5201_v7  ;;  %v2209_v8 = vpop.xlane.xlu1 %2208 }
 0x4bb   :  { %v5225_v1 = vmul.f32 %v5212_v12, %v5129_v52  ;;  %v2278_v43 = vsub.f32 %v2246_v59, %v2262_v11  ;;  %v2247_v17 = vmul.f32 0.00390625, %v2209_v8  ;;  %v2307_v52 = vld [vmem:[%s5568_s6 + $0x40] sm:$0xff]  ;;  %3191 = vset.pattern.permute.xlu1 %v5758_v33 }
 0x4bc   :  { %3178 = vrsqrt.f32 %v2325_v29  ;;  %v2132_v30 = vpop.xlane.xlu0 %2131 }
 0x4bd   :  { %v2294_v25 = vmax.f32 %v2278_v43, 0.0  ;;  %v5232_v27 = vmul.f32 0.00390625, %v2132_v30  ;;  %v2279_v62 = vsub.f32 %v2247_v17, %v2263_v35  ;;  %v5246_v35 = vld [vmem:[%s5569_s7 + $0x38] sm:$0xff] }
 0x4be   :  { %v2135_v26 = vpop.xlane.xlu1 %2134 }
 0x4bf   :  { %v3173_v11 = vpop.eup %3172  ;;  %v2326_v59 = vadd.f32 1e-05, %v2294_v25  ;;  %v2264_v29 = vmul.f32 %v5232_v27, %v5232_v27  ;;  %v2295_v8 = vmax.f32 %v2279_v62, 0.0  ;;  %v5239_v31 = vmul.f32 0.00390625, %v2135_v26  ;;  %v5257_v26 = vld [vmem:[%s5569_s7 + $0x40] sm:$0xff] }
 0x4c0   :  { %v3175_v56 = vpop.eup %3174  ;;  %v5241_v2 = vmul.f32 %v3173_v11, %v2306_v58  ;;  %v2212_v43 = vpop.xlane.xlu0 %2211 }
 0x4c1   :  { %v5248_v17 = vmul.f32 %v3175_v56, %v2307_v52  ;;  %3180 = vrsqrt.f32 %v2326_v59  ;;  %v2327_v30 = vadd.f32 1e-05, %v2295_v8  ;;  %v2248_v25 = vmul.f32 0.00390625, %v2212_v43  ;;  %v2308_v59 = vld [vmem:[%s5568_s6 + $0x48] sm:$0xff] }
 0x4c2   :  { %v5252_v55 = vmul.f32 %v5241_v2, %v5139_v60  ;;  %v2265_v58 = vmul.f32 %v5239_v31, %v5239_v31  ;;  %v2215_v62 = vpop.xlane.xlu1 %2214  ;;  %v5280_v60 = vld [vmem:[%s5569_s7 + $0x48] sm:$0xff] }
 0x4c3   :  { %v5263_v56 = vmul.f32 %v5248_v17, %v5146_v20  ;;  %3182 = vrsqrt.f32 %v2327_v30  ;;  %v2280_v52 = vsub.f32 %v2248_v25, %v2264_v29  ;;  %v2249_v11 = vmul.f32 0.00390625, %v2215_v62  ;;  %v2309_v29 = vld [vmem:[%s5568_s6 + $0x50] sm:$0xff] }
 0x4c4   :  { %v2138_v8 = vpop.xlane.xlu0 %2137 }
 0x4c5   :  { %v2296_v48 = vmax.f32 %v2280_v52, 0.0  ;;  %v2234_v57 = vmul.f32 0.00390625, %v2138_v8  ;;  %v2281_v22 = vsub.f32 %v2249_v11, %v2265_v58 }
 0x4c6   :  { %v3177_v14 = vpop.eup %3176 }
 0x4c7   :  { %v5272_v20 = vmul.f32 %v3177_v14, %v2308_v59  ;;  %v2328_v30 = vadd.f32 1e-05, %v2296_v48  ;;  %v2266_v25 = vmul.f32 %v2234_v57, %v2234_v57  ;;  %v2297_v62 = vmax.f32 %v2281_v22, 0.0  ;;  %v5293_v22 = vld [vmem:[%s5569_s7 + $0x50] sm:$0xff] }
 0x4c8   :  { %v2218_v44 = vpop.xlane.xlu0 %2217 }
 0x4c9   :  { %v3179_v43 = vpop.eup %3178  ;;  %v5284_v58 = vmul.f32 %v5272_v20, %v5161_v13  ;;  %3184 = vrsqrt.f32 %v2328_v30  ;;  %v2329_v14 = vadd.f32 1e-05, %v2297_v62  ;;  %v2250_v52 = vmul.f32 0.00390625, %v2218_v44  ;;  %v2310_v44 = vld [vmem:[%s5568_s6 + $0x58] sm:$0xff]  ;;  %v2311_v30 = vld [vmem:[%s5568_s6 + $0x60] sm:$0xff] }
 0x4ca   :  { %v5286_v11 = vmul.f32 %v3179_v43, %v2309_v29  ;;  %v5323_v29 = vld [vmem:[%s5569_s7 + $0x60] sm:$0xff] }
 0x4cb   :  { %3186 = vrsqrt.f32 %v2329_v14  ;;  %v2282_v59 = vsub.f32 %v2250_v52, %v2266_v25  ;;  %6066 = vst [vmem:[#allocation145_spill] sm:$0xff] %v5323_v29  ;;  %v5373_v29 = vld [vmem:[%s5569_s7 + $0x78] sm:$0xff] }
 0x4cc   :  { %v5297_v8 = vmul.f32 %v5286_v11, %v5168_v6  ;;  %v5312_v6 = vld [vmem:[%s5569_s7 + $0x58] sm:$0xff] }
 0x4cd   :  { %v2298_v13 = vmax.f32 %v2282_v59, 0.0 }
 0x4ce   :  { %v3181_v43 = vpop.eup %3180 }
 0x4cf   :  { %v5307_v62 = vmul.f32 %v3181_v43, %v2310_v44  ;;  %v2330_v25 = vadd.f32 1e-05, %v2298_v13  ;;  %v5355_v43 = vld [vmem:[%s5569_s7 + $0x70] sm:$0xff] }
 0x4d0   :  { %v3183_v14 = vpop.eup %3182  ;;  %6072 = vst [vmem:[#allocation176_spill] sm:$0xff] %v5355_v43 }
 0x4d1   :  { %v5316_v52 = vmul.f32 %v5307_v62, %v5192_v63  ;;  %v5318_v59 = vmul.f32 %v3183_v14, %v2311_v30  ;;  %3188 = vrsqrt.f32 %v2330_v25  ;;  %v2312_v63 = vld [vmem:[%s5568_s6 + $0x68] sm:$0xff]  ;;  %v2313_v25 = vld [vmem:[%s5568_s6 + $0x70] sm:$0xff] }
 0x4d3   :  { %6065 = vst [vmem:[#allocation149_spill] sm:$0xff] %v5318_v59  ;;  %v5329_v13 = vmul.f32 %v5318_v59, %v5201_v7  ;;  %v5344_v7 = vld [vmem:[%s5569_s7 + $0x68] sm:$0xff] }
 0x4d4   :  { %6069 = vst [vmem:[#allocation182_spill] sm:$0xff] %v5344_v7 }
 0x4d5   :  { %6067 = vst [vmem:[#allocation146_spill] sm:$0xff] %v5329_v13  ;;  %v2314_v13 = vld [vmem:[%s5568_s6 + $0x78] sm:$0xff] }
 0x4d6   :  { %v3185_v30 = vpop.eup %3184 }
 0x4d7   :  { %v5339_v14 = vmul.f32 %v3185_v30, %v2312_v63 }
 0x4d8   :  { %v3187_v48 = vpop.eup %3186 }
 0x4d9   :  { %6068 = vst [vmem:[#allocation181_spill] sm:$0xff] %v5339_v14  ;;  %v5348_v44 = vmul.f32 %v5339_v14, %v5232_v27  ;;  %v5350_v24 = vmul.f32 %v3187_v48, %v2313_v25 }
 0x4db   :  { %6070 = vst [vmem:[#allocation179_spill] sm:$0xff] %v5348_v44  ;;  %6071 = vst [vmem:[#allocation180_spill] sm:$0xff] %v5350_v24  ;;  %v5361_v30 = vmul.f32 %v5350_v24, %v5239_v31 }
 0x4dd   :  { %6073 = vst [vmem:[#allocation172_spill] sm:$0xff] %v5361_v30 }
 0x4de   :  { %v3189_v48 = vpop.eup %3188 }
 0x4df   :  { %v5368_v25 = vmul.f32 %v3189_v48, %v2314_v13 }
 0x4e1   :  { %6074 = vst [vmem:[#allocation177_spill] sm:$0xff] %v5368_v25  ;;  %v5376_v63 = vmul.f32 %v5368_v25, %v2234_v57 }
 0x4e3   :  { %v2410_v31 = vsub.f32 %v5373_v29, %v5376_v63 }
 0x51c   :  { %v2414_v44 = vpop.permute.xlu1 %2413 }
 0x51d   :  { %v2431_v14 = vmul.f32 %v2414_v44, %v4946_v15  ;;  %v2432_v27 = vmul.f32 %v2414_v44, %v4948_v54 }
 0x522   :  { %v2419_v7 = vpop.permute.xlu0 %2418 }
 0x523   :  { %v2433_v59 = vmul.f32 %v2419_v7, %v4956_v9  ;;  %v2434_v24 = vmul.f32 %v2419_v7, %v4958_v28 }
 0x526   :  { %v2424_v30 = vpop.permute.xlu1 %2423  ;;  %v2442_v13 = vpop.permute.xlu0 %2441 }
 0x527   :  { %v2459_v48 = vadd.f32 %v2442_v13, %v2431_v14  ;;  %v2460_v43 = vadd.f32 %v2442_v13, %v2432_v27  ;;  %v2435_v57 = vmul.f32 %v2424_v30, %v4964_v41  ;;  %v2436_v25 = vmul.f32 %v2424_v30, %v4970_v53 }
 0x529   :  { %2509 = vst [vmem:[%s5570_s8] sm:$0xff] %v2459_v48  ;;  %2511 = vst [vmem:[%s5570_s8 + $0x8] sm:$0xff] %v2460_v43 }
 0x52a   :  { %v2447_v15 = vpop.permute.xlu1 %2446  ;;  %v2452_v54 = vpop.permute.xlu0 %2451 }
 0x52b   :  { %v2461_v44 = vadd.f32 %v2447_v15, %v2433_v59  ;;  %v2462_v14 = vadd.f32 %v2447_v15, %v2434_v24  ;;  %v2463_v27 = vadd.f32 %v2452_v54, %v2435_v57  ;;  %v2464_v9 = vadd.f32 %v2452_v54, %v2436_v25 }
 0x52d   :  { %2513 = vst [vmem:[%s5570_s8 + $0x10] sm:$0xff] %v2461_v44  ;;  %2515 = vst [vmem:[%s5570_s8 + $0x18] sm:$0xff] %v2462_v14 }
 0x52e   :  { %2517 = vst [vmem:[%s5570_s8 + $0x20] sm:$0xff] %v2463_v27  ;;  %2519 = vst [vmem:[%s5570_s8 + $0x28] sm:$0xff] %v2464_v9  ;;  %v2429_v28 = vpop.permute.xlu1 %2428 }
 0x52f   :  { %v2437_v41 = vmul.f32 %v2429_v28, %v4974_v32  ;;  %v2438_v53 = vmul.f32 %v2429_v28, %v4978_v19 }
 0x532   :  { %v2457_v24 = vpop.permute.xlu1 %2456 }
 0x533   :  { %v2465_v59 = vadd.f32 %v2457_v24, %v2437_v41  ;;  %v2466_v43 = vadd.f32 %v2457_v24, %v2438_v53 }
 0x535   :  { %2521 = vst [vmem:[%s5570_s8 + $0x30] sm:$0xff] %v2465_v59  ;;  %2523 = vst [vmem:[%s5570_s8 + $0x38] sm:$0xff] %v2466_v43 }
 0x536   :  { %2531 = vsyncadd [#allocation5], 1024  ;;  %2544 = vperm.xlu1 %3191, %v5212_v12   ;;  %2534 = vperm.xlu0 %3190, %v5171_v51   ;;  %v6075_v32 = vsub.f32 %v5206_v4, %v5210_v38  ;;  %v6076_v19 = vsub.f32 %v5179_v21, %v5185_v0  ;;  %v6077_v7 = vsub.f32 %v5246_v35, %v5252_v55 }
 0x537   :  { %v6078_v12 = vsub.f32 %v5217_v3, %v5225_v1 }
 0x53a   :  { %2549 = vperm.xlu1 %3191, %v5241_v2   ;;  %2539 = vperm.xlu0 %3190, %v5197_v39  }
 0x53e   :  { %2567 = vperm.xlu1 %3191, %v6075_v32   ;;  %2562 = vperm.xlu0 %3190, %v6076_v19  }
 0x542   :  { %2577 = vperm.xlu1 %3191, %v6077_v7   ;;  %2572 = vperm.xlu0 %3190, %v6078_v12  }
 0x546   :  { %3193 = vset.pattern.permute.xlu1 %v5758_v33  ;;  %3192 = vset.pattern.permute.xlu0 %v5758_v33 }
 0x5b1   :  { %v2545_v51 = vpop.permute.xlu1 %2544  ;;  %v2535_v2 = vpop.permute.xlu0 %2534 }
 0x5b2   :  { %v2552_v25 = vmul.f32 %v2535_v2, %v4980_v10  ;;  %v2553_v4 = vmul.f32 %v2535_v2, %v4988_v16  ;;  %v2556_v3 = vmul.f32 %v2545_v51, %v5006_v42  ;;  %v2557_v1 = vmul.f32 %v2545_v51, %v5010_v61 }
 0x5b5   :  { %v2550_v30 = vpop.permute.xlu1 %2549  ;;  %v2540_v39 = vpop.permute.xlu0 %2539 }
 0x5b6   :  { %v2554_v38 = vmul.f32 %v2540_v39, %v4996_v47  ;;  %v2555_v21 = vmul.f32 %v2540_v39, %v4998_v5  ;;  %v2558_v15 = vmul.f32 %v2550_v30, %v5016_v40  ;;  %v2559_v10 = vmul.f32 %v2550_v30, %v5018_v34 }
 0x5b9   :  { %v2568_v0 = vpop.permute.xlu1 %2567  ;;  %v2563_v13 = vpop.permute.xlu0 %2562 }
 0x5ba   :  { %v2582_v55 = vadd.f32 %v2568_v0, %v2554_v38  ;;  %v2583_v35 = vadd.f32 %v2568_v0, %v2555_v21  ;;  %v2580_v48 = vadd.f32 %v2563_v13, %v2552_v25  ;;  %v2581_v57 = vadd.f32 %v2563_v13, %v2553_v4 }
 0x5bc   :  { %3021 = vst [vmem:[%s5570_s8 + $0x50] sm:$0xff] %v2582_v55  ;;  %3022 = vst [vmem:[%s5570_s8 + $0x58] sm:$0xff] %v2583_v35 }
 0x5bd   :  { %3019 = vst [vmem:[%s5570_s8 + $0x40] sm:$0xff] %v2580_v48  ;;  %3020 = vst [vmem:[%s5570_s8 + $0x48] sm:$0xff] %v2581_v57  ;;  %v2578_v16 = vpop.permute.xlu1 %2577  ;;  %v2573_v47 = vpop.permute.xlu0 %2572 }
 0x5be   :  { %v2586_v5 = vadd.f32 %v2578_v16, %v2558_v15  ;;  %v2587_v42 = vadd.f32 %v2578_v16, %v2559_v10  ;;  %v2584_v61 = vadd.f32 %v2573_v47, %v2556_v3  ;;  %v2585_v40 = vadd.f32 %v2573_v47, %v2557_v1 }
 0x5c0   :  { %3025 = vst [vmem:[%s5570_s8 + $0x70] sm:$0xff] %v2586_v5  ;;  %3026 = vst [vmem:[%s5570_s8 + $0x78] sm:$0xff] %v2587_v42 }
 0x5c1   :  { %3023 = vst [vmem:[%s5570_s8 + $0x60] sm:$0xff] %v2584_v61  ;;  %3024 = vst [vmem:[%s5570_s8 + $0x68] sm:$0xff] %v2585_v40 }
 0x5c2   :  { %2655 = vsyncadd [#allocation5 + $0x1], 1024  ;;  %2668 = vperm.xlu1 %3193, %v5286_v11   ;;  %2658 = vperm.xlu0 %3192, %v5248_v17   ;;  %v6079_v34 = vsub.f32 %v5280_v60, %v5284_v58  ;;  %v6080_v54 = vsub.f32 %v5257_v26, %v5263_v56  ;;  %v6081_v44 = vsub.f32 %v5312_v6, %v5316_v52 }
 0x5c3   :  { %v6082_v11 = vsub.f32 %v5293_v22, %v5297_v8 }
 0x5c6   :  { %2673 = vperm.xlu1 %3193, %v5307_v62   ;;  %2663 = vperm.xlu0 %3192, %v5272_v20  }
 0x5ca   :  { %2691 = vperm.xlu1 %3193, %v6079_v34   ;;  %2686 = vperm.xlu0 %3192, %v6080_v54  }
 0x5ce   :  { %2701 = vperm.xlu1 %3193, %v6081_v44   ;;  %2696 = vperm.xlu0 %3192, %v6082_v11  }
 0x5d2   :  { %3195 = vset.pattern.permute.xlu1 %v5758_v33  ;;  %3194 = vset.pattern.permute.xlu0 %v5758_v33 }
 0x63d   :  { %v2669_v17 = vpop.permute.xlu1 %2668  ;;  %v2659_v62 = vpop.permute.xlu0 %2658 }
 0x63e   :  { %v2676_v27 = vmul.f32 %v2659_v62, %v5026_v18  ;;  %v2677_v60 = vmul.f32 %v2659_v62, %v5030_v45  ;;  %v2680_v22 = vmul.f32 %v2669_v17, %v5046_v50  ;;  %v2681_v8 = vmul.f32 %v2669_v17, %v5050_v49 }
 0x641   :  { %v2674_v14 = vpop.permute.xlu1 %2673  ;;  %v2664_v20 = vpop.permute.xlu0 %2663 }
 0x642   :  { %v2678_v58 = vmul.f32 %v2664_v20, %v5036_v46  ;;  %v2679_v26 = vmul.f32 %v2664_v20, %v5038_v37  ;;  %v2682_v53 = vmul.f32 %v2674_v14, %v5056_v23  ;;  %v2683_v18 = vmul.f32 %v2674_v14, %v5058_v36 }
 0x645   :  { %v2692_v56 = vpop.permute.xlu1 %2691  ;;  %v2687_v9 = vpop.permute.xlu0 %2686 }
 0x646   :  { %v2706_v6 = vadd.f32 %v2692_v56, %v2678_v58  ;;  %v2707_v52 = vadd.f32 %v2692_v56, %v2679_v26  ;;  %v2704_v28 = vadd.f32 %v2687_v9, %v2676_v27  ;;  %v2705_v41 = vadd.f32 %v2687_v9, %v2677_v60 }
 0x648   :  { %3030 = vst [vmem:[%s5570_s8 + $0x90] sm:$0xff] %v2706_v6  ;;  %3031 = vst [vmem:[%s5570_s8 + $0x98] sm:$0xff] %v2707_v52 }
 0x649   :  { %3028 = vst [vmem:[%s5570_s8 + $0x80] sm:$0xff] %v2704_v28  ;;  %3029 = vst [vmem:[%s5570_s8 + $0x88] sm:$0xff] %v2705_v41  ;;  %v2702_v45 = vpop.permute.xlu1 %2701  ;;  %v2697_v46 = vpop.permute.xlu0 %2696 }
 0x64a   :  { %v2710_v37 = vadd.f32 %v2702_v45, %v2682_v53  ;;  %v2711_v50 = vadd.f32 %v2702_v45, %v2683_v18  ;;  %v2708_v49 = vadd.f32 %v2697_v46, %v2680_v22  ;;  %v2709_v23 = vadd.f32 %v2697_v46, %v2681_v8 }
 0x64c   :  { %3034 = vst [vmem:[%s5570_s8 + $0xb0] sm:$0xff] %v2710_v37  ;;  %3035 = vst [vmem:[%s5570_s8 + $0xb8] sm:$0xff] %v2711_v50 }
 0x64d   :  { %3032 = vst [vmem:[%s5570_s8 + $0xa0] sm:$0xff] %v2708_v49  ;;  %3033 = vst [vmem:[%s5570_s8 + $0xa8] sm:$0xff] %v2709_v23 }
 0x64e   :  { %2779 = vsyncadd [#allocation5 + $0x2], 1024  ;;  %v6083_v36 = vld [vmem:[#allocation180_spill] sm:$0xff]  ;;  %v6084_v24 = vld [vmem:[#allocation149_spill] sm:$0xff] }
 0x64f   :  { %2792 = vperm.xlu1 %3195, %v6083_v36   ;;  %2782 = vperm.xlu0 %3194, %v6084_v24   ;;  %v6085_v59 = vld [vmem:[#allocation177_spill] sm:$0xff]  ;;  %v6087_v32 = vld [vmem:[#allocation182_spill] sm:$0xff]  ;;  %v6088_v19 = vld [vmem:[#allocation179_spill] sm:$0xff] }
 0x650   :  { %v6086_v43 = vld [vmem:[#allocation181_spill] sm:$0xff]  ;;  %v6089_v7 = vsub.f32 %v6087_v32, %v6088_v19  ;;  %v6091_v51 = vld [vmem:[#allocation146_spill] sm:$0xff]  ;;  %v6093_v33 = vld [vmem:[#allocation176_spill] sm:$0xff] }
 0x651   :  { %v6090_v12 = vld [vmem:[#allocation145_spill] sm:$0xff]  ;;  %v6094_v30 = vld [vmem:[#allocation172_spill] sm:$0xff]  ;;  %v6096_v0 = vld [vmem:[#allocation150_spill] sm:$0xff] }
 0x652   :  { %v6092_v2 = vsub.f32 %v6090_v12, %v6091_v51  ;;  %v6095_v39 = vsub.f32 %v6093_v33, %v6094_v30  ;;  %v6097_v55 = vld [vmem:[#allocation153_spill] sm:$0xff]  ;;  %v6098_v48 = vld [vmem:[#allocation154_spill] sm:$0xff]  ;;  %v6099_v3 = vld [vmem:[#allocation151_spill] sm:$0xff] }
 0x653   :  { %2797 = vperm.xlu1 %3195, %v6085_v59   ;;  %2787 = vperm.xlu0 %3194, %v6086_v43   ;;  %v6100_v47 = vld [vmem:[#allocation152_spill] sm:$0xff]  ;;  %v6101_v42 = vld [vmem:[#allocation147_spill] sm:$0xff] }
 0x654   :  { %v6102_v40 = vld [vmem:[#allocation144_spill] sm:$0xff] }
 0x655   :  { %v6103_v54 = vld [vmem:[#allocation148_spill] sm:$0xff] }
 0x657   :  { %2815 = vperm.xlu1 %3195, %v6089_v7   ;;  %2810 = vperm.xlu0 %3194, %v6092_v2  }
 0x65b   :  { %2825 = vperm.xlu1 %3195, %v2410_v31   ;;  %2820 = vperm.xlu0 %3194, %v6095_v39  }
 0x6ca   :  { %v2793_v25 = vpop.permute.xlu1 %2792  ;;  %v2783_v4 = vpop.permute.xlu0 %2782 }
 0x6cb   :  { %v2800_v13 = vmul.f32 %v2783_v4, %v6096_v0  ;;  %v2801_v35 = vmul.f32 %v2783_v4, %v6097_v55  ;;  %v2804_v5 = vmul.f32 %v2793_v25, %v6100_v47  ;;  %v2805_v61 = vmul.f32 %v2793_v25, %v6101_v42 }
 0x6ce   :  { %v2798_v38 = vpop.permute.xlu1 %2797  ;;  %v2788_v21 = vpop.permute.xlu0 %2787 }
 0x6cf   :  { %v2802_v57 = vmul.f32 %v2788_v21, %v6098_v48  ;;  %v2803_v1 = vmul.f32 %v2788_v21, %v6099_v3  ;;  %v2806_v34 = vmul.f32 %v2798_v38, %v6102_v40  ;;  %v2807_v44 = vmul.f32 %v2798_v38, %v6103_v54 }
 0x6d2   :  { %v2816_v15 = vpop.permute.xlu1 %2815  ;;  %v2811_v10 = vpop.permute.xlu0 %2810 }
 0x6d3   :  { %v2830_v29 = vadd.f32 %v2816_v15, %v2802_v57  ;;  %v2831_v63 = vadd.f32 %v2816_v15, %v2803_v1  ;;  %v2828_v31 = vadd.f32 %v2811_v10, %v2800_v13  ;;  %v2829_v16 = vadd.f32 %v2811_v10, %v2801_v35 }
 0x6d5   :  { %3039 = vst [vmem:[%s5570_s8 + $0xd0] sm:$0xff] %v2830_v29  ;;  %3040 = vst [vmem:[%s5570_s8 + $0xd8] sm:$0xff] %v2831_v63 }
 0x6d6   :  { %3037 = vst [vmem:[%s5570_s8 + $0xc0] sm:$0xff] %v2828_v31  ;;  %3038 = vst [vmem:[%s5570_s8 + $0xc8] sm:$0xff] %v2829_v16  ;;  %v2826_v11 = vpop.permute.xlu1 %2825  ;;  %v2821_v17 = vpop.permute.xlu0 %2820 }
 0x6d7   :  { %v2834_v62 = vadd.f32 %v2826_v11, %v2806_v34  ;;  %v2835_v14 = vadd.f32 %v2826_v11, %v2807_v44  ;;  %v2832_v20 = vadd.f32 %v2821_v17, %v2804_v5  ;;  %v2833_v27 = vadd.f32 %v2821_v17, %v2805_v61 }
 0x6d9   :  { %3043 = vst [vmem:[%s5570_s8 + $0xf0] sm:$0xff] %v2834_v62  ;;  %3044 = vst [vmem:[%s5570_s8 + $0xf8] sm:$0xff] %v2835_v14 }
 0x6da   :  { %3041 = vst [vmem:[%s5570_s8 + $0xe0] sm:$0xff] %v2832_v20  ;;  %3042 = vst [vmem:[%s5570_s8 + $0xe8] sm:$0xff] %v2833_v27 }
 0x6db   :  { %2903 = vsyncadd [#allocation5 + $0x3], 1024 }
 0x6dc   :  { %3198 = dma.done.wait [#allocation5], 1024 }
 0x6dd   :  { %3199 = vsyncadd [#allocation5], 4294966272 }
 0x6de   :  { %3200 = dma.done.wait [#allocation5 + $0x1], 1024 }
 0x6df   :  { %3201 = vsyncadd [#allocation5 + $0x1], 4294966272 }
 0x6e0   :  { %3202 = dma.done.wait [#allocation5 + $0x2], 1024 }
 0x6e1   :  { %3203 = vsyncadd [#allocation5 + $0x2], 4294966272 }
 0x6e2   :  { %3204 = dma.done.wait [#allocation5 + $0x3], 1024 }
 0x6e3   :  { %3205 = vsyncadd [#allocation5 + $0x3], 4294966272 }
 0x6e4   :  { %2914 = vsyncmov [#allocation4] }
 0x6e7   :  { %s2915_s16 = vpop.sfrf %2914 }
 0x6e8   :  { %p3046_p0 = scmp.ne.s32.totalorder %s2915_s16, 0 }
 0x6ea   :  { %2919 = shalt.err (%p3046_p0)  }
 0x6eb   :  { %2920 = vsyncmov [#allocation5] }
 0x6ee   :  { %s2921_s17 = vpop.sfrf %2920 }
 0x6ef   :  { %p3047_p1 = scmp.ne.s32.totalorder %s2921_s17, 0 }
 0x6f1   :  { %2925 = shalt.err (%p3047_p1)  }
 0x6f2   :  { %2927 = vsyncmov [#allocation5 + $0x1] }
 0x6f5   :  { %s2928_s18 = vpop.sfrf %2927 }
 0x6f6   :  { %p3048_p2 = scmp.ne.s32.totalorder %s2928_s18, 0 }
 0x6f8   :  { %2932 = shalt.err (%p3048_p2)  }
 0x6f9   :  { %2934 = vsyncmov [#allocation5 + $0x2] }
 0x6fc   :  { %s2935_s8 = vpop.sfrf %2934 }
 0x6fd   :  { %p3049_p3 = scmp.ne.s32.totalorder %s2935_s8, 0 }
 0x6ff   :  { %2939 = shalt.err (%p3049_p3)  }
 0x700   :  { %2941 = vsyncmov [#allocation5 + $0x3] }
 0x703   :  { %s2942_s19 = vpop.sfrf %2941 }
 0x704   :  { %p3050_p4 = scmp.ne.s32.totalorder %s2942_s19, 0 }
 0x706   :  { %2946 = shalt.err (%p3050_p4)  }

</bundles_post_ra>
